<compile_context>
chip_gen: v7x
topology: tpu7x:2x2x1
jax: 0.10.0
libtpu: 0.0.40
codegen_flags: <defaults>
</compile_context>

<pallas_src>
import functools
import math

import jax
import jax.numpy as jnp
from jax import lax
from jax.experimental import pallas as pl
from jax.experimental.pallas import tpu as pltpu


def _round_up(x, m):
    return ((x + m - 1) // m) * m


def _gru_layer_kernel(x_ref, len_ref, h0_ref, wih_ref, whh_ref, bi_ref,
                      bhn_ref, out_ref, hn_ref, gi_scr, hf_scr, hb_scr,
                      *, seq_len, batch_tile, hidden_p, num_dirs, unroll):
    """One GRU layer (both directions, one batch tile) over the full sequence.

    x_ref   : (S*bt, K)      bf16   time-major within the tile (row = t*bt + b)
    len_ref : (bt, 1)        int32  lengths (padded batch rows: 0)
    h0_ref  : (D, bt, Hp)    f32
    wih_ref : (K, D*3Hp)     bf16   [W_ir|W_iz|W_in] per dir, 128-aligned gates
    whh_ref : (D, Hp, 3Hp)   bf16
    bi_ref  : (1, D*3Hp)     f32    [b_ir+b_hr | b_iz+b_hz | b_in]
    bhn_ref : (D, 1, Hp)     f32
    out_ref : (S*bt, D*Hp)   bf16/f32  zeros at padded steps
    hn_ref  : (D, bt, Hp)    f32    state at the last valid step
    """
    Hp, bt = hidden_p, batch_tile
    G = 3 * Hp

    # Hoisted input projection: one MXU matmul for all timesteps & directions
    # (independent of h). r/z biases are pre-folded. Stored bf16 to halve the
    # dominant VMEM scratch (v7x has only 64 MiB physical VMEM).
    gi = jnp.dot(x_ref[...], wih_ref[...], preferred_element_type=jnp.float32)
    gi_scr[...] = (gi + bi_ref[...]).astype(gi_scr.dtype)

    # Loop-invariant values, hoisted (JAX does not CSE broadcasts in loops).
    lens = len_ref[...]                                   # (bt, 1) int32
    zeros = jnp.zeros((bt, Hp), jnp.float32)
    whh_f = whh_ref[0]
    bhn_f = bhn_ref[0]
    hf_scr[...] = h0_ref[0]
    if num_dirs == 2:
        whh_b = whh_ref[1]
        bhn_b = bhn_ref[1]
        hb_scr[...] = h0_ref[1]

    def cell(h, gi_t, whh, bhn):
        # Fused hidden-side projection: a single (bt,Hp)@(Hp,3Hp) MXU matmul.
        gh = jnp.dot(h.astype(whh.dtype), whh,
                     preferred_element_type=jnp.float32)
        g = gi_t.astype(jnp.float32)
        r = jax.nn.sigmoid(g[:, 0:Hp] + gh[:, 0:Hp])
        z = jax.nn.sigmoid(g[:, Hp:2 * Hp] + gh[:, Hp:2 * Hp])
        n = jnp.tanh(g[:, 2 * Hp:3 * Hp] + r * (gh[:, 2 * Hp:3 * Hp] + bhn))
        return (1.0 - z) * n + z * h                      # PyTorch GRU update

    def step(i, carry):
        # Interleave the two independent direction chains in one step so the
        # MXU push/pop + EUP sigmoid/tanh of one direction fills the slots the
        # serial h-dependence of the other would leave idle.
        t_f = i
        row_f = pl.multiple_of(t_f * bt, bt)
        h_f = hf_scr[...]
        hf_new = cell(h_f, gi_scr[pl.ds(row_f, bt), 0:G], whh_f, bhn_f)
        valid_f = t_f < lens                              # (bt, 1) bool
        # Packed-sequence semantics: hold h past the sequence end, write zeros
        # at padded positions (== pad_packed_sequence).
        hf_scr[...] = jnp.where(valid_f, hf_new, h_f)
        out_ref[pl.ds(row_f, bt), 0:Hp] = jnp.where(
            valid_f, hf_new, zeros).astype(out_ref.dtype)

        if num_dirs == 2:
            t_b = seq_len - 1 - i
            row_b = pl.multiple_of(t_b * bt, bt)
            h_b = hb_scr[...]
            hb_new = cell(h_b, gi_scr[pl.ds(row_b, bt), G:2 * G], whh_b, bhn_b)
            valid_b = t_b < lens
            hb_scr[...] = jnp.where(valid_b, hb_new, h_b)
            out_ref[pl.ds(row_b, bt), Hp:2 * Hp] = jnp.where(
                valid_b, hb_new, zeros).astype(out_ref.dtype)
        return carry

    lax.fori_loop(0, seq_len, step, 0, unroll=unroll)

    hn_ref[0] = hf_scr[...]
    if num_dirs == 2:
        hn_ref[1] = hb_scr[...]


def _run_gru_layer(x_t, lens_t, h0_layer, wih, whh, bi, bhn, *, seq_len,
                   batch_tile, num_batch_tiles, hidden_p, num_dirs, in_width,
                   out_dtype):
    """Run one GRU layer (both directions) as a single batch-tiled Pallas call."""
    S, bt, nbt = seq_len, batch_tile, num_batch_tiles
    Hp, D, K = hidden_p, num_dirs, in_width
    OW = D * Hp          # lane-dense output width (128-aligned)
    GW = D * 3 * Hp      # packed gate width

    # Cap unroll: the recurrence is a serial dependence chain, so unrolling
    # past a few steps buys nothing and blows vregs / instruction memory.
    unroll = S if S <= 16 else 8
    kernel = functools.partial(_gru_layer_kernel, seq_len=S, batch_tile=bt,
                               hidden_p=Hp, num_dirs=D, unroll=unroll)

    grid_spec = pltpu.PrefetchScalarGridSpec(
        num_scalar_prefetch=0,
        grid=(nbt,),
        in_specs=[
            pl.BlockSpec((None, S * bt, K), lambda j: (j, 0, 0)),    # x tile
            pl.BlockSpec((None, bt, 1), lambda j: (j, 0, 0)),        # lengths
            pl.BlockSpec((D, bt, Hp), lambda j: (0, j, 0)),          # h0
            pl.BlockSpec((K, GW), lambda j: (0, 0)),                 # W_ih (resident)
            pl.BlockSpec((D, Hp, 3 * Hp), lambda j: (0, 0, 0)),      # W_hh (resident)
            pl.BlockSpec((1, GW), lambda j: (0, 0)),                 # fused biases
            pl.BlockSpec((D, 1, Hp), lambda j: (0, 0, 0)),           # b_hn
        ],
        out_specs=[
            pl.BlockSpec((None, S * bt, OW), lambda j: (j, 0, 0)),   # output
            pl.BlockSpec((D, bt, Hp), lambda j: (0, j, 0)),          # hn
        ],
        scratch_shapes=[
            pltpu.VMEM((S * bt, GW), jnp.bfloat16),   # hoisted input gates
            pltpu.VMEM((bt, Hp), jnp.float32),        # h (forward)
            pltpu.VMEM((bt, Hp), jnp.float32),        # h (reverse)
        ],
    )

    out_isz = jnp.dtype(out_dtype).itemsize
    # VMEM budget: double-buffered streamed blocks + resident weights + scratch.
    blk = (S * bt * K * 2 + bt * 4 + D * bt * Hp * 4
           + S * bt * OW * out_isz + D * bt * Hp * 4)
    res = K * GW * 2 + D * Hp * 3 * Hp * 2 + GW * 4 + D * Hp * 4
    scr = S * bt * GW * 2 + 2 * bt * Hp * 4
    vmem_limit = int(min(max(2 * blk + res + scr + (8 << 20), 32 << 20),
                         64 << 20))   # cap at v7x physical VMEM

    flops = 2 * nbt * S * bt * K * GW + 2 * nbt * S * D * bt * Hp * 3 * Hp
    transcendentals = nbt * S * D * bt * Hp * 3
    bytes_accessed = (nbt * S * bt * (K * 2 + OW * out_isz)
                      + K * GW * 2 + D * Hp * 3 * Hp * 2
                      + 2 * D * nbt * bt * Hp * 4)

    out, hn = pl.pallas_call(
        kernel,
        out_shape=(
            jax.ShapeDtypeStruct((nbt, S * bt, OW), out_dtype),
            jax.ShapeDtypeStruct((D, nbt * bt, Hp), jnp.float32),
        ),
        grid_spec=grid_spec,
        compiler_params=pltpu.CompilerParams(
            dimension_semantics=("parallel",),   # batch tiles -> megacore/v7x TCs
            vmem_limit_bytes=vmem_limit),
        cost_estimate=pl.CostEstimate(flops=flops,
                                      transcendentals=transcendentals,
                                      bytes_accessed=bytes_accessed),
    )(x_t, lens_t, h0_layer, wih, whh, bi, bhn)
    return out, hn


def _init_gru_params(key, input_size, hidden_size, num_layers, num_directions,
                     hidden_pad, input_pad):
    """PyTorch-style GRU init U(-1/sqrt(H), 1/sqrt(H)), packed + lane-padded.

    Padded rows/columns are zero, so padded hidden lanes stay exactly zero
    through the recurrence (h0 pad = 0) and contribute nothing to real lanes.
    """
    H, Hp, D = hidden_size, hidden_pad, num_directions
    bound = 1.0 / math.sqrt(H)
    params = []
    for layer in range(num_layers):
        if layer == 0:
            in_real, in_pad = input_size, input_pad
            in_blocks = [(slice(0, input_size), slice(0, input_size))]
        else:
            in_real, in_pad = D * H, D * Hp
            in_blocks = [(slice(di * H, (di + 1) * H),
                          slice(di * Hp, di * Hp + H)) for di in range(D)]
        wih = jnp.zeros((in_pad, D * 3 * Hp), jnp.float32)
        whh = jnp.zeros((D, Hp, 3 * Hp), jnp.float32)
        bi = jnp.zeros((1, D * 3 * Hp), jnp.float32)
        bhn = jnp.zeros((D, 1, Hp), jnp.float32)
        for d in range(D):
            key, k1, k2, k3, k4 = jax.random.split(key, 5)
            w_ih = jax.random.uniform(k1, (3 * H, in_real), jnp.float32,
                                      -bound, bound)
            w_hh = jax.random.uniform(k2, (3 * H, H), jnp.float32,
                                      -bound, bound)
            b_ih = jax.random.uniform(k3, (3 * H,), jnp.float32, -bound, bound)
            b_hh = jax.random.uniform(k4, (3 * H,), jnp.float32, -bound, bound)
            base = d * 3 * Hp
            for g in range(3):                 # gates packed (r | z | n)
                col = slice(base + g * Hp, base + g * Hp + H)
                for src, dst in in_blocks:     # transposed so kernel does x @ W
                    wih = wih.at[dst, col].set(w_ih[g * H:(g + 1) * H, src].T)
                whh = whh.at[d, 0:H, g * Hp:g * Hp + H].set(
                    w_hh[g * H:(g + 1) * H, :].T)
                if g < 2:   # r, z: input & hidden biases fold together
                    bi = bi.at[0, col].set(b_ih[g * H:(g + 1) * H]
                                           + b_hh[g * H:(g + 1) * H])
                else:       # n: b_in folds in; b_hn stays inside r*(...)
                    bi = bi.at[0, col].set(b_ih[2 * H:3 * H])
            bhn = bhn.at[d, 0, 0:H].set(b_hh[2 * H:3 * H])
        params.append((wih.astype(jnp.bfloat16), whh.astype(jnp.bfloat16),
                       bi, bhn))
    return params


class EncoderWithoutDropoutPallas:
    """JAX/Pallas port of Encoder_without_dropout (forward pass)."""

    def __init__(self, input_size, hidden_size, num_layers, bidirectional,
                 embedding, key):
        self.num_directions = 2 if bidirectional else 1
        assert hidden_size % self.num_directions == 0
        self.hidden_size = hidden_size // self.num_directions
        self.num_layers = num_layers
        # Lane-dense padding: per-direction hidden padded to a multiple of 128
        # so gate slices are aligned views and per-step stores are full-lane.
        # TODO(synk): target 256-aligned K/N for full 2x256x256 systolic tiles
        # on v6e/v7x at production widths.
        self.hidden_pad = _round_up(self.hidden_size, 128)
        self.input_size = input_size
        self.input_pad = _round_up(input_size, 128)
        emb = jnp.asarray(embedding, jnp.float32)
        emb = jnp.pad(emb, ((0, 0), (0, self.input_pad - input_size)))
        # Pad + cast the table once: the per-call gather then yields bf16
        # directly (no per-token cast pass).
        self.embedding_padded = emb.astype(jnp.bfloat16)
        self.params = _init_gru_params(
            key, input_size, self.hidden_size, num_layers,
            self.num_directions, self.hidden_pad, self.input_pad)

    def __call__(self, input_ids, lengths, h0=None):
        """
        input_ids : (seq_len, batch) int32 padded token ids
        lengths   : (1, batch) or (batch,) int32 sequence lengths
        h0        : optional (num_layers*num_directions, batch, hidden) f32
        returns (hn, output):
          hn     : (num_layers*num_directions, batch, hidden)
          output : (seq_len, batch, hidden*num_directions)
        """
        seq_len, batch = input_ids.shape
        H, Hp = self.hidden_size, self.hidden_pad
        L, D = self.num_layers, self.num_directions

        # Batch tile: multiple of 16 (bf16 sublane packing), up to 128 rows
        # per grid step; tiles shard across TensorCores ("parallel" axis).
        bt = min(128, _round_up(batch, 16))
        Bp = _round_up(batch, bt)
        nbt = Bp // bt

        # Embedding gather is plain-JAX glue; then lay x out batch-tiled with
        # time-major rows inside each tile (row = t*bt + b), which is exactly
        # the layout the kernel's per-step slices and the next layer consume.
        embed = self.embedding_padded[input_ids]          # (S, B, in_pad) bf16
        embed = jnp.pad(embed, ((0, 0), (0, Bp - batch), (0, 0)))
        x_t = (embed.reshape(seq_len, nbt, bt, self.input_pad)
               .transpose(1, 0, 2, 3)
               .reshape(nbt, seq_len * bt, self.input_pad))

        lens = jnp.reshape(lengths, (-1,)).astype(jnp.int32)
        lens = jnp.pad(lens, (0, Bp - batch))             # padded rows: 0
        lens_t = lens.reshape(nbt, bt, 1)

        h0p = jnp.zeros((L * D, Bp, Hp), jnp.float32)
        if h0 is not None:
            h0p = h0p.at[:, :batch, :H].set(jnp.asarray(h0, jnp.float32))

        hns = []
        layer_in = x_t
        in_width = self.input_pad
        out = None
        for layer in range(L):
            wih, whh, bi, bhn = self.params[layer]
            # Inter-layer activations leave the kernel in bf16; final in f32.
            out_dtype = jnp.float32 if layer == L - 1 else jnp.bfloat16
            out, hn = _run_gru_layer(
                layer_in, lens_t, h0p[layer * D:(layer + 1) * D],
                wih, whh, bi, bhn,
                seq_len=seq_len, batch_tile=bt, num_batch_tiles=nbt,
                hidden_p=Hp, num_dirs=D, in_width=in_width,
                out_dtype=out_dtype)
            hns.append(hn)
            layer_in = out                 # already in the tiled bf16 layout
            in_width = D * Hp

        hn_all = jnp.concatenate(hns, axis=0)[:, :batch, :H]      # (L*D, B, H)
        out5 = out.reshape(nbt, seq_len, bt, D, Hp)[..., :H]
        output = (out5.transpose(1, 0, 2, 3, 4)
                  .reshape(seq_len, Bp, D * H)[:, :batch, :])      # (S, B, D*H)
        return hn_all, output


if __name__ == "__main__":
    key = jax.random.PRNGKey(0)
    k_emb, k_gru, k_ids = jax.random.split(key, 3)

    vocab_size = 37
    input_size = 16
    hidden_size = 32          # total; 16 per direction (bidirectional)
    num_layers = 2
    bidirectional = True
    seq_len, batch = 8, 2

    embedding = jax.random.normal(k_emb, (vocab_size, input_size), jnp.float32)
    encoder = EncoderWithoutDropoutPallas(
        input_size, hidden_size, num_layers, bidirectional, embedding, k_gru)

    input_ids = jax.random.randint(k_ids, (seq_len, batch), 0, vocab_size,
                                   jnp.int32)
    lengths = jnp.array([[8, 5]], dtype=jnp.int32)                # (1, batch)

    hn, output = encoder(input_ids, lengths)
    jax.block_until_ready((hn, output))

    assert hn.shape == (num_layers * 2, batch, hidden_size // 2)
    assert output.shape == (seq_len, batch, hidden_size)
    # padded timesteps of the shorter sequence must be exactly zero
    assert bool(jnp.all(output[5:, 1, :] == 0.0))
    assert bool(jnp.all(jnp.isfinite(output)))
    assert bool(jnp.all(jnp.isfinite(hn)))

    print("KERNEL_OK")
</pallas_src>

<mosaic_0001>
module attributes {stable_mosaic.version = 11 : i64} {
  func.func @_gru_layer_kernel(%arg0: i32, %arg1: memref<1x128x128xbf16, #tpu.memory_space<vmem>>, %arg2: memref<1x16x1xi32, #tpu.memory_space<vmem>>, %arg3: memref<2x16x128xf32, #tpu.memory_space<vmem>>, %arg4: memref<128x768xbf16, #tpu.memory_space<vmem>>, %arg5: memref<2x128x384xbf16, #tpu.memory_space<vmem>>, %arg6: memref<1x768xf32, #tpu.memory_space<vmem>>, %arg7: memref<2x1x128xf32, #tpu.memory_space<vmem>>, %arg8: memref<1x128x256xbf16, #tpu.memory_space<vmem>>, %arg9: memref<2x16x128xf32, #tpu.memory_space<vmem>>, %arg10: memref<128x768xbf16, #tpu.memory_space<vmem>>, %arg11: memref<16x128xf32, #tpu.memory_space<vmem>>, %arg12: memref<16x128xf32, #tpu.memory_space<vmem>>) attributes {dimension_semantics = [#tpu.dimension_semantics<parallel>], iteration_bounds = array<i64: 1>, scalar_prefetch = 0 : i64, scratch_operands = 3 : i64, tpu.core_type = #tpu.core_type<tc>, window_params = [{transform_indices = @transform_0, window_bounds = array<i64: 1, 128, 128>}, {transform_indices = @transform_1, window_bounds = array<i64: 1, 16, 1>}, {transform_indices = @transform_2, window_bounds = array<i64: 2, 16, 128>}, {pipeline_mode = #tpu.pipeline_mode<synchronous>, transform_indices = @transform_3, window_bounds = array<i64: 128, 768>}, {pipeline_mode = #tpu.pipeline_mode<synchronous>, transform_indices = @transform_4, window_bounds = array<i64: 2, 128, 384>}, {pipeline_mode = #tpu.pipeline_mode<synchronous>, transform_indices = @transform_5, window_bounds = array<i64: 1, 768>}, {pipeline_mode = #tpu.pipeline_mode<synchronous>, transform_indices = @transform_6, window_bounds = array<i64: 2, 1, 128>}, {transform_indices = @transform_7, window_bounds = array<i64: 1, 128, 256>}, {transform_indices = @transform_8, window_bounds = array<i64: 2, 16, 128>}]} {
    %c0 = arith.constant 0 : index
    %c0_0 = arith.constant 0 : index
    %c0_1 = arith.constant 0 : index
    %0 = vector.load %arg1[%c0, %c0_0, %c0_1] : memref<1x128x128xbf16, #tpu.memory_space<vmem>>, vector<1x128x128xbf16>
    %1 = vector.shape_cast %0 : vector<1x128x128xbf16> to vector<128x128xbf16>
    %c0_2 = arith.constant 0 : index
    %c0_3 = arith.constant 0 : index
    %2 = vector.load %arg4[%c0_2, %c0_3] : memref<128x768xbf16, #tpu.memory_space<vmem>>, vector<128x768xbf16>
    %cst = arith.constant dense<0.000000e+00> : vector<128x768xf32>
    %3 = tpu.matmul %1, %2, %cst {dimension_numbers = #tpu.dot_dimension_numbers<[1], [0], [0], [1], [0, 0, 1, 1], [], []>} : vector<128x128xbf16>, vector<128x768xbf16>, vector<128x768xf32> -> vector<128x768xf32>
    %c0_4 = arith.constant 0 : index
    %c0_5 = arith.constant 0 : index
    %4 = vector.load %arg6[%c0_4, %c0_5] : memref<1x768xf32, #tpu.memory_space<vmem>>, vector<1x768xf32>
    %5 = vector.broadcast %4 : vector<1x768xf32> to vector<128x768xf32>
    %6 = arith.addf %3, %5 : vector<128x768xf32>
    %7 = arith.truncf %6 : vector<128x768xf32> to vector<128x768xbf16>
    %c0_6 = arith.constant 0 : index
    %c0_7 = arith.constant 0 : index
    %8 = vector.load %arg10[%c0_6, %c0_7] : memref<128x768xbf16, #tpu.memory_space<vmem>>, vector<128x768xbf16>
    tpu.vector_store %arg10[%c0_6, %c0_7], %7 {strides = array<i32>} : memref<128x768xbf16, #tpu.memory_space<vmem>>, vector<128x768xbf16>,
    %c0_8 = arith.constant 0 : index
    %c0_9 = arith.constant 0 : index
    %c0_10 = arith.constant 0 : index
    %9 = vector.load %arg2[%c0_8, %c0_9, %c0_10] : memref<1x16x1xi32, #tpu.memory_space<vmem>>, vector<1x16x1xi32>
    %10 = vector.shape_cast %9 : vector<1x16x1xi32> to vector<16x1xi32>
    %cst_11 = arith.constant 0.000000e+00 : f32
    %11 = vector.broadcast %cst_11 : f32 to vector<16x128xf32>
    %c0_12 = arith.constant 0 : index
    %c0_13 = arith.constant 0 : index
    %c0_14 = arith.constant 0 : index
    %12 = vector.load %arg5[%c0_12, %c0_13, %c0_14] : memref<2x128x384xbf16, #tpu.memory_space<vmem>>, vector<1x128x384xbf16>
    %13 = vector.shape_cast %12 : vector<1x128x384xbf16> to vector<128x384xbf16>
    %c0_15 = arith.constant 0 : index
    %c0_16 = arith.constant 0 : index
    %c0_17 = arith.constant 0 : index
    %14 = vector.load %arg7[%c0_15, %c0_16, %c0_17] : memref<2x1x128xf32, #tpu.memory_space<vmem>>, vector<1x1x128xf32>
    %15 = vector.shape_cast %14 : vector<1x1x128xf32> to vector<1x128xf32>
    %c0_18 = arith.constant 0 : index
    %c0_19 = arith.constant 0 : index
    %c0_20 = arith.constant 0 : index
    %16 = vector.load %arg3[%c0_18, %c0_19, %c0_20] : memref<2x16x128xf32, #tpu.memory_space<vmem>>, vector<1x16x128xf32>
    %17 = vector.shape_cast %16 : vector<1x16x128xf32> to vector<16x128xf32>
    %c0_21 = arith.constant 0 : index
    %c0_22 = arith.constant 0 : index
    %18 = vector.load %arg11[%c0_21, %c0_22] : memref<16x128xf32, #tpu.memory_space<vmem>>, vector<16x128xf32>
    tpu.vector_store %arg11[%c0_21, %c0_22], %17 {strides = array<i32>} : memref<16x128xf32, #tpu.memory_space<vmem>>, vector<16x128xf32>,
    %c1 = arith.constant 1 : index
    %c0_23 = arith.constant 0 : index
    %c0_24 = arith.constant 0 : index
    %19 = vector.load %arg5[%c1, %c0_23, %c0_24] : memref<2x128x384xbf16, #tpu.memory_space<vmem>>, vector<1x128x384xbf16>
    %20 = vector.shape_cast %19 : vector<1x128x384xbf16> to vector<128x384xbf16>
    %c1_25 = arith.constant 1 : index
    %c0_26 = arith.constant 0 : index
    %c0_27 = arith.constant 0 : index
    %21 = vector.load %arg7[%c1_25, %c0_26, %c0_27] : memref<2x1x128xf32, #tpu.memory_space<vmem>>, vector<1x1x128xf32>
    %22 = vector.shape_cast %21 : vector<1x1x128xf32> to vector<1x128xf32>
    %c1_28 = arith.constant 1 : index
    %c0_29 = arith.constant 0 : index
    %c0_30 = arith.constant 0 : index
    %23 = vector.load %arg3[%c1_28, %c0_29, %c0_30] : memref<2x16x128xf32, #tpu.memory_space<vmem>>, vector<1x16x128xf32>
    %24 = vector.shape_cast %23 : vector<1x16x128xf32> to vector<16x128xf32>
    %c0_31 = arith.constant 0 : index
    %c0_32 = arith.constant 0 : index
    %25 = vector.load %arg12[%c0_31, %c0_32] : memref<16x128xf32, #tpu.memory_space<vmem>>, vector<16x128xf32>
    tpu.vector_store %arg12[%c0_31, %c0_32], %24 {strides = array<i32>} : memref<16x128xf32, #tpu.memory_space<vmem>>, vector<16x128xf32>,
    %c0_i32 = arith.constant 0 : i32
    %c16_i32 = arith.constant 16 : i32
    %26 = arith.muli %c0_i32, %c16_i32 : i32
    %27 = tpu.assume_multiple %26, 16 : i32
    %c0_33 = arith.constant 0 : index
    %c0_34 = arith.constant 0 : index
    %28 = vector.load %arg11[%c0_33, %c0_34] : memref<16x128xf32, #tpu.memory_space<vmem>>, vector<16x128xf32>
    %29 = arith.index_cast %27 : i32 to index
    %c0_35 = arith.constant 0 : index
    %30 = vector.load %arg10[%29, %c0_35] : memref<128x768xbf16, #tpu.memory_space<vmem>>, vector<16x384xbf16>
    %31 = arith.truncf %28 : vector<16x128xf32> to vector<16x128xbf16>
    %cst_36 = arith.constant dense<0.000000e+00> : vector<16x384xf32>
    %32 = tpu.matmul %31, %13, %cst_36 {dimension_numbers = #tpu.dot_dimension_numbers<[1], [0], [0], [1], [0, 0, 1, 1], [], []>} : vector<16x128xbf16>, vector<128x384xbf16>, vector<16x384xf32> -> vector<16x384xf32>
    %33 = arith.extf %30 : vector<16x384xbf16> to vector<16x384xf32>
    %34 = vector.extract_strided_slice %33 {offsets = [0, 0], sizes = [16, 128], strides = [1, 1]} : vector<16x384xf32> to vector<16x128xf32>
    %35 = vector.extract_strided_slice %32 {offsets = [0, 0], sizes = [16, 128], strides = [1, 1]} : vector<16x384xf32> to vector<16x128xf32>
    %36 = arith.addf %34, %35 : vector<16x128xf32>
    %37 = arith.negf %36 : vector<16x128xf32>
    %38 = math.exp %37 : vector<16x128xf32>
    %cst_37 = arith.constant 1.000000e+00 : f32
    %39 = vector.broadcast %cst_37 : f32 to vector<16x128xf32>
    %40 = arith.addf %39, %38 : vector<16x128xf32>
    %41 = arith.divf %39, %40 : vector<16x128xf32>
    %42 = vector.extract_strided_slice %33 {offsets = [0, 128], sizes = [16, 128], strides = [1, 1]} : vector<16x384xf32> to vector<16x128xf32>
    %43 = vector.extract_strided_slice %32 {offsets = [0, 128], sizes = [16, 128], strides = [1, 1]} : vector<16x384xf32> to vector<16x128xf32>
    %44 = arith.addf %42, %43 : vector<16x128xf32>
    %45 = arith.negf %44 : vector<16x128xf32>
    %46 = math.exp %45 : vector<16x128xf32>
    %cst_38 = arith.constant 1.000000e+00 : f32
    %47 = vector.broadcast %cst_38 : f32 to vector<16x128xf32>
    %48 = arith.addf %47, %46 : vector<16x128xf32>
    %49 = arith.divf %47, %48 : vector<16x128xf32>
    %50 = vector.extract_strided_slice %33 {offsets = [0, 256], sizes = [16, 128], strides = [1, 1]} : vector<16x384xf32> to vector<16x128xf32>
    %51 = vector.extract_strided_slice %32 {offsets = [0, 256], sizes = [16, 128], strides = [1, 1]} : vector<16x384xf32> to vector<16x128xf32>
    %52 = vector.broadcast %15 : vector<1x128xf32> to vector<16x128xf32>
    %53 = arith.addf %51, %52 : vector<16x128xf32>
    %54 = arith.mulf %41, %53 : vector<16x128xf32>
    %55 = arith.addf %50, %54 : vector<16x128xf32>
    %56 = math.tanh %55 : vector<16x128xf32>
    %cst_39 = arith.constant 1.000000e+00 : f32
    %57 = vector.broadcast %cst_39 : f32 to vector<16x128xf32>
    %58 = arith.subf %57, %49 : vector<16x128xf32>
    %59 = arith.mulf %58, %56 : vector<16x128xf32>
    %60 = arith.mulf %49, %28 : vector<16x128xf32>
    %61 = arith.addf %59, %60 : vector<16x128xf32>
    %62 = vector.broadcast %c0_i32 : i32 to vector<16x1xi32>
    %63 = arith.cmpi slt, %62, %10 : vector<16x1xi32>
    %64 = vector.shape_cast %63 : vector<16x1xi1> to vector<16x1xi1>
    %65 = vector.broadcast %64 : vector<16x1xi1> to vector<16x128xi1>
    %66 = arith.select %65, %61, %28 : vector<16x128xi1>, vector<16x128xf32>
    %c0_40 = arith.constant 0 : index
    %c0_41 = arith.constant 0 : index
    %67 = vector.load %arg11[%c0_40, %c0_41] : memref<16x128xf32, #tpu.memory_space<vmem>>, vector<16x128xf32>
    tpu.vector_store %arg11[%c0_40, %c0_41], %66 {strides = array<i32>} : memref<16x128xf32, #tpu.memory_space<vmem>>, vector<16x128xf32>,
    %68 = vector.shape_cast %63 : vector<16x1xi1> to vector<16x1xi1>
    %69 = vector.broadcast %68 : vector<16x1xi1> to vector<16x128xi1>
    %70 = arith.select %69, %61, %11 : vector<16x128xi1>, vector<16x128xf32>
    %71 = arith.truncf %70 : vector<16x128xf32> to vector<16x128xbf16>
    %c0_42 = arith.constant 0 : index
    %72 = arith.index_cast %27 : i32 to index
    %c0_43 = arith.constant 0 : index
    %73 = vector.load %arg8[%c0_42, %72, %c0_43] : memref<1x128x256xbf16, #tpu.memory_space<vmem>>, vector<1x16x128xbf16>
    %74 = vector.shape_cast %73 : vector<1x16x128xbf16> to vector<16x128xbf16>
    %75 = vector.shape_cast %71 : vector<16x128xbf16> to vector<1x16x128xbf16>
    tpu.vector_store %arg8[%c0_42, %72, %c0_43], %75 {strides = array<i32>} : memref<1x128x256xbf16, #tpu.memory_space<vmem>>, vector<1x16x128xbf16>,
    %c7_i32 = arith.constant 7 : i32
    %76 = arith.subi %c7_i32, %c0_i32 : i32
    %c16_i32_44 = arith.constant 16 : i32
    %77 = arith.muli %76, %c16_i32_44 : i32
    %78 = tpu.assume_multiple %77, 16 : i32
    %c0_45 = arith.constant 0 : index
    %c0_46 = arith.constant 0 : index
    %79 = vector.load %arg12[%c0_45, %c0_46] : memref<16x128xf32, #tpu.memory_space<vmem>>, vector<16x128xf32>
    %80 = arith.index_cast %78 : i32 to index
    %c384 = arith.constant 384 : index
    %81 = vector.load %arg10[%80, %c384] : memref<128x768xbf16, #tpu.memory_space<vmem>>, vector<16x384xbf16>
    %82 = arith.truncf %79 : vector<16x128xf32> to vector<16x128xbf16>
    %cst_47 = arith.constant dense<0.000000e+00> : vector<16x384xf32>
    %83 = tpu.matmul %82, %20, %cst_47 {dimension_numbers = #tpu.dot_dimension_numbers<[1], [0], [0], [1], [0, 0, 1, 1], [], []>} : vector<16x128xbf16>, vector<128x384xbf16>, vector<16x384xf32> -> vector<16x384xf32>
    %84 = arith.extf %81 : vector<16x384xbf16> to vector<16x384xf32>
    %85 = vector.extract_strided_slice %84 {offsets = [0, 0], sizes = [16, 128], strides = [1, 1]} : vector<16x384xf32> to vector<16x128xf32>
    %86 = vector.extract_strided_slice %83 {offsets = [0, 0], sizes = [16, 128], strides = [1, 1]} : vector<16x384xf32> to vector<16x128xf32>
    %87 = arith.addf %85, %86 : vector<16x128xf32>
    %88 = arith.negf %87 : vector<16x128xf32>
    %89 = math.exp %88 : vector<16x128xf32>
    %cst_48 = arith.constant 1.000000e+00 : f32
    %90 = vector.broadcast %cst_48 : f32 to vector<16x128xf32>
    %91 = arith.addf %90, %89 : vector<16x128xf32>
    %92 = arith.divf %90, %91 : vector<16x128xf32>
    %93 = vector.extract_strided_slice %84 {offsets = [0, 128], sizes = [16, 128], strides = [1, 1]} : vector<16x384xf32> to vector<16x128xf32>
    %94 = vector.extract_strided_slice %83 {offsets = [0, 128], sizes = [16, 128], strides = [1, 1]} : vector<16x384xf32> to vector<16x128xf32>
    %95 = arith.addf %93, %94 : vector<16x128xf32>
    %96 = arith.negf %95 : vector<16x128xf32>
    %97 = math.exp %96 : vector<16x128xf32>
    %cst_49 = arith.constant 1.000000e+00 : f32
    %98 = vector.broadcast %cst_49 : f32 to vector<16x128xf32>
    %99 = arith.addf %98, %97 : vector<16x128xf32>
    %100 = arith.divf %98, %99 : vector<16x128xf32>
    %101 = vector.extract_strided_slice %84 {offsets = [0, 256], sizes = [16, 128], strides = [1, 1]} : vector<16x384xf32> to vector<16x128xf32>
    %102 = vector.extract_strided_slice %83 {offsets = [0, 256], sizes = [16, 128], strides = [1, 1]} : vector<16x384xf32> to vector<16x128xf32>
    %103 = vector.broadcast %22 : vector<1x128xf32> to vector<16x128xf32>
    %104 = arith.addf %102, %103 : vector<16x128xf32>
    %105 = arith.mulf %92, %104 : vector<16x128xf32>
    %106 = arith.addf %101, %105 : vector<16x128xf32>
    %107 = math.tanh %106 : vector<16x128xf32>
    %cst_50 = arith.constant 1.000000e+00 : f32
    %108 = vector.broadcast %cst_50 : f32 to vector<16x128xf32>
    %109 = arith.subf %108, %100 : vector<16x128xf32>
    %110 = arith.mulf %109, %107 : vector<16x128xf32>
    %111 = arith.mulf %100, %79 : vector<16x128xf32>
    %112 = arith.addf %110, %111 : vector<16x128xf32>
    %113 = vector.broadcast %76 : i32 to vector<16x1xi32>
    %114 = arith.cmpi slt, %113, %10 : vector<16x1xi32>
    %115 = vector.shape_cast %114 : vector<16x1xi1> to vector<16x1xi1>
    %116 = vector.broadcast %115 : vector<16x1xi1> to vector<16x128xi1>
    %117 = arith.select %116, %112, %79 : vector<16x128xi1>, vector<16x128xf32>
    %c0_51 = arith.constant 0 : index
    %c0_52 = arith.constant 0 : index
    %118 = vector.load %arg12[%c0_51, %c0_52] : memref<16x128xf32, #tpu.memory_space<vmem>>, vector<16x128xf32>
    tpu.vector_store %arg12[%c0_51, %c0_52], %117 {strides = array<i32>} : memref<16x128xf32, #tpu.memory_space<vmem>>, vector<16x128xf32>,
    %119 = vector.shape_cast %114 : vector<16x1xi1> to vector<16x1xi1>
    %120 = vector.broadcast %119 : vector<16x1xi1> to vector<16x128xi1>
    %121 = arith.select %120, %112, %11 : vector<16x128xi1>, vector<16x128xf32>
    %122 = arith.truncf %121 : vector<16x128xf32> to vector<16x128xbf16>
    %c0_53 = arith.constant 0 : index
    %123 = arith.index_cast %78 : i32 to index
    %c128 = arith.constant 128 : index
    %124 = vector.load %arg8[%c0_53, %123, %c128] : memref<1x128x256xbf16, #tpu.memory_space<vmem>>, vector<1x16x128xbf16>
    %125 = vector.shape_cast %124 : vector<1x16x128xbf16> to vector<16x128xbf16>
    %126 = vector.shape_cast %122 : vector<16x128xbf16> to vector<1x16x128xbf16>
    tpu.vector_store %arg8[%c0_53, %123, %c128], %126 {strides = array<i32>} : memref<1x128x256xbf16, #tpu.memory_space<vmem>>, vector<1x16x128xbf16>,
    %c1_i32 = arith.constant 1 : i32
    %c16_i32_54 = arith.constant 16 : i32
    %127 = arith.muli %c1_i32, %c16_i32_54 : i32
    %128 = tpu.assume_multiple %127, 16 : i32
    %c0_55 = arith.constant 0 : index
    %c0_56 = arith.constant 0 : index
    %129 = vector.load %arg11[%c0_55, %c0_56] : memref<16x128xf32, #tpu.memory_space<vmem>>, vector<16x128xf32>
    %130 = arith.index_cast %128 : i32 to index
    %c0_57 = arith.constant 0 : index
    %131 = vector.load %arg10[%130, %c0_57] : memref<128x768xbf16, #tpu.memory_space<vmem>>, vector<16x384xbf16>
    %132 = arith.truncf %129 : vector<16x128xf32> to vector<16x128xbf16>
    %cst_58 = arith.constant dense<0.000000e+00> : vector<16x384xf32>
    %133 = tpu.matmul %132, %13, %cst_58 {dimension_numbers = #tpu.dot_dimension_numbers<[1], [0], [0], [1], [0, 0, 1, 1], [], []>} : vector<16x128xbf16>, vector<128x384xbf16>, vector<16x384xf32> -> vector<16x384xf32>
    %134 = arith.extf %131 : vector<16x384xbf16> to vector<16x384xf32>
    %135 = vector.extract_strided_slice %134 {offsets = [0, 0], sizes = [16, 128], strides = [1, 1]} : vector<16x384xf32> to vector<16x128xf32>
    %136 = vector.extract_strided_slice %133 {offsets = [0, 0], sizes = [16, 128], strides = [1, 1]} : vector<16x384xf32> to vector<16x128xf32>
    %137 = arith.addf %135, %136 : vector<16x128xf32>
    %138 = arith.negf %137 : vector<16x128xf32>
    %139 = math.exp %138 : vector<16x128xf32>
    %cst_59 = arith.constant 1.000000e+00 : f32
    %140 = vector.broadcast %cst_59 : f32 to vector<16x128xf32>
    %141 = arith.addf %140, %139 : vector<16x128xf32>
    %142 = arith.divf %140, %141 : vector<16x128xf32>
    %143 = vector.extract_strided_slice %134 {offsets = [0, 128], sizes = [16, 128], strides = [1, 1]} : vector<16x384xf32> to vector<16x128xf32>
    %144 = vector.extract_strided_slice %133 {offsets = [0, 128], sizes = [16, 128], strides = [1, 1]} : vector<16x384xf32> to vector<16x128xf32>
    %145 = arith.addf %143, %144 : vector<16x128xf32>
    %146 = arith.negf %145 : vector<16x128xf32>
    %147 = math.exp %146 : vector<16x128xf32>
    %cst_60 = arith.constant 1.000000e+00 : f32
    %148 = vector.broadcast %cst_60 : f32 to vector<16x128xf32>
    %149 = arith.addf %148, %147 : vector<16x128xf32>
    %150 = arith.divf %148, %149 : vector<16x128xf32>
    %151 = vector.extract_strided_slice %134 {offsets = [0, 256], sizes = [16, 128], strides = [1, 1]} : vector<16x384xf32> to vector<16x128xf32>
    %152 = vector.extract_strided_slice %133 {offsets = [0, 256], sizes = [16, 128], strides = [1, 1]} : vector<16x384xf32> to vector<16x128xf32>
    %153 = vector.broadcast %15 : vector<1x128xf32> to vector<16x128xf32>
    %154 = arith.addf %152, %153 : vector<16x128xf32>
    %155 = arith.mulf %142, %154 : vector<16x128xf32>
    %156 = arith.addf %151, %155 : vector<16x128xf32>
    %157 = math.tanh %156 : vector<16x128xf32>
    %cst_61 = arith.constant 1.000000e+00 : f32
    %158 = vector.broadcast %cst_61 : f32 to vector<16x128xf32>
    %159 = arith.subf %158, %150 : vector<16x128xf32>
    %160 = arith.mulf %159, %157 : vector<16x128xf32>
    %161 = arith.mulf %150, %129 : vector<16x128xf32>
    %162 = arith.addf %160, %161 : vector<16x128xf32>
    %163 = vector.broadcast %c1_i32 : i32 to vector<16x1xi32>
    %164 = arith.cmpi slt, %163, %10 : vector<16x1xi32>
    %165 = vector.shape_cast %164 : vector<16x1xi1> to vector<16x1xi1>
    %166 = vector.broadcast %165 : vector<16x1xi1> to vector<16x128xi1>
    %167 = arith.select %166, %162, %129 : vector<16x128xi1>, vector<16x128xf32>
    %c0_62 = arith.constant 0 : index
    %c0_63 = arith.constant 0 : index
    %168 = vector.load %arg11[%c0_62, %c0_63] : memref<16x128xf32, #tpu.memory_space<vmem>>, vector<16x128xf32>
    tpu.vector_store %arg11[%c0_62, %c0_63], %167 {strides = array<i32>} : memref<16x128xf32, #tpu.memory_space<vmem>>, vector<16x128xf32>,
    %169 = vector.shape_cast %164 : vector<16x1xi1> to vector<16x1xi1>
    %170 = vector.broadcast %169 : vector<16x1xi1> to vector<16x128xi1>
    %171 = arith.select %170, %162, %11 : vector<16x128xi1>, vector<16x128xf32>
    %172 = arith.truncf %171 : vector<16x128xf32> to vector<16x128xbf16>
    %c0_64 = arith.constant 0 : index
    %173 = arith.index_cast %128 : i32 to index
    %c0_65 = arith.constant 0 : index
    %174 = vector.load %arg8[%c0_64, %173, %c0_65] : memref<1x128x256xbf16, #tpu.memory_space<vmem>>, vector<1x16x128xbf16>
    %175 = vector.shape_cast %174 : vector<1x16x128xbf16> to vector<16x128xbf16>
    %176 = vector.shape_cast %172 : vector<16x128xbf16> to vector<1x16x128xbf16>
    tpu.vector_store %arg8[%c0_64, %173, %c0_65], %176 {strides = array<i32>} : memref<1x128x256xbf16, #tpu.memory_space<vmem>>, vector<1x16x128xbf16>,
    %c7_i32_66 = arith.constant 7 : i32
    %177 = arith.subi %c7_i32_66, %c1_i32 : i32
    %c16_i32_67 = arith.constant 16 : i32
    %178 = arith.muli %177, %c16_i32_67 : i32
    %179 = tpu.assume_multiple %178, 16 : i32
    %c0_68 = arith.constant 0 : index
    %c0_69 = arith.constant 0 : index
    %180 = vector.load %arg12[%c0_68, %c0_69] : memref<16x128xf32, #tpu.memory_space<vmem>>, vector<16x128xf32>
    %181 = arith.index_cast %179 : i32 to index
    %c384_70 = arith.constant 384 : index
    %182 = vector.load %arg10[%181, %c384_70] : memref<128x768xbf16, #tpu.memory_space<vmem>>, vector<16x384xbf16>
    %183 = arith.truncf %180 : vector<16x128xf32> to vector<16x128xbf16>
    %cst_71 = arith.constant dense<0.000000e+00> : vector<16x384xf32>
    %184 = tpu.matmul %183, %20, %cst_71 {dimension_numbers = #tpu.dot_dimension_numbers<[1], [0], [0], [1], [0, 0, 1, 1], [], []>} : vector<16x128xbf16>, vector<128x384xbf16>, vector<16x384xf32> -> vector<16x384xf32>
    %185 = arith.extf %182 : vector<16x384xbf16> to vector<16x384xf32>
    %186 = vector.extract_strided_slice %185 {offsets = [0, 0], sizes = [16, 128], strides = [1, 1]} : vector<16x384xf32> to vector<16x128xf32>
    %187 = vector.extract_strided_slice %184 {offsets = [0, 0], sizes = [16, 128], strides = [1, 1]} : vector<16x384xf32> to vector<16x128xf32>
    %188 = arith.addf %186, %187 : vector<16x128xf32>
    %189 = arith.negf %188 : vector<16x128xf32>
    %190 = math.exp %189 : vector<16x128xf32>
    %cst_72 = arith.constant 1.000000e+00 : f32
    %191 = vector.broadcast %cst_72 : f32 to vector<16x128xf32>
    %192 = arith.addf %191, %190 : vector<16x128xf32>
    %193 = arith.divf %191, %192 : vector<16x128xf32>
    %194 = vector.extract_strided_slice %185 {offsets = [0, 128], sizes = [16, 128], strides = [1, 1]} : vector<16x384xf32> to vector<16x128xf32>
    %195 = vector.extract_strided_slice %184 {offsets = [0, 128], sizes = [16, 128], strides = [1, 1]} : vector<16x384xf32> to vector<16x128xf32>
    %196 = arith.addf %194, %195 : vector<16x128xf32>
    %197 = arith.negf %196 : vector<16x128xf32>
    %198 = math.exp %197 : vector<16x128xf32>
    %cst_73 = arith.constant 1.000000e+00 : f32
    %199 = vector.broadcast %cst_73 : f32 to vector<16x128xf32>
    %200 = arith.addf %199, %198 : vector<16x128xf32>
    %201 = arith.divf %199, %200 : vector<16x128xf32>
    %202 = vector.extract_strided_slice %185 {offsets = [0, 256], sizes = [16, 128], strides = [1, 1]} : vector<16x384xf32> to vector<16x128xf32>
    %203 = vector.extract_strided_slice %184 {offsets = [0, 256], sizes = [16, 128], strides = [1, 1]} : vector<16x384xf32> to vector<16x128xf32>
    %204 = vector.broadcast %22 : vector<1x128xf32> to vector<16x128xf32>
    %205 = arith.addf %203, %204 : vector<16x128xf32>
    %206 = arith.mulf %193, %205 : vector<16x128xf32>
    %207 = arith.addf %202, %206 : vector<16x128xf32>
    %208 = math.tanh %207 : vector<16x128xf32>
    %cst_74 = arith.constant 1.000000e+00 : f32
    %209 = vector.broadcast %cst_74 : f32 to vector<16x128xf32>
    %210 = arith.subf %209, %201 : vector<16x128xf32>
    %211 = arith.mulf %210, %208 : vector<16x128xf32>
    %212 = arith.mulf %201, %180 : vector<16x128xf32>
    %213 = arith.addf %211, %212 : vector<16x128xf32>
    %214 = vector.broadcast %177 : i32 to vector<16x1xi32>
    %215 = arith.cmpi slt, %214, %10 : vector<16x1xi32>
    %216 = vector.shape_cast %215 : vector<16x1xi1> to vector<16x1xi1>
    %217 = vector.broadcast %216 : vector<16x1xi1> to vector<16x128xi1>
    %218 = arith.select %217, %213, %180 : vector<16x128xi1>, vector<16x128xf32>
    %c0_75 = arith.constant 0 : index
    %c0_76 = arith.constant 0 : index
    %219 = vector.load %arg12[%c0_75, %c0_76] : memref<16x128xf32, #tpu.memory_space<vmem>>, vector<16x128xf32>
    tpu.vector_store %arg12[%c0_75, %c0_76], %218 {strides = array<i32>} : memref<16x128xf32, #tpu.memory_space<vmem>>, vector<16x128xf32>,
    %220 = vector.shape_cast %215 : vector<16x1xi1> to vector<16x1xi1>
    %221 = vector.broadcast %220 : vector<16x1xi1> to vector<16x128xi1>
    %222 = arith.select %221, %213, %11 : vector<16x128xi1>, vector<16x128xf32>
    %223 = arith.truncf %222 : vector<16x128xf32> to vector<16x128xbf16>
    %c0_77 = arith.constant 0 : index
    %224 = arith.index_cast %179 : i32 to index
    %c128_78 = arith.constant 128 : index
    %225 = vector.load %arg8[%c0_77, %224, %c128_78] : memref<1x128x256xbf16, #tpu.memory_space<vmem>>, vector<1x16x128xbf16>
    %226 = vector.shape_cast %225 : vector<1x16x128xbf16> to vector<16x128xbf16>
    %227 = vector.shape_cast %223 : vector<16x128xbf16> to vector<1x16x128xbf16>
    tpu.vector_store %arg8[%c0_77, %224, %c128_78], %227 {strides = array<i32>} : memref<1x128x256xbf16, #tpu.memory_space<vmem>>, vector<1x16x128xbf16>,
    %c2_i32 = arith.constant 2 : i32
    %c16_i32_79 = arith.constant 16 : i32
    %228 = arith.muli %c2_i32, %c16_i32_79 : i32
    %229 = tpu.assume_multiple %228, 16 : i32
    %c0_80 = arith.constant 0 : index
    %c0_81 = arith.constant 0 : index
    %230 = vector.load %arg11[%c0_80, %c0_81] : memref<16x128xf32, #tpu.memory_space<vmem>>, vector<16x128xf32>
    %231 = arith.index_cast %229 : i32 to index
    %c0_82 = arith.constant 0 : index
    %232 = vector.load %arg10[%231, %c0_82] : memref<128x768xbf16, #tpu.memory_space<vmem>>, vector<16x384xbf16>
    %233 = arith.truncf %230 : vector<16x128xf32> to vector<16x128xbf16>
    %cst_83 = arith.constant dense<0.000000e+00> : vector<16x384xf32>
    %234 = tpu.matmul %233, %13, %cst_83 {dimension_numbers = #tpu.dot_dimension_numbers<[1], [0], [0], [1], [0, 0, 1, 1], [], []>} : vector<16x128xbf16>, vector<128x384xbf16>, vector<16x384xf32> -> vector<16x384xf32>
    %235 = arith.extf %232 : vector<16x384xbf16> to vector<16x384xf32>
    %236 = vector.extract_strided_slice %235 {offsets = [0, 0], sizes = [16, 128], strides = [1, 1]} : vector<16x384xf32> to vector<16x128xf32>
    %237 = vector.extract_strided_slice %234 {offsets = [0, 0], sizes = [16, 128], strides = [1, 1]} : vector<16x384xf32> to vector<16x128xf32>
    %238 = arith.addf %236, %237 : vector<16x128xf32>
    %239 = arith.negf %238 : vector<16x128xf32>
    %240 = math.exp %239 : vector<16x128xf32>
    %cst_84 = arith.constant 1.000000e+00 : f32
    %241 = vector.broadcast %cst_84 : f32 to vector<16x128xf32>
    %242 = arith.addf %241, %240 : vector<16x128xf32>
    %243 = arith.divf %241, %242 : vector<16x128xf32>
    %244 = vector.extract_strided_slice %235 {offsets = [0, 128], sizes = [16, 128], strides = [1, 1]} : vector<16x384xf32> to vector<16x128xf32>
    %245 = vector.extract_strided_slice %234 {offsets = [0, 128], sizes = [16, 128], strides = [1, 1]} : vector<16x384xf32> to vector<16x128xf32>
    %246 = arith.addf %244, %245 : vector<16x128xf32>
    %247 = arith.negf %246 : vector<16x128xf32>
    %248 = math.exp %247 : vector<16x128xf32>
    %cst_85 = arith.constant 1.000000e+00 : f32
    %249 = vector.broadcast %cst_85 : f32 to vector<16x128xf32>
    %250 = arith.addf %249, %248 : vector<16x128xf32>
    %251 = arith.divf %249, %250 : vector<16x128xf32>
    %252 = vector.extract_strided_slice %235 {offsets = [0, 256], sizes = [16, 128], strides = [1, 1]} : vector<16x384xf32> to vector<16x128xf32>
    %253 = vector.extract_strided_slice %234 {offsets = [0, 256], sizes = [16, 128], strides = [1, 1]} : vector<16x384xf32> to vector<16x128xf32>
    %254 = vector.broadcast %15 : vector<1x128xf32> to vector<16x128xf32>
    %255 = arith.addf %253, %254 : vector<16x128xf32>
    %256 = arith.mulf %243, %255 : vector<16x128xf32>
    %257 = arith.addf %252, %256 : vector<16x128xf32>
    %258 = math.tanh %257 : vector<16x128xf32>
    %cst_86 = arith.constant 1.000000e+00 : f32
    %259 = vector.broadcast %cst_86 : f32 to vector<16x128xf32>
    %260 = arith.subf %259, %251 : vector<16x128xf32>
    %261 = arith.mulf %260, %258 : vector<16x128xf32>
    %262 = arith.mulf %251, %230 : vector<16x128xf32>
    %263 = arith.addf %261, %262 : vector<16x128xf32>
    %264 = vector.broadcast %c2_i32 : i32 to vector<16x1xi32>
    %265 = arith.cmpi slt, %264, %10 : vector<16x1xi32>
    %266 = vector.shape_cast %265 : vector<16x1xi1> to vector<16x1xi1>
    %267 = vector.broadcast %266 : vector<16x1xi1> to vector<16x128xi1>
    %268 = arith.select %267, %263, %230 : vector<16x128xi1>, vector<16x128xf32>
    %c0_87 = arith.constant 0 : index
    %c0_88 = arith.constant 0 : index
    %269 = vector.load %arg11[%c0_87, %c0_88] : memref<16x128xf32, #tpu.memory_space<vmem>>, vector<16x128xf32>
    tpu.vector_store %arg11[%c0_87, %c0_88], %268 {strides = array<i32>} : memref<16x128xf32, #tpu.memory_space<vmem>>, vector<16x128xf32>,
    %270 = vector.shape_cast %265 : vector<16x1xi1> to vector<16x1xi1>
    %271 = vector.broadcast %270 : vector<16x1xi1> to vector<16x128xi1>
    %272 = arith.select %271, %263, %11 : vector<16x128xi1>, vector<16x128xf32>
    %273 = arith.truncf %272 : vector<16x128xf32> to vector<16x128xbf16>
    %c0_89 = arith.constant 0 : index
    %274 = arith.index_cast %229 : i32 to index
    %c0_90 = arith.constant 0 : index
    %275 = vector.load %arg8[%c0_89, %274, %c0_90] : memref<1x128x256xbf16, #tpu.memory_space<vmem>>, vector<1x16x128xbf16>
    %276 = vector.shape_cast %275 : vector<1x16x128xbf16> to vector<16x128xbf16>
    %277 = vector.shape_cast %273 : vector<16x128xbf16> to vector<1x16x128xbf16>
    tpu.vector_store %arg8[%c0_89, %274, %c0_90], %277 {strides = array<i32>} : memref<1x128x256xbf16, #tpu.memory_space<vmem>>, vector<1x16x128xbf16>,
    %c7_i32_91 = arith.constant 7 : i32
    %278 = arith.subi %c7_i32_91, %c2_i32 : i32
    %c16_i32_92 = arith.constant 16 : i32
    %279 = arith.muli %278, %c16_i32_92 : i32
    %280 = tpu.assume_multiple %279, 16 : i32
    %c0_93 = arith.constant 0 : index
    %c0_94 = arith.constant 0 : index
    %281 = vector.load %arg12[%c0_93, %c0_94] : memref<16x128xf32, #tpu.memory_space<vmem>>, vector<16x128xf32>
    %282 = arith.index_cast %280 : i32 to index
    %c384_95 = arith.constant 384 : index
    %283 = vector.load %arg10[%282, %c384_95] : memref<128x768xbf16, #tpu.memory_space<vmem>>, vector<16x384xbf16>
    %284 = arith.truncf %281 : vector<16x128xf32> to vector<16x128xbf16>
    %cst_96 = arith.constant dense<0.000000e+00> : vector<16x384xf32>
    %285 = tpu.matmul %284, %20, %cst_96 {dimension_numbers = #tpu.dot_dimension_numbers<[1], [0], [0], [1], [0, 0, 1, 1], [], []>} : vector<16x128xbf16>, vector<128x384xbf16>, vector<16x384xf32> -> vector<16x384xf32>
    %286 = arith.extf %283 : vector<16x384xbf16> to vector<16x384xf32>
    %287 = vector.extract_strided_slice %286 {offsets = [0, 0], sizes = [16, 128], strides = [1, 1]} : vector<16x384xf32> to vector<16x128xf32>
    %288 = vector.extract_strided_slice %285 {offsets = [0, 0], sizes = [16, 128], strides = [1, 1]} : vector<16x384xf32> to vector<16x128xf32>
    %289 = arith.addf %287, %288 : vector<16x128xf32>
    %290 = arith.negf %289 : vector<16x128xf32>
    %291 = math.exp %290 : vector<16x128xf32>
    %cst_97 = arith.constant 1.000000e+00 : f32
    %292 = vector.broadcast %cst_97 : f32 to vector<16x128xf32>
    %293 = arith.addf %292, %291 : vector<16x128xf32>
    %294 = arith.divf %292, %293 : vector<16x128xf32>
    %295 = vector.extract_strided_slice %286 {offsets = [0, 128], sizes = [16, 128], strides = [1, 1]} : vector<16x384xf32> to vector<16x128xf32>
    %296 = vector.extract_strided_slice %285 {offsets = [0, 128], sizes = [16, 128], strides = [1, 1]} : vector<16x384xf32> to vector<16x128xf32>
    %297 = arith.addf %295, %296 : vector<16x128xf32>
    %298 = arith.negf %297 : vector<16x128xf32>
    %299 = math.exp %298 : vector<16x128xf32>
    %cst_98 = arith.constant 1.000000e+00 : f32
    %300 = vector.broadcast %cst_98 : f32 to vector<16x128xf32>
    %301 = arith.addf %300, %299 : vector<16x128xf32>
    %302 = arith.divf %300, %301 : vector<16x128xf32>
    %303 = vector.extract_strided_slice %286 {offsets = [0, 256], sizes = [16, 128], strides = [1, 1]} : vector<16x384xf32> to vector<16x128xf32>
    %304 = vector.extract_strided_slice %285 {offsets = [0, 256], sizes = [16, 128], strides = [1, 1]} : vector<16x384xf32> to vector<16x128xf32>
    %305 = vector.broadcast %22 : vector<1x128xf32> to vector<16x128xf32>
    %306 = arith.addf %304, %305 : vector<16x128xf32>
    %307 = arith.mulf %294, %306 : vector<16x128xf32>
    %308 = arith.addf %303, %307 : vector<16x128xf32>
    %309 = math.tanh %308 : vector<16x128xf32>
    %cst_99 = arith.constant 1.000000e+00 : f32
    %310 = vector.broadcast %cst_99 : f32 to vector<16x128xf32>
    %311 = arith.subf %310, %302 : vector<16x128xf32>
    %312 = arith.mulf %311, %309 : vector<16x128xf32>
    %313 = arith.mulf %302, %281 : vector<16x128xf32>
    %314 = arith.addf %312, %313 : vector<16x128xf32>
    %315 = vector.broadcast %278 : i32 to vector<16x1xi32>
    %316 = arith.cmpi slt, %315, %10 : vector<16x1xi32>
    %317 = vector.shape_cast %316 : vector<16x1xi1> to vector<16x1xi1>
    %318 = vector.broadcast %317 : vector<16x1xi1> to vector<16x128xi1>
    %319 = arith.select %318, %314, %281 : vector<16x128xi1>, vector<16x128xf32>
    %c0_100 = arith.constant 0 : index
    %c0_101 = arith.constant 0 : index
    %320 = vector.load %arg12[%c0_100, %c0_101] : memref<16x128xf32, #tpu.memory_space<vmem>>, vector<16x128xf32>
    tpu.vector_store %arg12[%c0_100, %c0_101], %319 {strides = array<i32>} : memref<16x128xf32, #tpu.memory_space<vmem>>, vector<16x128xf32>,
    %321 = vector.shape_cast %316 : vector<16x1xi1> to vector<16x1xi1>
    %322 = vector.broadcast %321 : vector<16x1xi1> to vector<16x128xi1>
    %323 = arith.select %322, %314, %11 : vector<16x128xi1>, vector<16x128xf32>
    %324 = arith.truncf %323 : vector<16x128xf32> to vector<16x128xbf16>
    %c0_102 = arith.constant 0 : index
    %325 = arith.index_cast %280 : i32 to index
    %c128_103 = arith.constant 128 : index
    %326 = vector.load %arg8[%c0_102, %325, %c128_103] : memref<1x128x256xbf16, #tpu.memory_space<vmem>>, vector<1x16x128xbf16>
    %327 = vector.shape_cast %326 : vector<1x16x128xbf16> to vector<16x128xbf16>
    %328 = vector.shape_cast %324 : vector<16x128xbf16> to vector<1x16x128xbf16>
    tpu.vector_store %arg8[%c0_102, %325, %c128_103], %328 {strides = array<i32>} : memref<1x128x256xbf16, #tpu.memory_space<vmem>>, vector<1x16x128xbf16>,
    %c3_i32 = arith.constant 3 : i32
    %c16_i32_104 = arith.constant 16 : i32
    %329 = arith.muli %c3_i32, %c16_i32_104 : i32
    %330 = tpu.assume_multiple %329, 16 : i32
    %c0_105 = arith.constant 0 : index
    %c0_106 = arith.constant 0 : index
    %331 = vector.load %arg11[%c0_105, %c0_106] : memref<16x128xf32, #tpu.memory_space<vmem>>, vector<16x128xf32>
    %332 = arith.index_cast %330 : i32 to index
    %c0_107 = arith.constant 0 : index
    %333 = vector.load %arg10[%332, %c0_107] : memref<128x768xbf16, #tpu.memory_space<vmem>>, vector<16x384xbf16>
    %334 = arith.truncf %331 : vector<16x128xf32> to vector<16x128xbf16>
    %cst_108 = arith.constant dense<0.000000e+00> : vector<16x384xf32>
    %335 = tpu.matmul %334, %13, %cst_108 {dimension_numbers = #tpu.dot_dimension_numbers<[1], [0], [0], [1], [0, 0, 1, 1], [], []>} : vector<16x128xbf16>, vector<128x384xbf16>, vector<16x384xf32> -> vector<16x384xf32>
    %336 = arith.extf %333 : vector<16x384xbf16> to vector<16x384xf32>
    %337 = vector.extract_strided_slice %336 {offsets = [0, 0], sizes = [16, 128], strides = [1, 1]} : vector<16x384xf32> to vector<16x128xf32>
    %338 = vector.extract_strided_slice %335 {offsets = [0, 0], sizes = [16, 128], strides = [1, 1]} : vector<16x384xf32> to vector<16x128xf32>
    %339 = arith.addf %337, %338 : vector<16x128xf32>
    %340 = arith.negf %339 : vector<16x128xf32>
    %341 = math.exp %340 : vector<16x128xf32>
    %cst_109 = arith.constant 1.000000e+00 : f32
    %342 = vector.broadcast %cst_109 : f32 to vector<16x128xf32>
    %343 = arith.addf %342, %341 : vector<16x128xf32>
    %344 = arith.divf %342, %343 : vector<16x128xf32>
    %345 = vector.extract_strided_slice %336 {offsets = [0, 128], sizes = [16, 128], strides = [1, 1]} : vector<16x384xf32> to vector<16x128xf32>
    %346 = vector.extract_strided_slice %335 {offsets = [0, 128], sizes = [16, 128], strides = [1, 1]} : vector<16x384xf32> to vector<16x128xf32>
    %347 = arith.addf %345, %346 : vector<16x128xf32>
    %348 = arith.negf %347 : vector<16x128xf32>
    %349 = math.exp %348 : vector<16x128xf32>
    %cst_110 = arith.constant 1.000000e+00 : f32
    %350 = vector.broadcast %cst_110 : f32 to vector<16x128xf32>
    %351 = arith.addf %350, %349 : vector<16x128xf32>
    %352 = arith.divf %350, %351 : vector<16x128xf32>
    %353 = vector.extract_strided_slice %336 {offsets = [0, 256], sizes = [16, 128], strides = [1, 1]} : vector<16x384xf32> to vector<16x128xf32>
    %354 = vector.extract_strided_slice %335 {offsets = [0, 256], sizes = [16, 128], strides = [1, 1]} : vector<16x384xf32> to vector<16x128xf32>
    %355 = vector.broadcast %15 : vector<1x128xf32> to vector<16x128xf32>
    %356 = arith.addf %354, %355 : vector<16x128xf32>
    %357 = arith.mulf %344, %356 : vector<16x128xf32>
    %358 = arith.addf %353, %357 : vector<16x128xf32>
    %359 = math.tanh %358 : vector<16x128xf32>
    %cst_111 = arith.constant 1.000000e+00 : f32
    %360 = vector.broadcast %cst_111 : f32 to vector<16x128xf32>
    %361 = arith.subf %360, %352 : vector<16x128xf32>
    %362 = arith.mulf %361, %359 : vector<16x128xf32>
    %363 = arith.mulf %352, %331 : vector<16x128xf32>
    %364 = arith.addf %362, %363 : vector<16x128xf32>
    %365 = vector.broadcast %c3_i32 : i32 to vector<16x1xi32>
    %366 = arith.cmpi slt, %365, %10 : vector<16x1xi32>
    %367 = vector.shape_cast %366 : vector<16x1xi1> to vector<16x1xi1>
    %368 = vector.broadcast %367 : vector<16x1xi1> to vector<16x128xi1>
    %369 = arith.select %368, %364, %331 : vector<16x128xi1>, vector<16x128xf32>
    %c0_112 = arith.constant 0 : index
    %c0_113 = arith.constant 0 : index
    %370 = vector.load %arg11[%c0_112, %c0_113] : memref<16x128xf32, #tpu.memory_space<vmem>>, vector<16x128xf32>
    tpu.vector_store %arg11[%c0_112, %c0_113], %369 {strides = array<i32>} : memref<16x128xf32, #tpu.memory_space<vmem>>, vector<16x128xf32>,
    %371 = vector.shape_cast %366 : vector<16x1xi1> to vector<16x1xi1>
    %372 = vector.broadcast %371 : vector<16x1xi1> to vector<16x128xi1>
    %373 = arith.select %372, %364, %11 : vector<16x128xi1>, vector<16x128xf32>
    %374 = arith.truncf %373 : vector<16x128xf32> to vector<16x128xbf16>
    %c0_114 = arith.constant 0 : index
    %375 = arith.index_cast %330 : i32 to index
    %c0_115 = arith.constant 0 : index
    %376 = vector.load %arg8[%c0_114, %375, %c0_115] : memref<1x128x256xbf16, #tpu.memory_space<vmem>>, vector<1x16x128xbf16>
    %377 = vector.shape_cast %376 : vector<1x16x128xbf16> to vector<16x128xbf16>
    %378 = vector.shape_cast %374 : vector<16x128xbf16> to vector<1x16x128xbf16>
    tpu.vector_store %arg8[%c0_114, %375, %c0_115], %378 {strides = array<i32>} : memref<1x128x256xbf16, #tpu.memory_space<vmem>>, vector<1x16x128xbf16>,
    %c7_i32_116 = arith.constant 7 : i32
    %379 = arith.subi %c7_i32_116, %c3_i32 : i32
    %c16_i32_117 = arith.constant 16 : i32
    %380 = arith.muli %379, %c16_i32_117 : i32
    %381 = tpu.assume_multiple %380, 16 : i32
    %c0_118 = arith.constant 0 : index
    %c0_119 = arith.constant 0 : index
    %382 = vector.load %arg12[%c0_118, %c0_119] : memref<16x128xf32, #tpu.memory_space<vmem>>, vector<16x128xf32>
    %383 = arith.index_cast %381 : i32 to index
    %c384_120 = arith.constant 384 : index
    %384 = vector.load %arg10[%383, %c384_120] : memref<128x768xbf16, #tpu.memory_space<vmem>>, vector<16x384xbf16>
    %385 = arith.truncf %382 : vector<16x128xf32> to vector<16x128xbf16>
    %cst_121 = arith.constant dense<0.000000e+00> : vector<16x384xf32>
    %386 = tpu.matmul %385, %20, %cst_121 {dimension_numbers = #tpu.dot_dimension_numbers<[1], [0], [0], [1], [0, 0, 1, 1], [], []>} : vector<16x128xbf16>, vector<128x384xbf16>, vector<16x384xf32> -> vector<16x384xf32>
    %387 = arith.extf %384 : vector<16x384xbf16> to vector<16x384xf32>
    %388 = vector.extract_strided_slice %387 {offsets = [0, 0], sizes = [16, 128], strides = [1, 1]} : vector<16x384xf32> to vector<16x128xf32>
    %389 = vector.extract_strided_slice %386 {offsets = [0, 0], sizes = [16, 128], strides = [1, 1]} : vector<16x384xf32> to vector<16x128xf32>
    %390 = arith.addf %388, %389 : vector<16x128xf32>
    %391 = arith.negf %390 : vector<16x128xf32>
    %392 = math.exp %391 : vector<16x128xf32>
    %cst_122 = arith.constant 1.000000e+00 : f32
    %393 = vector.broadcast %cst_122 : f32 to vector<16x128xf32>
    %394 = arith.addf %393, %392 : vector<16x128xf32>
    %395 = arith.divf %393, %394 : vector<16x128xf32>
    %396 = vector.extract_strided_slice %387 {offsets = [0, 128], sizes = [16, 128], strides = [1, 1]} : vector<16x384xf32> to vector<16x128xf32>
    %397 = vector.extract_strided_slice %386 {offsets = [0, 128], sizes = [16, 128], strides = [1, 1]} : vector<16x384xf32> to vector<16x128xf32>
    %398 = arith.addf %396, %397 : vector<16x128xf32>
    %399 = arith.negf %398 : vector<16x128xf32>
    %400 = math.exp %399 : vector<16x128xf32>
    %cst_123 = arith.constant 1.000000e+00 : f32
    %401 = vector.broadcast %cst_123 : f32 to vector<16x128xf32>
    %402 = arith.addf %401, %400 : vector<16x128xf32>
    %403 = arith.divf %401, %402 : vector<16x128xf32>
    %404 = vector.extract_strided_slice %387 {offsets = [0, 256], sizes = [16, 128], strides = [1, 1]} : vector<16x384xf32> to vector<16x128xf32>
    %405 = vector.extract_strided_slice %386 {offsets = [0, 256], sizes = [16, 128], strides = [1, 1]} : vector<16x384xf32> to vector<16x128xf32>
    %406 = vector.broadcast %22 : vector<1x128xf32> to vector<16x128xf32>
    %407 = arith.addf %405, %406 : vector<16x128xf32>
    %408 = arith.mulf %395, %407 : vector<16x128xf32>
    %409 = arith.addf %404, %408 : vector<16x128xf32>
    %410 = math.tanh %409 : vector<16x128xf32>
    %cst_124 = arith.constant 1.000000e+00 : f32
    %411 = vector.broadcast %cst_124 : f32 to vector<16x128xf32>
    %412 = arith.subf %411, %403 : vector<16x128xf32>
    %413 = arith.mulf %412, %410 : vector<16x128xf32>
    %414 = arith.mulf %403, %382 : vector<16x128xf32>
    %415 = arith.addf %413, %414 : vector<16x128xf32>
    %416 = vector.broadcast %379 : i32 to vector<16x1xi32>
    %417 = arith.cmpi slt, %416, %10 : vector<16x1xi32>
    %418 = vector.shape_cast %417 : vector<16x1xi1> to vector<16x1xi1>
    %419 = vector.broadcast %418 : vector<16x1xi1> to vector<16x128xi1>
    %420 = arith.select %419, %415, %382 : vector<16x128xi1>, vector<16x128xf32>
    %c0_125 = arith.constant 0 : index
    %c0_126 = arith.constant 0 : index
    %421 = vector.load %arg12[%c0_125, %c0_126] : memref<16x128xf32, #tpu.memory_space<vmem>>, vector<16x128xf32>
    tpu.vector_store %arg12[%c0_125, %c0_126], %420 {strides = array<i32>} : memref<16x128xf32, #tpu.memory_space<vmem>>, vector<16x128xf32>,
    %422 = vector.shape_cast %417 : vector<16x1xi1> to vector<16x1xi1>
    %423 = vector.broadcast %422 : vector<16x1xi1> to vector<16x128xi1>
    %424 = arith.select %423, %415, %11 : vector<16x128xi1>, vector<16x128xf32>
    %425 = arith.truncf %424 : vector<16x128xf32> to vector<16x128xbf16>
    %c0_127 = arith.constant 0 : index
    %426 = arith.index_cast %381 : i32 to index
    %c128_128 = arith.constant 128 : index
    %427 = vector.load %arg8[%c0_127, %426, %c128_128] : memref<1x128x256xbf16, #tpu.memory_space<vmem>>, vector<1x16x128xbf16>
    %428 = vector.shape_cast %427 : vector<1x16x128xbf16> to vector<16x128xbf16>
    %429 = vector.shape_cast %425 : vector<16x128xbf16> to vector<1x16x128xbf16>
    tpu.vector_store %arg8[%c0_127, %426, %c128_128], %429 {strides = array<i32>} : memref<1x128x256xbf16, #tpu.memory_space<vmem>>, vector<1x16x128xbf16>,
    %c4_i32 = arith.constant 4 : i32
    %c16_i32_129 = arith.constant 16 : i32
    %430 = arith.muli %c4_i32, %c16_i32_129 : i32
    %431 = tpu.assume_multiple %430, 16 : i32
    %c0_130 = arith.constant 0 : index
    %c0_131 = arith.constant 0 : index
    %432 = vector.load %arg11[%c0_130, %c0_131] : memref<16x128xf32, #tpu.memory_space<vmem>>, vector<16x128xf32>
    %433 = arith.index_cast %431 : i32 to index
    %c0_132 = arith.constant 0 : index
    %434 = vector.load %arg10[%433, %c0_132] : memref<128x768xbf16, #tpu.memory_space<vmem>>, vector<16x384xbf16>
    %435 = arith.truncf %432 : vector<16x128xf32> to vector<16x128xbf16>
    %cst_133 = arith.constant dense<0.000000e+00> : vector<16x384xf32>
    %436 = tpu.matmul %435, %13, %cst_133 {dimension_numbers = #tpu.dot_dimension_numbers<[1], [0], [0], [1], [0, 0, 1, 1], [], []>} : vector<16x128xbf16>, vector<128x384xbf16>, vector<16x384xf32> -> vector<16x384xf32>
    %437 = arith.extf %434 : vector<16x384xbf16> to vector<16x384xf32>
    %438 = vector.extract_strided_slice %437 {offsets = [0, 0], sizes = [16, 128], strides = [1, 1]} : vector<16x384xf32> to vector<16x128xf32>
    %439 = vector.extract_strided_slice %436 {offsets = [0, 0], sizes = [16, 128], strides = [1, 1]} : vector<16x384xf32> to vector<16x128xf32>
    %440 = arith.addf %438, %439 : vector<16x128xf32>
    %441 = arith.negf %440 : vector<16x128xf32>
    %442 = math.exp %441 : vector<16x128xf32>
    %cst_134 = arith.constant 1.000000e+00 : f32
    %443 = vector.broadcast %cst_134 : f32 to vector<16x128xf32>
    %444 = arith.addf %443, %442 : vector<16x128xf32>
    %445 = arith.divf %443, %444 : vector<16x128xf32>
    %446 = vector.extract_strided_slice %437 {offsets = [0, 128], sizes = [16, 128], strides = [1, 1]} : vector<16x384xf32> to vector<16x128xf32>
    %447 = vector.extract_strided_slice %436 {offsets = [0, 128], sizes = [16, 128], strides = [1, 1]} : vector<16x384xf32> to vector<16x128xf32>
    %448 = arith.addf %446, %447 : vector<16x128xf32>
    %449 = arith.negf %448 : vector<16x128xf32>
    %450 = math.exp %449 : vector<16x128xf32>
    %cst_135 = arith.constant 1.000000e+00 : f32
    %451 = vector.broadcast %cst_135 : f32 to vector<16x128xf32>
    %452 = arith.addf %451, %450 : vector<16x128xf32>
    %453 = arith.divf %451, %452 : vector<16x128xf32>
    %454 = vector.extract_strided_slice %437 {offsets = [0, 256], sizes = [16, 128], strides = [1, 1]} : vector<16x384xf32> to vector<16x128xf32>
    %455 = vector.extract_strided_slice %436 {offsets = [0, 256], sizes = [16, 128], strides = [1, 1]} : vector<16x384xf32> to vector<16x128xf32>
    %456 = vector.broadcast %15 : vector<1x128xf32> to vector<16x128xf32>
    %457 = arith.addf %455, %456 : vector<16x128xf32>
    %458 = arith.mulf %445, %457 : vector<16x128xf32>
    %459 = arith.addf %454, %458 : vector<16x128xf32>
    %460 = math.tanh %459 : vector<16x128xf32>
    %cst_136 = arith.constant 1.000000e+00 : f32
    %461 = vector.broadcast %cst_136 : f32 to vector<16x128xf32>
    %462 = arith.subf %461, %453 : vector<16x128xf32>
    %463 = arith.mulf %462, %460 : vector<16x128xf32>
    %464 = arith.mulf %453, %432 : vector<16x128xf32>
    %465 = arith.addf %463, %464 : vector<16x128xf32>
    %466 = vector.broadcast %c4_i32 : i32 to vector<16x1xi32>
    %467 = arith.cmpi slt, %466, %10 : vector<16x1xi32>
    %468 = vector.shape_cast %467 : vector<16x1xi1> to vector<16x1xi1>
    %469 = vector.broadcast %468 : vector<16x1xi1> to vector<16x128xi1>
    %470 = arith.select %469, %465, %432 : vector<16x128xi1>, vector<16x128xf32>
    %c0_137 = arith.constant 0 : index
    %c0_138 = arith.constant 0 : index
    %471 = vector.load %arg11[%c0_137, %c0_138] : memref<16x128xf32, #tpu.memory_space<vmem>>, vector<16x128xf32>
    tpu.vector_store %arg11[%c0_137, %c0_138], %470 {strides = array<i32>} : memref<16x128xf32, #tpu.memory_space<vmem>>, vector<16x128xf32>,
    %472 = vector.shape_cast %467 : vector<16x1xi1> to vector<16x1xi1>
    %473 = vector.broadcast %472 : vector<16x1xi1> to vector<16x128xi1>
    %474 = arith.select %473, %465, %11 : vector<16x128xi1>, vector<16x128xf32>
    %475 = arith.truncf %474 : vector<16x128xf32> to vector<16x128xbf16>
    %c0_139 = arith.constant 0 : index
    %476 = arith.index_cast %431 : i32 to index
    %c0_140 = arith.constant 0 : index
    %477 = vector.load %arg8[%c0_139, %476, %c0_140] : memref<1x128x256xbf16, #tpu.memory_space<vmem>>, vector<1x16x128xbf16>
    %478 = vector.shape_cast %477 : vector<1x16x128xbf16> to vector<16x128xbf16>
    %479 = vector.shape_cast %475 : vector<16x128xbf16> to vector<1x16x128xbf16>
    tpu.vector_store %arg8[%c0_139, %476, %c0_140], %479 {strides = array<i32>} : memref<1x128x256xbf16, #tpu.memory_space<vmem>>, vector<1x16x128xbf16>,
    %c7_i32_141 = arith.constant 7 : i32
    %480 = arith.subi %c7_i32_141, %c4_i32 : i32
    %c16_i32_142 = arith.constant 16 : i32
    %481 = arith.muli %480, %c16_i32_142 : i32
    %482 = tpu.assume_multiple %481, 16 : i32
    %c0_143 = arith.constant 0 : index
    %c0_144 = arith.constant 0 : index
    %483 = vector.load %arg12[%c0_143, %c0_144] : memref<16x128xf32, #tpu.memory_space<vmem>>, vector<16x128xf32>
    %484 = arith.index_cast %482 : i32 to index
    %c384_145 = arith.constant 384 : index
    %485 = vector.load %arg10[%484, %c384_145] : memref<128x768xbf16, #tpu.memory_space<vmem>>, vector<16x384xbf16>
    %486 = arith.truncf %483 : vector<16x128xf32> to vector<16x128xbf16>
    %cst_146 = arith.constant dense<0.000000e+00> : vector<16x384xf32>
    %487 = tpu.matmul %486, %20, %cst_146 {dimension_numbers = #tpu.dot_dimension_numbers<[1], [0], [0], [1], [0, 0, 1, 1], [], []>} : vector<16x128xbf16>, vector<128x384xbf16>, vector<16x384xf32> -> vector<16x384xf32>
    %488 = arith.extf %485 : vector<16x384xbf16> to vector<16x384xf32>
    %489 = vector.extract_strided_slice %488 {offsets = [0, 0], sizes = [16, 128], strides = [1, 1]} : vector<16x384xf32> to vector<16x128xf32>
    %490 = vector.extract_strided_slice %487 {offsets = [0, 0], sizes = [16, 128], strides = [1, 1]} : vector<16x384xf32> to vector<16x128xf32>
    %491 = arith.addf %489, %490 : vector<16x128xf32>
    %492 = arith.negf %491 : vector<16x128xf32>
    %493 = math.exp %492 : vector<16x128xf32>
    %cst_147 = arith.constant 1.000000e+00 : f32
    %494 = vector.broadcast %cst_147 : f32 to vector<16x128xf32>
    %495 = arith.addf %494, %493 : vector<16x128xf32>
    %496 = arith.divf %494, %495 : vector<16x128xf32>
    %497 = vector.extract_strided_slice %488 {offsets = [0, 128], sizes = [16, 128], strides = [1, 1]} : vector<16x384xf32> to vector<16x128xf32>
    %498 = vector.extract_strided_slice %487 {offsets = [0, 128], sizes = [16, 128], strides = [1, 1]} : vector<16x384xf32> to vector<16x128xf32>
    %499 = arith.addf %497, %498 : vector<16x128xf32>
    %500 = arith.negf %499 : vector<16x128xf32>
    %501 = math.exp %500 : vector<16x128xf32>
    %cst_148 = arith.constant 1.000000e+00 : f32
    %502 = vector.broadcast %cst_148 : f32 to vector<16x128xf32>
    %503 = arith.addf %502, %501 : vector<16x128xf32>
    %504 = arith.divf %502, %503 : vector<16x128xf32>
    %505 = vector.extract_strided_slice %488 {offsets = [0, 256], sizes = [16, 128], strides = [1, 1]} : vector<16x384xf32> to vector<16x128xf32>
    %506 = vector.extract_strided_slice %487 {offsets = [0, 256], sizes = [16, 128], strides = [1, 1]} : vector<16x384xf32> to vector<16x128xf32>
    %507 = vector.broadcast %22 : vector<1x128xf32> to vector<16x128xf32>
    %508 = arith.addf %506, %507 : vector<16x128xf32>
    %509 = arith.mulf %496, %508 : vector<16x128xf32>
    %510 = arith.addf %505, %509 : vector<16x128xf32>
    %511 = math.tanh %510 : vector<16x128xf32>
    %cst_149 = arith.constant 1.000000e+00 : f32
    %512 = vector.broadcast %cst_149 : f32 to vector<16x128xf32>
    %513 = arith.subf %512, %504 : vector<16x128xf32>
    %514 = arith.mulf %513, %511 : vector<16x128xf32>
    %515 = arith.mulf %504, %483 : vector<16x128xf32>
    %516 = arith.addf %514, %515 : vector<16x128xf32>
    %517 = vector.broadcast %480 : i32 to vector<16x1xi32>
    %518 = arith.cmpi slt, %517, %10 : vector<16x1xi32>
    %519 = vector.shape_cast %518 : vector<16x1xi1> to vector<16x1xi1>
    %520 = vector.broadcast %519 : vector<16x1xi1> to vector<16x128xi1>
    %521 = arith.select %520, %516, %483 : vector<16x128xi1>, vector<16x128xf32>
    %c0_150 = arith.constant 0 : index
    %c0_151 = arith.constant 0 : index
    %522 = vector.load %arg12[%c0_150, %c0_151] : memref<16x128xf32, #tpu.memory_space<vmem>>, vector<16x128xf32>
    tpu.vector_store %arg12[%c0_150, %c0_151], %521 {strides = array<i32>} : memref<16x128xf32, #tpu.memory_space<vmem>>, vector<16x128xf32>,
    %523 = vector.shape_cast %518 : vector<16x1xi1> to vector<16x1xi1>
    %524 = vector.broadcast %523 : vector<16x1xi1> to vector<16x128xi1>
    %525 = arith.select %524, %516, %11 : vector<16x128xi1>, vector<16x128xf32>
    %526 = arith.truncf %525 : vector<16x128xf32> to vector<16x128xbf16>
    %c0_152 = arith.constant 0 : index
    %527 = arith.index_cast %482 : i32 to index
    %c128_153 = arith.constant 128 : index
    %528 = vector.load %arg8[%c0_152, %527, %c128_153] : memref<1x128x256xbf16, #tpu.memory_space<vmem>>, vector<1x16x128xbf16>
    %529 = vector.shape_cast %528 : vector<1x16x128xbf16> to vector<16x128xbf16>
    %530 = vector.shape_cast %526 : vector<16x128xbf16> to vector<1x16x128xbf16>
    tpu.vector_store %arg8[%c0_152, %527, %c128_153], %530 {strides = array<i32>} : memref<1x128x256xbf16, #tpu.memory_space<vmem>>, vector<1x16x128xbf16>,
    %c5_i32 = arith.constant 5 : i32
    %c16_i32_154 = arith.constant 16 : i32
    %531 = arith.muli %c5_i32, %c16_i32_154 : i32
    %532 = tpu.assume_multiple %531, 16 : i32
    %c0_155 = arith.constant 0 : index
    %c0_156 = arith.constant 0 : index
    %533 = vector.load %arg11[%c0_155, %c0_156] : memref<16x128xf32, #tpu.memory_space<vmem>>, vector<16x128xf32>
    %534 = arith.index_cast %532 : i32 to index
    %c0_157 = arith.constant 0 : index
    %535 = vector.load %arg10[%534, %c0_157] : memref<128x768xbf16, #tpu.memory_space<vmem>>, vector<16x384xbf16>
    %536 = arith.truncf %533 : vector<16x128xf32> to vector<16x128xbf16>
    %cst_158 = arith.constant dense<0.000000e+00> : vector<16x384xf32>
    %537 = tpu.matmul %536, %13, %cst_158 {dimension_numbers = #tpu.dot_dimension_numbers<[1], [0], [0], [1], [0, 0, 1, 1], [], []>} : vector<16x128xbf16>, vector<128x384xbf16>, vector<16x384xf32> -> vector<16x384xf32>
    %538 = arith.extf %535 : vector<16x384xbf16> to vector<16x384xf32>
    %539 = vector.extract_strided_slice %538 {offsets = [0, 0], sizes = [16, 128], strides = [1, 1]} : vector<16x384xf32> to vector<16x128xf32>
    %540 = vector.extract_strided_slice %537 {offsets = [0, 0], sizes = [16, 128], strides = [1, 1]} : vector<16x384xf32> to vector<16x128xf32>
    %541 = arith.addf %539, %540 : vector<16x128xf32>
    %542 = arith.negf %541 : vector<16x128xf32>
    %543 = math.exp %542 : vector<16x128xf32>
    %cst_159 = arith.constant 1.000000e+00 : f32
    %544 = vector.broadcast %cst_159 : f32 to vector<16x128xf32>
    %545 = arith.addf %544, %543 : vector<16x128xf32>
    %546 = arith.divf %544, %545 : vector<16x128xf32>
    %547 = vector.extract_strided_slice %538 {offsets = [0, 128], sizes = [16, 128], strides = [1, 1]} : vector<16x384xf32> to vector<16x128xf32>
    %548 = vector.extract_strided_slice %537 {offsets = [0, 128], sizes = [16, 128], strides = [1, 1]} : vector<16x384xf32> to vector<16x128xf32>
    %549 = arith.addf %547, %548 : vector<16x128xf32>
    %550 = arith.negf %549 : vector<16x128xf32>
    %551 = math.exp %550 : vector<16x128xf32>
    %cst_160 = arith.constant 1.000000e+00 : f32
    %552 = vector.broadcast %cst_160 : f32 to vector<16x128xf32>
    %553 = arith.addf %552, %551 : vector<16x128xf32>
    %554 = arith.divf %552, %553 : vector<16x128xf32>
    %555 = vector.extract_strided_slice %538 {offsets = [0, 256], sizes = [16, 128], strides = [1, 1]} : vector<16x384xf32> to vector<16x128xf32>
    %556 = vector.extract_strided_slice %537 {offsets = [0, 256], sizes = [16, 128], strides = [1, 1]} : vector<16x384xf32> to vector<16x128xf32>
    %557 = vector.broadcast %15 : vector<1x128xf32> to vector<16x128xf32>
    %558 = arith.addf %556, %557 : vector<16x128xf32>
    %559 = arith.mulf %546, %558 : vector<16x128xf32>
    %560 = arith.addf %555, %559 : vector<16x128xf32>
    %561 = math.tanh %560 : vector<16x128xf32>
    %cst_161 = arith.constant 1.000000e+00 : f32
    %562 = vector.broadcast %cst_161 : f32 to vector<16x128xf32>
    %563 = arith.subf %562, %554 : vector<16x128xf32>
    %564 = arith.mulf %563, %561 : vector<16x128xf32>
    %565 = arith.mulf %554, %533 : vector<16x128xf32>
    %566 = arith.addf %564, %565 : vector<16x128xf32>
    %567 = vector.broadcast %c5_i32 : i32 to vector<16x1xi32>
    %568 = arith.cmpi slt, %567, %10 : vector<16x1xi32>
    %569 = vector.shape_cast %568 : vector<16x1xi1> to vector<16x1xi1>
    %570 = vector.broadcast %569 : vector<16x1xi1> to vector<16x128xi1>
    %571 = arith.select %570, %566, %533 : vector<16x128xi1>, vector<16x128xf32>
    %c0_162 = arith.constant 0 : index
    %c0_163 = arith.constant 0 : index
    %572 = vector.load %arg11[%c0_162, %c0_163] : memref<16x128xf32, #tpu.memory_space<vmem>>, vector<16x128xf32>
    tpu.vector_store %arg11[%c0_162, %c0_163], %571 {strides = array<i32>} : memref<16x128xf32, #tpu.memory_space<vmem>>, vector<16x128xf32>,
    %573 = vector.shape_cast %568 : vector<16x1xi1> to vector<16x1xi1>
    %574 = vector.broadcast %573 : vector<16x1xi1> to vector<16x128xi1>
    %575 = arith.select %574, %566, %11 : vector<16x128xi1>, vector<16x128xf32>
    %576 = arith.truncf %575 : vector<16x128xf32> to vector<16x128xbf16>
    %c0_164 = arith.constant 0 : index
    %577 = arith.index_cast %532 : i32 to index
    %c0_165 = arith.constant 0 : index
    %578 = vector.load %arg8[%c0_164, %577, %c0_165] : memref<1x128x256xbf16, #tpu.memory_space<vmem>>, vector<1x16x128xbf16>
    %579 = vector.shape_cast %578 : vector<1x16x128xbf16> to vector<16x128xbf16>
    %580 = vector.shape_cast %576 : vector<16x128xbf16> to vector<1x16x128xbf16>
    tpu.vector_store %arg8[%c0_164, %577, %c0_165], %580 {strides = array<i32>} : memref<1x128x256xbf16, #tpu.memory_space<vmem>>, vector<1x16x128xbf16>,
    %c7_i32_166 = arith.constant 7 : i32
    %581 = arith.subi %c7_i32_166, %c5_i32 : i32
    %c16_i32_167 = arith.constant 16 : i32
    %582 = arith.muli %581, %c16_i32_167 : i32
    %583 = tpu.assume_multiple %582, 16 : i32
    %c0_168 = arith.constant 0 : index
    %c0_169 = arith.constant 0 : index
    %584 = vector.load %arg12[%c0_168, %c0_169] : memref<16x128xf32, #tpu.memory_space<vmem>>, vector<16x128xf32>
    %585 = arith.index_cast %583 : i32 to index
    %c384_170 = arith.constant 384 : index
    %586 = vector.load %arg10[%585, %c384_170] : memref<128x768xbf16, #tpu.memory_space<vmem>>, vector<16x384xbf16>
    %587 = arith.truncf %584 : vector<16x128xf32> to vector<16x128xbf16>
    %cst_171 = arith.constant dense<0.000000e+00> : vector<16x384xf32>
    %588 = tpu.matmul %587, %20, %cst_171 {dimension_numbers = #tpu.dot_dimension_numbers<[1], [0], [0], [1], [0, 0, 1, 1], [], []>} : vector<16x128xbf16>, vector<128x384xbf16>, vector<16x384xf32> -> vector<16x384xf32>
    %589 = arith.extf %586 : vector<16x384xbf16> to vector<16x384xf32>
    %590 = vector.extract_strided_slice %589 {offsets = [0, 0], sizes = [16, 128], strides = [1, 1]} : vector<16x384xf32> to vector<16x128xf32>
    %591 = vector.extract_strided_slice %588 {offsets = [0, 0], sizes = [16, 128], strides = [1, 1]} : vector<16x384xf32> to vector<16x128xf32>
    %592 = arith.addf %590, %591 : vector<16x128xf32>
    %593 = arith.negf %592 : vector<16x128xf32>
    %594 = math.exp %593 : vector<16x128xf32>
    %cst_172 = arith.constant 1.000000e+00 : f32
    %595 = vector.broadcast %cst_172 : f32 to vector<16x128xf32>
    %596 = arith.addf %595, %594 : vector<16x128xf32>
    %597 = arith.divf %595, %596 : vector<16x128xf32>
    %598 = vector.extract_strided_slice %589 {offsets = [0, 128], sizes = [16, 128], strides = [1, 1]} : vector<16x384xf32> to vector<16x128xf32>
    %599 = vector.extract_strided_slice %588 {offsets = [0, 128], sizes = [16, 128], strides = [1, 1]} : vector<16x384xf32> to vector<16x128xf32>
    %600 = arith.addf %598, %599 : vector<16x128xf32>
    %601 = arith.negf %600 : vector<16x128xf32>
    %602 = math.exp %601 : vector<16x128xf32>
    %cst_173 = arith.constant 1.000000e+00 : f32
    %603 = vector.broadcast %cst_173 : f32 to vector<16x128xf32>
    %604 = arith.addf %603, %602 : vector<16x128xf32>
    %605 = arith.divf %603, %604 : vector<16x128xf32>
    %606 = vector.extract_strided_slice %589 {offsets = [0, 256], sizes = [16, 128], strides = [1, 1]} : vector<16x384xf32> to vector<16x128xf32>
    %607 = vector.extract_strided_slice %588 {offsets = [0, 256], sizes = [16, 128], strides = [1, 1]} : vector<16x384xf32> to vector<16x128xf32>
    %608 = vector.broadcast %22 : vector<1x128xf32> to vector<16x128xf32>
    %609 = arith.addf %607, %608 : vector<16x128xf32>
    %610 = arith.mulf %597, %609 : vector<16x128xf32>
    %611 = arith.addf %606, %610 : vector<16x128xf32>
    %612 = math.tanh %611 : vector<16x128xf32>
    %cst_174 = arith.constant 1.000000e+00 : f32
    %613 = vector.broadcast %cst_174 : f32 to vector<16x128xf32>
    %614 = arith.subf %613, %605 : vector<16x128xf32>
    %615 = arith.mulf %614, %612 : vector<16x128xf32>
    %616 = arith.mulf %605, %584 : vector<16x128xf32>
    %617 = arith.addf %615, %616 : vector<16x128xf32>
    %618 = vector.broadcast %581 : i32 to vector<16x1xi32>
    %619 = arith.cmpi slt, %618, %10 : vector<16x1xi32>
    %620 = vector.shape_cast %619 : vector<16x1xi1> to vector<16x1xi1>
    %621 = vector.broadcast %620 : vector<16x1xi1> to vector<16x128xi1>
    %622 = arith.select %621, %617, %584 : vector<16x128xi1>, vector<16x128xf32>
    %c0_175 = arith.constant 0 : index
    %c0_176 = arith.constant 0 : index
    %623 = vector.load %arg12[%c0_175, %c0_176] : memref<16x128xf32, #tpu.memory_space<vmem>>, vector<16x128xf32>
    tpu.vector_store %arg12[%c0_175, %c0_176], %622 {strides = array<i32>} : memref<16x128xf32, #tpu.memory_space<vmem>>, vector<16x128xf32>,
    %624 = vector.shape_cast %619 : vector<16x1xi1> to vector<16x1xi1>
    %625 = vector.broadcast %624 : vector<16x1xi1> to vector<16x128xi1>
    %626 = arith.select %625, %617, %11 : vector<16x128xi1>, vector<16x128xf32>
    %627 = arith.truncf %626 : vector<16x128xf32> to vector<16x128xbf16>
    %c0_177 = arith.constant 0 : index
    %628 = arith.index_cast %583 : i32 to index
    %c128_178 = arith.constant 128 : index
    %629 = vector.load %arg8[%c0_177, %628, %c128_178] : memref<1x128x256xbf16, #tpu.memory_space<vmem>>, vector<1x16x128xbf16>
    %630 = vector.shape_cast %629 : vector<1x16x128xbf16> to vector<16x128xbf16>
    %631 = vector.shape_cast %627 : vector<16x128xbf16> to vector<1x16x128xbf16>
    tpu.vector_store %arg8[%c0_177, %628, %c128_178], %631 {strides = array<i32>} : memref<1x128x256xbf16, #tpu.memory_space<vmem>>, vector<1x16x128xbf16>,
    %c6_i32 = arith.constant 6 : i32
    %c16_i32_179 = arith.constant 16 : i32
    %632 = arith.muli %c6_i32, %c16_i32_179 : i32
    %633 = tpu.assume_multiple %632, 16 : i32
    %c0_180 = arith.constant 0 : index
    %c0_181 = arith.constant 0 : index
    %634 = vector.load %arg11[%c0_180, %c0_181] : memref<16x128xf32, #tpu.memory_space<vmem>>, vector<16x128xf32>
    %635 = arith.index_cast %633 : i32 to index
    %c0_182 = arith.constant 0 : index
    %636 = vector.load %arg10[%635, %c0_182] : memref<128x768xbf16, #tpu.memory_space<vmem>>, vector<16x384xbf16>
    %637 = arith.truncf %634 : vector<16x128xf32> to vector<16x128xbf16>
    %cst_183 = arith.constant dense<0.000000e+00> : vector<16x384xf32>
    %638 = tpu.matmul %637, %13, %cst_183 {dimension_numbers = #tpu.dot_dimension_numbers<[1], [0], [0], [1], [0, 0, 1, 1], [], []>} : vector<16x128xbf16>, vector<128x384xbf16>, vector<16x384xf32> -> vector<16x384xf32>
    %639 = arith.extf %636 : vector<16x384xbf16> to vector<16x384xf32>
    %640 = vector.extract_strided_slice %639 {offsets = [0, 0], sizes = [16, 128], strides = [1, 1]} : vector<16x384xf32> to vector<16x128xf32>
    %641 = vector.extract_strided_slice %638 {offsets = [0, 0], sizes = [16, 128], strides = [1, 1]} : vector<16x384xf32> to vector<16x128xf32>
    %642 = arith.addf %640, %641 : vector<16x128xf32>
    %643 = arith.negf %642 : vector<16x128xf32>
    %644 = math.exp %643 : vector<16x128xf32>
    %cst_184 = arith.constant 1.000000e+00 : f32
    %645 = vector.broadcast %cst_184 : f32 to vector<16x128xf32>
    %646 = arith.addf %645, %644 : vector<16x128xf32>
    %647 = arith.divf %645, %646 : vector<16x128xf32>
    %648 = vector.extract_strided_slice %639 {offsets = [0, 128], sizes = [16, 128], strides = [1, 1]} : vector<16x384xf32> to vector<16x128xf32>
    %649 = vector.extract_strided_slice %638 {offsets = [0, 128], sizes = [16, 128], strides = [1, 1]} : vector<16x384xf32> to vector<16x128xf32>
    %650 = arith.addf %648, %649 : vector<16x128xf32>
    %651 = arith.negf %650 : vector<16x128xf32>
    %652 = math.exp %651 : vector<16x128xf32>
    %cst_185 = arith.constant 1.000000e+00 : f32
    %653 = vector.broadcast %cst_185 : f32 to vector<16x128xf32>
    %654 = arith.addf %653, %652 : vector<16x128xf32>
    %655 = arith.divf %653, %654 : vector<16x128xf32>
    %656 = vector.extract_strided_slice %639 {offsets = [0, 256], sizes = [16, 128], strides = [1, 1]} : vector<16x384xf32> to vector<16x128xf32>
    %657 = vector.extract_strided_slice %638 {offsets = [0, 256], sizes = [16, 128], strides = [1, 1]} : vector<16x384xf32> to vector<16x128xf32>
    %658 = vector.broadcast %15 : vector<1x128xf32> to vector<16x128xf32>
    %659 = arith.addf %657, %658 : vector<16x128xf32>
    %660 = arith.mulf %647, %659 : vector<16x128xf32>
    %661 = arith.addf %656, %660 : vector<16x128xf32>
    %662 = math.tanh %661 : vector<16x128xf32>
    %cst_186 = arith.constant 1.000000e+00 : f32
    %663 = vector.broadcast %cst_186 : f32 to vector<16x128xf32>
    %664 = arith.subf %663, %655 : vector<16x128xf32>
    %665 = arith.mulf %664, %662 : vector<16x128xf32>
    %666 = arith.mulf %655, %634 : vector<16x128xf32>
    %667 = arith.addf %665, %666 : vector<16x128xf32>
    %668 = vector.broadcast %c6_i32 : i32 to vector<16x1xi32>
    %669 = arith.cmpi slt, %668, %10 : vector<16x1xi32>
    %670 = vector.shape_cast %669 : vector<16x1xi1> to vector<16x1xi1>
    %671 = vector.broadcast %670 : vector<16x1xi1> to vector<16x128xi1>
    %672 = arith.select %671, %667, %634 : vector<16x128xi1>, vector<16x128xf32>
    %c0_187 = arith.constant 0 : index
    %c0_188 = arith.constant 0 : index
    %673 = vector.load %arg11[%c0_187, %c0_188] : memref<16x128xf32, #tpu.memory_space<vmem>>, vector<16x128xf32>
    tpu.vector_store %arg11[%c0_187, %c0_188], %672 {strides = array<i32>} : memref<16x128xf32, #tpu.memory_space<vmem>>, vector<16x128xf32>,
    %674 = vector.shape_cast %669 : vector<16x1xi1> to vector<16x1xi1>
    %675 = vector.broadcast %674 : vector<16x1xi1> to vector<16x128xi1>
    %676 = arith.select %675, %667, %11 : vector<16x128xi1>, vector<16x128xf32>
    %677 = arith.truncf %676 : vector<16x128xf32> to vector<16x128xbf16>
    %c0_189 = arith.constant 0 : index
    %678 = arith.index_cast %633 : i32 to index
    %c0_190 = arith.constant 0 : index
    %679 = vector.load %arg8[%c0_189, %678, %c0_190] : memref<1x128x256xbf16, #tpu.memory_space<vmem>>, vector<1x16x128xbf16>
    %680 = vector.shape_cast %679 : vector<1x16x128xbf16> to vector<16x128xbf16>
    %681 = vector.shape_cast %677 : vector<16x128xbf16> to vector<1x16x128xbf16>
    tpu.vector_store %arg8[%c0_189, %678, %c0_190], %681 {strides = array<i32>} : memref<1x128x256xbf16, #tpu.memory_space<vmem>>, vector<1x16x128xbf16>,
    %c7_i32_191 = arith.constant 7 : i32
    %682 = arith.subi %c7_i32_191, %c6_i32 : i32
    %c16_i32_192 = arith.constant 16 : i32
    %683 = arith.muli %682, %c16_i32_192 : i32
    %684 = tpu.assume_multiple %683, 16 : i32
    %c0_193 = arith.constant 0 : index
    %c0_194 = arith.constant 0 : index
    %685 = vector.load %arg12[%c0_193, %c0_194] : memref<16x128xf32, #tpu.memory_space<vmem>>, vector<16x128xf32>
    %686 = arith.index_cast %684 : i32 to index
    %c384_195 = arith.constant 384 : index
    %687 = vector.load %arg10[%686, %c384_195] : memref<128x768xbf16, #tpu.memory_space<vmem>>, vector<16x384xbf16>
    %688 = arith.truncf %685 : vector<16x128xf32> to vector<16x128xbf16>
    %cst_196 = arith.constant dense<0.000000e+00> : vector<16x384xf32>
    %689 = tpu.matmul %688, %20, %cst_196 {dimension_numbers = #tpu.dot_dimension_numbers<[1], [0], [0], [1], [0, 0, 1, 1], [], []>} : vector<16x128xbf16>, vector<128x384xbf16>, vector<16x384xf32> -> vector<16x384xf32>
    %690 = arith.extf %687 : vector<16x384xbf16> to vector<16x384xf32>
    %691 = vector.extract_strided_slice %690 {offsets = [0, 0], sizes = [16, 128], strides = [1, 1]} : vector<16x384xf32> to vector<16x128xf32>
    %692 = vector.extract_strided_slice %689 {offsets = [0, 0], sizes = [16, 128], strides = [1, 1]} : vector<16x384xf32> to vector<16x128xf32>
    %693 = arith.addf %691, %692 : vector<16x128xf32>
    %694 = arith.negf %693 : vector<16x128xf32>
    %695 = math.exp %694 : vector<16x128xf32>
    %cst_197 = arith.constant 1.000000e+00 : f32
    %696 = vector.broadcast %cst_197 : f32 to vector<16x128xf32>
    %697 = arith.addf %696, %695 : vector<16x128xf32>
    %698 = arith.divf %696, %697 : vector<16x128xf32>
    %699 = vector.extract_strided_slice %690 {offsets = [0, 128], sizes = [16, 128], strides = [1, 1]} : vector<16x384xf32> to vector<16x128xf32>
    %700 = vector.extract_strided_slice %689 {offsets = [0, 128], sizes = [16, 128], strides = [1, 1]} : vector<16x384xf32> to vector<16x128xf32>
    %701 = arith.addf %699, %700 : vector<16x128xf32>
    %702 = arith.negf %701 : vector<16x128xf32>
    %703 = math.exp %702 : vector<16x128xf32>
    %cst_198 = arith.constant 1.000000e+00 : f32
    %704 = vector.broadcast %cst_198 : f32 to vector<16x128xf32>
    %705 = arith.addf %704, %703 : vector<16x128xf32>
    %706 = arith.divf %704, %705 : vector<16x128xf32>
    %707 = vector.extract_strided_slice %690 {offsets = [0, 256], sizes = [16, 128], strides = [1, 1]} : vector<16x384xf32> to vector<16x128xf32>
    %708 = vector.extract_strided_slice %689 {offsets = [0, 256], sizes = [16, 128], strides = [1, 1]} : vector<16x384xf32> to vector<16x128xf32>
    %709 = vector.broadcast %22 : vector<1x128xf32> to vector<16x128xf32>
    %710 = arith.addf %708, %709 : vector<16x128xf32>
    %711 = arith.mulf %698, %710 : vector<16x128xf32>
    %712 = arith.addf %707, %711 : vector<16x128xf32>
    %713 = math.tanh %712 : vector<16x128xf32>
    %cst_199 = arith.constant 1.000000e+00 : f32
    %714 = vector.broadcast %cst_199 : f32 to vector<16x128xf32>
    %715 = arith.subf %714, %706 : vector<16x128xf32>
    %716 = arith.mulf %715, %713 : vector<16x128xf32>
    %717 = arith.mulf %706, %685 : vector<16x128xf32>
    %718 = arith.addf %716, %717 : vector<16x128xf32>
    %719 = vector.broadcast %682 : i32 to vector<16x1xi32>
    %720 = arith.cmpi slt, %719, %10 : vector<16x1xi32>
    %721 = vector.shape_cast %720 : vector<16x1xi1> to vector<16x1xi1>
    %722 = vector.broadcast %721 : vector<16x1xi1> to vector<16x128xi1>
    %723 = arith.select %722, %718, %685 : vector<16x128xi1>, vector<16x128xf32>
    %c0_200 = arith.constant 0 : index
    %c0_201 = arith.constant 0 : index
    %724 = vector.load %arg12[%c0_200, %c0_201] : memref<16x128xf32, #tpu.memory_space<vmem>>, vector<16x128xf32>
    tpu.vector_store %arg12[%c0_200, %c0_201], %723 {strides = array<i32>} : memref<16x128xf32, #tpu.memory_space<vmem>>, vector<16x128xf32>,
    %725 = vector.shape_cast %720 : vector<16x1xi1> to vector<16x1xi1>
    %726 = vector.broadcast %725 : vector<16x1xi1> to vector<16x128xi1>
    %727 = arith.select %726, %718, %11 : vector<16x128xi1>, vector<16x128xf32>
    %728 = arith.truncf %727 : vector<16x128xf32> to vector<16x128xbf16>
    %c0_202 = arith.constant 0 : index
    %729 = arith.index_cast %684 : i32 to index
    %c128_203 = arith.constant 128 : index
    %730 = vector.load %arg8[%c0_202, %729, %c128_203] : memref<1x128x256xbf16, #tpu.memory_space<vmem>>, vector<1x16x128xbf16>
    %731 = vector.shape_cast %730 : vector<1x16x128xbf16> to vector<16x128xbf16>
    %732 = vector.shape_cast %728 : vector<16x128xbf16> to vector<1x16x128xbf16>
    tpu.vector_store %arg8[%c0_202, %729, %c128_203], %732 {strides = array<i32>} : memref<1x128x256xbf16, #tpu.memory_space<vmem>>, vector<1x16x128xbf16>,
    %c7_i32_204 = arith.constant 7 : i32
    %c16_i32_205 = arith.constant 16 : i32
    %733 = arith.muli %c7_i32_204, %c16_i32_205 : i32
    %734 = tpu.assume_multiple %733, 16 : i32
    %c0_206 = arith.constant 0 : index
    %c0_207 = arith.constant 0 : index
    %735 = vector.load %arg11[%c0_206, %c0_207] : memref<16x128xf32, #tpu.memory_space<vmem>>, vector<16x128xf32>
    %736 = arith.index_cast %734 : i32 to index
    %c0_208 = arith.constant 0 : index
    %737 = vector.load %arg10[%736, %c0_208] : memref<128x768xbf16, #tpu.memory_space<vmem>>, vector<16x384xbf16>
    %738 = arith.truncf %735 : vector<16x128xf32> to vector<16x128xbf16>
    %cst_209 = arith.constant dense<0.000000e+00> : vector<16x384xf32>
    %739 = tpu.matmul %738, %13, %cst_209 {dimension_numbers = #tpu.dot_dimension_numbers<[1], [0], [0], [1], [0, 0, 1, 1], [], []>} : vector<16x128xbf16>, vector<128x384xbf16>, vector<16x384xf32> -> vector<16x384xf32>
    %740 = arith.extf %737 : vector<16x384xbf16> to vector<16x384xf32>
    %741 = vector.extract_strided_slice %740 {offsets = [0, 0], sizes = [16, 128], strides = [1, 1]} : vector<16x384xf32> to vector<16x128xf32>
    %742 = vector.extract_strided_slice %739 {offsets = [0, 0], sizes = [16, 128], strides = [1, 1]} : vector<16x384xf32> to vector<16x128xf32>
    %743 = arith.addf %741, %742 : vector<16x128xf32>
    %744 = arith.negf %743 : vector<16x128xf32>
    %745 = math.exp %744 : vector<16x128xf32>
    %cst_210 = arith.constant 1.000000e+00 : f32
    %746 = vector.broadcast %cst_210 : f32 to vector<16x128xf32>
    %747 = arith.addf %746, %745 : vector<16x128xf32>
    %748 = arith.divf %746, %747 : vector<16x128xf32>
    %749 = vector.extract_strided_slice %740 {offsets = [0, 128], sizes = [16, 128], strides = [1, 1]} : vector<16x384xf32> to vector<16x128xf32>
    %750 = vector.extract_strided_slice %739 {offsets = [0, 128], sizes = [16, 128], strides = [1, 1]} : vector<16x384xf32> to vector<16x128xf32>
    %751 = arith.addf %749, %750 : vector<16x128xf32>
    %752 = arith.negf %751 : vector<16x128xf32>
    %753 = math.exp %752 : vector<16x128xf32>
    %cst_211 = arith.constant 1.000000e+00 : f32
    %754 = vector.broadcast %cst_211 : f32 to vector<16x128xf32>
    %755 = arith.addf %754, %753 : vector<16x128xf32>
    %756 = arith.divf %754, %755 : vector<16x128xf32>
    %757 = vector.extract_strided_slice %740 {offsets = [0, 256], sizes = [16, 128], strides = [1, 1]} : vector<16x384xf32> to vector<16x128xf32>
    %758 = vector.extract_strided_slice %739 {offsets = [0, 256], sizes = [16, 128], strides = [1, 1]} : vector<16x384xf32> to vector<16x128xf32>
    %759 = vector.broadcast %15 : vector<1x128xf32> to vector<16x128xf32>
    %760 = arith.addf %758, %759 : vector<16x128xf32>
    %761 = arith.mulf %748, %760 : vector<16x128xf32>
    %762 = arith.addf %757, %761 : vector<16x128xf32>
    %763 = math.tanh %762 : vector<16x128xf32>
    %cst_212 = arith.constant 1.000000e+00 : f32
    %764 = vector.broadcast %cst_212 : f32 to vector<16x128xf32>
    %765 = arith.subf %764, %756 : vector<16x128xf32>
    %766 = arith.mulf %765, %763 : vector<16x128xf32>
    %767 = arith.mulf %756, %735 : vector<16x128xf32>
    %768 = arith.addf %766, %767 : vector<16x128xf32>
    %769 = vector.broadcast %c7_i32_204 : i32 to vector<16x1xi32>
    %770 = arith.cmpi slt, %769, %10 : vector<16x1xi32>
    %771 = vector.shape_cast %770 : vector<16x1xi1> to vector<16x1xi1>
    %772 = vector.broadcast %771 : vector<16x1xi1> to vector<16x128xi1>
    %773 = arith.select %772, %768, %735 : vector<16x128xi1>, vector<16x128xf32>
    %c0_213 = arith.constant 0 : index
    %c0_214 = arith.constant 0 : index
    %774 = vector.load %arg11[%c0_213, %c0_214] : memref<16x128xf32, #tpu.memory_space<vmem>>, vector<16x128xf32>
    tpu.vector_store %arg11[%c0_213, %c0_214], %773 {strides = array<i32>} : memref<16x128xf32, #tpu.memory_space<vmem>>, vector<16x128xf32>,
    %775 = vector.shape_cast %770 : vector<16x1xi1> to vector<16x1xi1>
    %776 = vector.broadcast %775 : vector<16x1xi1> to vector<16x128xi1>
    %777 = arith.select %776, %768, %11 : vector<16x128xi1>, vector<16x128xf32>
    %778 = arith.truncf %777 : vector<16x128xf32> to vector<16x128xbf16>
    %c0_215 = arith.constant 0 : index
    %779 = arith.index_cast %734 : i32 to index
    %c0_216 = arith.constant 0 : index
    %780 = vector.load %arg8[%c0_215, %779, %c0_216] : memref<1x128x256xbf16, #tpu.memory_space<vmem>>, vector<1x16x128xbf16>
    %781 = vector.shape_cast %780 : vector<1x16x128xbf16> to vector<16x128xbf16>
    %782 = vector.shape_cast %778 : vector<16x128xbf16> to vector<1x16x128xbf16>
    tpu.vector_store %arg8[%c0_215, %779, %c0_216], %782 {strides = array<i32>} : memref<1x128x256xbf16, #tpu.memory_space<vmem>>, vector<1x16x128xbf16>,
    %c7_i32_217 = arith.constant 7 : i32
    %783 = arith.subi %c7_i32_217, %c7_i32_204 : i32
    %c16_i32_218 = arith.constant 16 : i32
    %784 = arith.muli %783, %c16_i32_218 : i32
    %785 = tpu.assume_multiple %784, 16 : i32
    %c0_219 = arith.constant 0 : index
    %c0_220 = arith.constant 0 : index
    %786 = vector.load %arg12[%c0_219, %c0_220] : memref<16x128xf32, #tpu.memory_space<vmem>>, vector<16x128xf32>
    %787 = arith.index_cast %785 : i32 to index
    %c384_221 = arith.constant 384 : index
    %788 = vector.load %arg10[%787, %c384_221] : memref<128x768xbf16, #tpu.memory_space<vmem>>, vector<16x384xbf16>
    %789 = arith.truncf %786 : vector<16x128xf32> to vector<16x128xbf16>
    %cst_222 = arith.constant dense<0.000000e+00> : vector<16x384xf32>
    %790 = tpu.matmul %789, %20, %cst_222 {dimension_numbers = #tpu.dot_dimension_numbers<[1], [0], [0], [1], [0, 0, 1, 1], [], []>} : vector<16x128xbf16>, vector<128x384xbf16>, vector<16x384xf32> -> vector<16x384xf32>
    %791 = arith.extf %788 : vector<16x384xbf16> to vector<16x384xf32>
    %792 = vector.extract_strided_slice %791 {offsets = [0, 0], sizes = [16, 128], strides = [1, 1]} : vector<16x384xf32> to vector<16x128xf32>
    %793 = vector.extract_strided_slice %790 {offsets = [0, 0], sizes = [16, 128], strides = [1, 1]} : vector<16x384xf32> to vector<16x128xf32>
    %794 = arith.addf %792, %793 : vector<16x128xf32>
    %795 = arith.negf %794 : vector<16x128xf32>
    %796 = math.exp %795 : vector<16x128xf32>
    %cst_223 = arith.constant 1.000000e+00 : f32
    %797 = vector.broadcast %cst_223 : f32 to vector<16x128xf32>
    %798 = arith.addf %797, %796 : vector<16x128xf32>
    %799 = arith.divf %797, %798 : vector<16x128xf32>
    %800 = vector.extract_strided_slice %791 {offsets = [0, 128], sizes = [16, 128], strides = [1, 1]} : vector<16x384xf32> to vector<16x128xf32>
    %801 = vector.extract_strided_slice %790 {offsets = [0, 128], sizes = [16, 128], strides = [1, 1]} : vector<16x384xf32> to vector<16x128xf32>
    %802 = arith.addf %800, %801 : vector<16x128xf32>
    %803 = arith.negf %802 : vector<16x128xf32>
    %804 = math.exp %803 : vector<16x128xf32>
    %cst_224 = arith.constant 1.000000e+00 : f32
    %805 = vector.broadcast %cst_224 : f32 to vector<16x128xf32>
    %806 = arith.addf %805, %804 : vector<16x128xf32>
    %807 = arith.divf %805, %806 : vector<16x128xf32>
    %808 = vector.extract_strided_slice %791 {offsets = [0, 256], sizes = [16, 128], strides = [1, 1]} : vector<16x384xf32> to vector<16x128xf32>
    %809 = vector.extract_strided_slice %790 {offsets = [0, 256], sizes = [16, 128], strides = [1, 1]} : vector<16x384xf32> to vector<16x128xf32>
    %810 = vector.broadcast %22 : vector<1x128xf32> to vector<16x128xf32>
    %811 = arith.addf %809, %810 : vector<16x128xf32>
    %812 = arith.mulf %799, %811 : vector<16x128xf32>
    %813 = arith.addf %808, %812 : vector<16x128xf32>
    %814 = math.tanh %813 : vector<16x128xf32>
    %cst_225 = arith.constant 1.000000e+00 : f32
    %815 = vector.broadcast %cst_225 : f32 to vector<16x128xf32>
    %816 = arith.subf %815, %807 : vector<16x128xf32>
    %817 = arith.mulf %816, %814 : vector<16x128xf32>
    %818 = arith.mulf %807, %786 : vector<16x128xf32>
    %819 = arith.addf %817, %818 : vector<16x128xf32>
    %820 = vector.broadcast %783 : i32 to vector<16x1xi32>
    %821 = arith.cmpi slt, %820, %10 : vector<16x1xi32>
    %822 = vector.shape_cast %821 : vector<16x1xi1> to vector<16x1xi1>
    %823 = vector.broadcast %822 : vector<16x1xi1> to vector<16x128xi1>
    %824 = arith.select %823, %819, %786 : vector<16x128xi1>, vector<16x128xf32>
    %c0_226 = arith.constant 0 : index
    %c0_227 = arith.constant 0 : index
    %825 = vector.load %arg12[%c0_226, %c0_227] : memref<16x128xf32, #tpu.memory_space<vmem>>, vector<16x128xf32>
    tpu.vector_store %arg12[%c0_226, %c0_227], %824 {strides = array<i32>} : memref<16x128xf32, #tpu.memory_space<vmem>>, vector<16x128xf32>,
    %826 = vector.shape_cast %821 : vector<16x1xi1> to vector<16x1xi1>
    %827 = vector.broadcast %826 : vector<16x1xi1> to vector<16x128xi1>
    %828 = arith.select %827, %819, %11 : vector<16x128xi1>, vector<16x128xf32>
    %829 = arith.truncf %828 : vector<16x128xf32> to vector<16x128xbf16>
    %c0_228 = arith.constant 0 : index
    %830 = arith.index_cast %785 : i32 to index
    %c128_229 = arith.constant 128 : index
    %831 = vector.load %arg8[%c0_228, %830, %c128_229] : memref<1x128x256xbf16, #tpu.memory_space<vmem>>, vector<1x16x128xbf16>
    %832 = vector.shape_cast %831 : vector<1x16x128xbf16> to vector<16x128xbf16>
    %833 = vector.shape_cast %829 : vector<16x128xbf16> to vector<1x16x128xbf16>
    tpu.vector_store %arg8[%c0_228, %830, %c128_229], %833 {strides = array<i32>} : memref<1x128x256xbf16, #tpu.memory_space<vmem>>, vector<1x16x128xbf16>,
    %c8_i32 = arith.constant 8 : i32
    %c0_230 = arith.constant 0 : index
    %c0_231 = arith.constant 0 : index
    %834 = vector.load %arg11[%c0_230, %c0_231] : memref<16x128xf32, #tpu.memory_space<vmem>>, vector<16x128xf32>
    %c0_232 = arith.constant 0 : index
    %c0_233 = arith.constant 0 : index
    %c0_234 = arith.constant 0 : index
    %835 = vector.load %arg9[%c0_232, %c0_233, %c0_234] : memref<2x16x128xf32, #tpu.memory_space<vmem>>, vector<1x16x128xf32>
    %836 = vector.shape_cast %835 : vector<1x16x128xf32> to vector<16x128xf32>
    %837 = vector.shape_cast %834 : vector<16x128xf32> to vector<1x16x128xf32>
    tpu.vector_store %arg9[%c0_232, %c0_233, %c0_234], %837 {strides = array<i32>} : memref<2x16x128xf32, #tpu.memory_space<vmem>>, vector<1x16x128xf32>,
    %c0_235 = arith.constant 0 : index
    %c0_236 = arith.constant 0 : index
    %838 = vector.load %arg12[%c0_235, %c0_236] : memref<16x128xf32, #tpu.memory_space<vmem>>, vector<16x128xf32>
    %c1_237 = arith.constant 1 : index
    %c0_238 = arith.constant 0 : index
    %c0_239 = arith.constant 0 : index
    %839 = vector.load %arg9[%c1_237, %c0_238, %c0_239] : memref<2x16x128xf32, #tpu.memory_space<vmem>>, vector<1x16x128xf32>
    %840 = vector.shape_cast %839 : vector<1x16x128xf32> to vector<16x128xf32>
    %841 = vector.shape_cast %838 : vector<16x128xf32> to vector<1x16x128xf32>
    tpu.vector_store %arg9[%c1_237, %c0_238, %c0_239], %841 {strides = array<i32>} : memref<2x16x128xf32, #tpu.memory_space<vmem>>, vector<1x16x128xf32>,
    return
  }
  func.func @transform_0(%arg0: i32) -> (i32, i32, i32) {
    %c0_i32 = arith.constant 0 : i32
    %c0_i32_0 = arith.constant 0 : i32
    %c0_i32_1 = arith.constant 0 : i32
    return %arg0, %c0_i32, %c0_i32_0 : i32, i32, i32
  }
  func.func @transform_1(%arg0: i32) -> (i32, i32, i32) {
    %c0_i32 = arith.constant 0 : i32
    %c0_i32_0 = arith.constant 0 : i32
    %c0_i32_1 = arith.constant 0 : i32
    return %arg0, %c0_i32, %c0_i32_0 : i32, i32, i32
  }
  func.func @transform_2(%arg0: i32) -> (i32, i32, i32) {
    %c0_i32 = arith.constant 0 : i32
    %c0_i32_0 = arith.constant 0 : i32
    %c0_i32_1 = arith.constant 0 : i32
    return %c0_i32, %arg0, %c0_i32_0 : i32, i32, i32
  }
  func.func @transform_3(%arg0: i32) -> (i32, i32) {
    %c0_i32 = arith.constant 0 : i32
    %c0_i32_0 = arith.constant 0 : i32
    %c0_i32_1 = arith.constant 0 : i32
    return %c0_i32, %c0_i32_0 : i32, i32
  }
  func.func @transform_4(%arg0: i32) -> (i32, i32, i32) {
    %c0_i32 = arith.constant 0 : i32
    %c0_i32_0 = arith.constant 0 : i32
    %c0_i32_1 = arith.constant 0 : i32
    %c0_i32_2 = arith.constant 0 : i32
    return %c0_i32, %c0_i32_0, %c0_i32_1 : i32, i32, i32
  }
  func.func @transform_5(%arg0: i32) -> (i32, i32) {
    %c0_i32 = arith.constant 0 : i32
    %c0_i32_0 = arith.constant 0 : i32
    %c0_i32_1 = arith.constant 0 : i32
    return %c0_i32, %c0_i32_0 : i32, i32
  }
  func.func @transform_6(%arg0: i32) -> (i32, i32, i32) {
    %c0_i32 = arith.constant 0 : i32
    %c0_i32_0 = arith.constant 0 : i32
    %c0_i32_1 = arith.constant 0 : i32
    %c0_i32_2 = arith.constant 0 : i32
    return %c0_i32, %c0_i32_0, %c0_i32_1 : i32, i32, i32
  }
  func.func @transform_7(%arg0: i32) -> (i32, i32, i32) {
    %c0_i32 = arith.constant 0 : i32
    %c0_i32_0 = arith.constant 0 : i32
    %c0_i32_1 = arith.constant 0 : i32
    return %arg0, %c0_i32, %c0_i32_0 : i32, i32, i32
  }
  func.func @transform_8(%arg0: i32) -> (i32, i32, i32) {
    %c0_i32 = arith.constant 0 : i32
    %c0_i32_0 = arith.constant 0 : i32
    %c0_i32_1 = arith.constant 0 : i32
    return %c0_i32, %arg0, %c0_i32_0 : i32, i32, i32
  }
}

</mosaic_0001>

<bundles_post_ra>
// kernel: tpu_custom_call.1
= control target key start
LH: loop header
LB: loop body
LE: loop exit
PB: predicated region body
PF: predicated region fallthrough
CT: control target
= control target key end

     0   :  { %14 = vsyncpa [#allocation6], 0  ;;  %s7200_s0 = inlined_call_operand.hbm [shape: bf16[1,128,128], index: 0, kind: input, shape index: {}]   ;;  %s7201_s1 = inlined_call_operand.vmem [shape: s32[1,16,1], index: 1, kind: input, shape index: {}]   ;;  %s7202_s2 = inlined_call_operand.hbm [shape: f32[2,16,128], index: 2, kind: input, shape index: {}]   ;;  %s7203_s3 = inlined_call_operand.hbm [shape: bf16[128,768], index: 3, kind: input, shape index: {}]   ;;  %s7204_s4 = inlined_call_operand.hbm [shape: bf16[2,128,384], index: 4, kind: input, shape index: {}]   ;;  %s7205_s5 = inlined_call_operand.vmem [shape: f32[1,768], index: 5, kind: input, shape index: {}]   ;;  %s7206_s6 = inlined_call_operand.vmem [shape: f32[2,1,128], index: 6, kind: input, shape index: {}]   ;;  %s7207_s7 = inlined_call_operand.hbm [shape: bf16[1,128,256], index: 7, kind: output, shape index: {0}]   ;;  %s7208_s8 = inlined_call_operand.hbm [shape: f32[2,16,128], index: 8, kind: output, shape index: {1}]  }
   0x1   :  { %15 = vsyncpa [#allocation9], 0 }
   0x2   :  { %16 = vsyncpa [#allocation12], 0 }
   0x3   :  { %17 = vsyncpa [#allocation7], 0 }
   0x4   :  { %18 = vsyncpa [#allocation15], 0  ;;  %s5380_s27 = smov [#allocation8]   ;;  %s5238_s9 = scalar_lea.hbm %s7202_s2, 512 }
   0x5   :  { %s38_s28 = sshll.u32 %s5380_s27, 4  ;;  %p5239_p0 = scmp.ne.s32.totalorder %s7202_s2, %s5238_s9  ;;  %s39_s28 = int_to_ptr.vmem [resolvable:$true] %s38_s28 }
   0x6   :  { %p5242_p1 = scmp.lt.u32.totalorder %s5238_s9, %s7202_s2 }
   0x8   :  { %p5244_p2 = pnand %p5242_p1, %p5239_p0 }
   0xa   :  { %5247 = shalt.err (!%p5244_p2)
}
   0xb   :  { %s5248_s14 = scalar_lea.vmem %s39_s28, 512  ;;  %p5253_p4 = scmp.lt.s32.totalorder %s39_s28, %s39_s28 }
   0xc   :  { %p5249_p3 = scmp.ne.s32.totalorder %s39_s28, %s5248_s14  ;;  %p5254_p5 = scmp.lt.s32.totalorder %s5248_s14, %s5248_s14 }
   0xe   :  { %p5255_p6 = por %p5254_p5, %p5253_p4 }
  0x10   :  { %p5256_p7 = pnand %p5255_p6, %p5249_p3 }
  0x12   :  { %5259 = shalt.err (!%p5256_p7)
}
  0x13   :  { %s5381_s15 = smov 128   ;;  %s5382_s16 = smov 8  }
  0x14   :  { %44 = dma.hbm_to_vmem [thread:$0]  %s7202_s2, 512, %s39_s28, [#allocation9], %s5381_s15, %s5381_s15, %s5382_s16  }
  0x15   :  { %s5383_s19 = smov [#allocation5]   ;;  %s5260_s23 = scalar_lea.hbm %s7200_s0, 1024 }
  0x16   :  { %s24_s20 = sshll.u32 %s5383_s19, 4  ;;  %p5261_p8 = scmp.ne.s32.totalorder %s7200_s0, %s5260_s23  ;;  %s25_s20 = int_to_ptr.vmem [resolvable:$true] %s24_s20 }
  0x17   :  { %p5264_p9 = scmp.lt.u32.totalorder %s5260_s23, %s7200_s0 }
  0x19   :  { %p5266_p10 = pnand %p5264_p9, %p5261_p8 }
  0x1b   :  { %5269 = shalt.err (!%p5266_p10)
}
  0x1c   :  { %s5270_s29 = scalar_lea.vmem %s25_s20, 1024  ;;  %p5275_p12 = scmp.lt.s32.totalorder %s25_s20, %s25_s20 }
  0x1d   :  { %p5271_p11 = scmp.ne.s32.totalorder %s25_s20, %s5270_s29  ;;  %p5276_p13 = scmp.lt.s32.totalorder %s5270_s29, %s5270_s29 }
  0x1f   :  { %p5277_p0 = por %p5276_p13, %p5275_p12 }
  0x21   :  { %p5278_p1 = pnand %p5277_p0, %p5271_p11 }
  0x23   :  { %5281 = shalt.err (!%p5278_p1)
}
  0x24   :  { %s5384_s2 = smov 64   ;;  %s5385_s28 = smov 4  }
  0x25   :  { %30 = dma.hbm_to_vmem [thread:$0]  %s7200_s0, 1024, %s25_s20, [#allocation6], %s5384_s2, %s5384_s2, %s5385_s28  }
  0x26   :  { %s5386_s10 = smov [#allocation10]   ;;  %s5282_s14 = scalar_lea.hbm %s7203_s3, 6144 }
  0x27   :  { %s50_s11 = sshll.u32 %s5386_s10, 4  ;;  %p5283_p2 = scmp.ne.s32.totalorder %s7203_s3, %s5282_s14  ;;  %s51_s11 = int_to_ptr.vmem [resolvable:$true] %s50_s11 }
  0x28   :  { %p5286_p3 = scmp.lt.u32.totalorder %s5282_s14, %s7203_s3 }
  0x2a   :  { %p5288_p4 = pnand %p5286_p3, %p5283_p2 }
  0x2c   :  { %5291 = shalt.err (!%p5288_p4)
}
  0x2d   :  { %s5292_s22 = scalar_lea.vmem %s51_s11, 6144  ;;  %p5297_p6 = scmp.lt.s32.totalorder %s51_s11, %s51_s11 }
  0x2e   :  { %p5293_p5 = scmp.ne.s32.totalorder %s51_s11, %s5292_s22  ;;  %p5298_p7 = scmp.lt.s32.totalorder %s5292_s22, %s5292_s22 }
  0x30   :  { %p5299_p8 = por %p5298_p7, %p5297_p6 }
  0x32   :  { %p5300_p9 = pnand %p5299_p8, %p5293_p5 }
  0x34   :  { %5303 = shalt.err (!%p5300_p9)
}
  0x35   :  { %s5387_s0 = smov 384   ;;  %s5388_s20 = smov 24  }
  0x36   :  { %56 = dma.hbm_to_vmem [thread:$0]  %s7203_s3, 6144, %s51_s11, [#allocation9], %s5387_s0, %s5387_s0, %s5388_s20  }
  0x37   :  { %s5389_s25 = smov [#allocation11]   ;;  %s5304_s2 = scalar_lea.hbm %s7204_s4, 6144 }
  0x38   :  { %s62_s26 = sshll.u32 %s5389_s25, 4  ;;  %p5305_p10 = scmp.ne.s32.totalorder %s7204_s4, %s5304_s2  ;;  %s63_s26 = int_to_ptr.vmem [resolvable:$true] %s62_s26 }
  0x39   :  { %p5308_p11 = scmp.lt.u32.totalorder %s5304_s2, %s7204_s4 }
  0x3b   :  { %p5310_p12 = pnand %p5308_p11, %p5305_p10 }
  0x3d   :  { %5313 = shalt.err (!%p5310_p12)
}
  0x3e   :  { %s5314_s12 = scalar_lea.vmem %s63_s26, 6144  ;;  %p5319_p0 = scmp.lt.s32.totalorder %s63_s26, %s63_s26 }
  0x3f   :  { %p5315_p13 = scmp.ne.s32.totalorder %s63_s26, %s5314_s12  ;;  %p5320_p1 = scmp.lt.s32.totalorder %s5314_s12, %s5314_s12 }
  0x41   :  { %p5321_p2 = por %p5320_p1, %p5319_p0 }
  0x43   :  { %p5322_p3 = pnand %p5321_p2, %p5315_p13 }
  0x45   :  { %5325 = shalt.err (!%p5322_p3)
}
  0x46   :  { %s5390_s3 = smov 192   ;;  %s5391_s11 = smov 12  }
  0x47   :  { %68 = dma.hbm_to_vmem [thread:$0]  %s7204_s4, 6144, %s63_s26, [#allocation12], %s5390_s3, %s5390_s3, %s5391_s11  }
  0x48   :  { %5370 = dma.done.wait [#allocation6], 1024  }
  0x49   :  { %5371 = vsyncadd [#allocation6], 4294966272 }
  0x4a   :  { %5372 = dma.done.wait [#allocation9], 6656  }
  0x4b   :  { %5373 = vsyncadd [#allocation9], 4294960640 }
  0x4c   :  { %5374 = dma.done.wait [#allocation12], 6144  }
  0x4d   :  { %5375 = vsyncadd [#allocation12], 4294961152  ;;  %v7209_v0 = vmov 0   ;;  %v4668_v1 = vld [vmem:[#allocation10 + $0x4] ss:$24 sps:$4 sm:$0xff]   ;;  %v5513_v43 = vld [vmem:[#allocation5 + $0x8] sm:$0xff]  }
  0x4e   :  { %502 = vmatprep.mubr.bf16.mxu0 %v7209_v0  ;;  %615 = vmatprep.mubr.bf16.mxu1 %v7209_v0  ;;  %v4670_v2 = vld [vmem:[#allocation10 + $0xc] ss:$24 sps:$4 sm:$0xff]   ;;  %v4672_v3 = vld [vmem:[#allocation10] ss:$24 sps:$4 sm:$0xff]   ;;  %v4676_v6 = vld [vmem:[#allocation10 + $0x3c] ss:$24 sps:$4 sm:$0xff]  }
  0x4f   :  { %4666 = vset.pattern.permute.xlu0 %v7209_v0  ;;  %4667 = vset.pattern.permute.xlu1 %v7209_v0  ;;  %v4673_v4 = vld [vmem:[#allocation10 + $0x8] ss:$24 sps:$4 sm:$0xff]   ;;  %v4674_v5 = vld [vmem:[#allocation10 + $0x34] ss:$24 sps:$4 sm:$0xff]   ;;  %v4679_v8 = vld [vmem:[#allocation10 + $0x38] ss:$24 sps:$4 sm:$0xff]  }
  0x50   :  { %470 = vmatprep.subr.bf16.mxu0 %v4668_v1  ;;  %583 = vmatprep.subr.bf16.mxu1 %v4670_v2  ;;  %v4678_v7 = vld [vmem:[#allocation10 + $0x30] ss:$24 sps:$4 sm:$0xff]   ;;  %v4680_v9 = vld [vmem:[#allocation10 + $0x64] ss:$24 sps:$4 sm:$0xff]   ;;  %v4684_v11 = vld [vmem:[#allocation10 + $0x60] ss:$24 sps:$4 sm:$0xff]  }
  0x51   :  { %471 = vmatpush1.bf16.msra.mxu0 %v4672_v3  ;;  %584 = vmatpush1.bf16.msra.mxu1 %v4673_v4  ;;  %v4682_v10 = vld [vmem:[#allocation10 + $0x6c] ss:$24 sps:$4 sm:$0xff]   ;;  %v4685_v12 = vld [vmem:[#allocation10 + $0x68] ss:$24 sps:$4 sm:$0xff]   ;;  %v4688_v14 = vld [vmem:[#allocation10 + $0x9c] ss:$24 sps:$4 sm:$0xff]  }
  0x52   :  { %472 = vmatprep.subr.bf16.mxu0 %v4674_v5  ;;  %585 = vmatprep.subr.bf16.mxu1 %v4676_v6  ;;  %v4686_v13 = vld [vmem:[#allocation10 + $0x94] ss:$24 sps:$4 sm:$0xff]   ;;  %v4690_v15 = vld [vmem:[#allocation10 + $0x90] ss:$24 sps:$4 sm:$0xff]   ;;  %v4692_v17 = vld [vmem:[#allocation10 + $0xc4] ss:$24 sps:$4 sm:$0xff]  }
  0x53   :  { %v4691_v16 = vld [vmem:[#allocation10 + $0x98] ss:$24 sps:$4 sm:$0xff]   ;;  %v4694_v18 = vld [vmem:[#allocation10 + $0xcc] ss:$24 sps:$4 sm:$0xff]   ;;  %v4697_v20 = vld [vmem:[#allocation10 + $0xc8] ss:$24 sps:$4 sm:$0xff]  }
  0x54   :  { %v4696_v19 = vld [vmem:[#allocation10 + $0xc0] ss:$24 sps:$4 sm:$0xff]   ;;  %v4698_v21 = vld [vmem:[#allocation10 + $0xf4] ss:$24 sps:$4 sm:$0xff]   ;;  %v4702_v23 = vld [vmem:[#allocation10 + $0xf0] ss:$24 sps:$4 sm:$0xff]  }
  0x55   :  { %473 = vmatpush1.bf16.msra.mxu0 %v4678_v7  ;;  %586 = vmatpush1.bf16.msra.mxu1 %v4679_v8  ;;  %v4700_v22 = vld [vmem:[#allocation10 + $0xfc] ss:$24 sps:$4 sm:$0xff]   ;;  %v4703_v24 = vld [vmem:[#allocation10 + $0xf8] ss:$24 sps:$4 sm:$0xff]   ;;  %v4706_v26 = vld [vmem:[#allocation10 + $0x12c] ss:$24 sps:$4 sm:$0xff]  }
  0x56   :  { %474 = vmatprep.subr.bf16.mxu0 %v4680_v9  ;;  %587 = vmatprep.subr.bf16.mxu1 %v4682_v10  ;;  %v4704_v25 = vld [vmem:[#allocation10 + $0x124] ss:$24 sps:$4 sm:$0xff]   ;;  %v4708_v27 = vld [vmem:[#allocation10 + $0x120] ss:$24 sps:$4 sm:$0xff]   ;;  %v4710_v29 = vld [vmem:[#allocation10 + $0x154] ss:$24 sps:$4 sm:$0xff]  }
  0x57   :  { %v4709_v28 = vld [vmem:[#allocation10 + $0x128] ss:$24 sps:$4 sm:$0xff]   ;;  %v4712_v30 = vld [vmem:[#allocation10 + $0x15c] ss:$24 sps:$4 sm:$0xff]   ;;  %v4715_v32 = vld [vmem:[#allocation10 + $0x158] ss:$24 sps:$4 sm:$0xff]  }
  0x58   :  { %v4714_v31 = vld [vmem:[#allocation10 + $0x150] ss:$24 sps:$4 sm:$0xff]   ;;  %v4719_v33 = vld [vmem:[#allocation10 + $0x14] ss:$24 sps:$4 sm:$0xff]   ;;  %v5497_v34 = vld [vmem:[#allocation5] sm:$0xff]   ;;  %v7211_v8 = vmov 0.0  }
  0x59   :  { %475 = vmatpush1.bf16.msra.mxu0 %v4684_v11  ;;  %588 = vmatpush1.bf16.msra.mxu1 %v4685_v12  ;;  %v5499_v35 = vld [vmem:[#allocation11 + $0x4] ss:$12 sps:$4 sm:$0xff]   ;;  %v5502_v38 = vld [vmem:[#allocation11] ss:$12 sps:$4 sm:$0xff]   ;;  %v5506_v39 = vld [vmem:[#allocation11 + $0x1c] ss:$12 sps:$4 sm:$0xff]  }
  0x5a   :  { %476 = vmatprep.subr.bf16.mxu0 %v4686_v13  ;;  %589 = vmatprep.subr.bf16.mxu1 %v4688_v14  ;;  %v4717_v36 = vld [vmem:[#allocation10 + $0x10] ss:$24 sps:$4 sm:$0xff]   ;;  %v4723_v37 = vld [vmem:[#allocation10 + $0x44] ss:$24 sps:$4 sm:$0xff]   ;;  %v4721_v40 = vld [vmem:[#allocation10 + $0x40] ss:$24 sps:$4 sm:$0xff]  }
  0x5b   :  { %v4727_v41 = vld [vmem:[#allocation10 + $0x74] ss:$24 sps:$4 sm:$0xff]   ;;  %v5511_v42 = vld [vmem:[#allocation11 + $0x18] ss:$12 sps:$4 sm:$0xff]   ;;  %v4725_v44 = vld [vmem:[#allocation10 + $0x70] ss:$24 sps:$4 sm:$0xff]  }
  0x5c   :  { %v4731_v45 = vld [vmem:[#allocation10 + $0xa4] ss:$24 sps:$4 sm:$0xff]   ;;  %v5516_v46 = vld [vmem:[#allocation11 + $0x34] ss:$12 sps:$4 sm:$0xff]   ;;  %v5523_v48 = vld [vmem:[#allocation11 + $0x4c] ss:$12 sps:$4 sm:$0xff]  }
  0x5d   :  { %477 = vmatpush1.bf16.msra.mxu0 %v4690_v15  ;;  %590 = vmatpush1.bf16.msra.mxu1 %v4691_v16  ;;  %v5519_v47 = vld [vmem:[#allocation11 + $0x30] ss:$12 sps:$4 sm:$0xff]   ;;  %v4729_v49 = vld [vmem:[#allocation10 + $0xa0] ss:$24 sps:$4 sm:$0xff]   ;;  %v4738_v50 = vld [vmem:[#allocation10 + $0xd4] ss:$24 sps:$4 sm:$0xff]  }
  0x5e   :  { %478 = vmatprep.subr.bf16.mxu0 %v4692_v17  ;;  %591 = vmatprep.subr.bf16.mxu1 %v4694_v18  ;;  %v5529_v51 = vld [vmem:[#allocation11 + $0x48] ss:$12 sps:$4 sm:$0xff]   ;;  %v5534_v54 = vld [vmem:[#allocation11 + $0x64] ss:$12 sps:$4 sm:$0xff]   ;;  %v5537_v56 = vld [vmem:[#allocation11 + $0x60] ss:$12 sps:$4 sm:$0xff]  }
  0x5f   :  { %v5531_v52 = vld [vmem:[#allocation5 + $0x10] sm:$0xff]   ;;  %v4747_v55 = vld [vmem:[#allocation10 + $0x104] ss:$24 sps:$4 sm:$0xff]   ;;  %v4745_v58 = vld [vmem:[#allocation10 + $0x100] ss:$24 sps:$4 sm:$0xff]   ;;  %vm5394_vm4 = vmmov 0  }
  0x60   :  { %v4736_v53 = vld [vmem:[#allocation10 + $0xd0] ss:$24 sps:$4 sm:$0xff]   ;;  %v4757_v59 = vld [vmem:[#allocation10 + $0x134] ss:$24 sps:$4 sm:$0xff]   ;;  %v5547_v60 = vld [vmem:[#allocation11 + $0x78] ss:$12 sps:$4 sm:$0xff]  }
  0x61   :  { %479 = vmatpush1.bf16.msra.mxu0 %v4696_v19  ;;  %592 = vmatpush1.bf16.msra.mxu1 %v4697_v20  ;;  %v5541_v57 = vld [vmem:[#allocation11 + $0x7c] ss:$12 sps:$4 sm:$0xff]   ;;  %v5552_v63 = vld [vmem:[#allocation11 + $0x94] ss:$12 sps:$4 sm:$0xff]   ;;  %v5559_v3 = vld [vmem:[#allocation11 + $0xac] ss:$12 sps:$4 sm:$0xff]  }
  0x62   :  { %480 = vmatprep.subr.bf16.mxu0 %v4698_v21  ;;  %593 = vmatprep.subr.bf16.mxu1 %v4700_v22  ;;  %v5549_v61 = vld [vmem:[#allocation5 + $0x18] sm:$0xff]   ;;  %v4755_v62 = vld [vmem:[#allocation10 + $0x130] ss:$24 sps:$4 sm:$0xff]   ;;  %v5569_v7 = vld [vmem:[#allocation5 + $0x20] sm:$0xff]   ;;  %s5396_s9 = smov [#allocation13]  }
  0x63   :  { %v4767_v1 = vld [vmem:[#allocation10 + $0x164] ss:$24 sps:$4 sm:$0xff]   ;;  %v4765_v4 = vld [vmem:[#allocation10 + $0x160] ss:$24 sps:$4 sm:$0xff]   ;;  %v5564_v5 = vld [vmem:[#allocation11 + $0xa8] ss:$12 sps:$4 sm:$0xff]  }
  0x64   :  { %v5555_v2 = vld [vmem:[#allocation11 + $0x90] ss:$12 sps:$4 sm:$0xff]   ;;  %v5579_v9 = vld [vmem:[#allocation5 + $0x28] sm:$0xff]   ;;  %v5588_v10 = vld [vmem:[%s7201_s1] sm:$0xff]  ;;  %s3906_s10 = sshll.u32 %s5396_s9, 4  ;;  %s7163_s10 = int_to_ptr.vmem [resolvable:$true] %s3906_s10 }
  0x65   :  { %481 = vmatpush1.bf16.msra.mxu0 %v4702_v23  ;;  %594 = vmatpush1.bf16.msra.mxu1 %v4703_v24  ;;  %v5567_v6 = vld [vmem:[#allocation11 + $0xc4] ss:$12 sps:$4 sm:$0xff]   ;;  %vm1261_vm0 = vcmp.gt.s32.totalorder %v5588_v10, 0  ;;  %v5596_v12 = vld [vmem:[%s7201_s1 + $0x8] sm:$0xff]  ;;  %vm1743_vm2 = vcmp.gt.s32.totalorder %v5588_v10, 1  ;;  %v5607_v16 = vld [vmem:[#allocation5 + $0x38] sm:$0xff]  }
  0x66   :  { %482 = vmatprep.subr.bf16.mxu0 %v4704_v25  ;;  %595 = vmatprep.subr.bf16.mxu1 %v4706_v26  ;;  %v5590_v11 = vld [vmem:[#allocation5 + $0x30] sm:$0xff]   ;;  %v1263_v13 = vsel %vm1261_vm0, 1, %v7209_v0  ;;  %vm1262_vm1 = vcmp.gt.s32.totalorder %v5596_v12, 0  ;;  %v1745_v15 = vsel %vm1743_vm2, 1, %v7209_v0  ;;  %vm1917_vm3 = vcmp.gt.s32.totalorder %v5588_v10, 6  ;;  %v5615_v18 = vld [vmem:[#allocation8] sm:$0xff] }
  0x67   :  { %1266 = vperm.xlu0 %4666, %v1263_v13   ;;  %v1264_v14 = vsel %vm1262_vm1, 1, %v7209_v0  ;;  %v1919_v17 = vsel %vm1917_vm3, 1, %v7209_v0  ;;  %v5617_v19 = vld [vmem:[#allocation8 + $0x8] sm:$0xff]  ;;  %v5635_v25 = vld [vmem:[#allocation11 + $0xd8] ss:$12 sps:$4 sm:$0xff]   ;;  %vm2091_vm5 = vcmp.gt.s32.totalorder %v5588_v10, 2 }
  0x68   :  { %v5621_v20 = vpack.c.bf16 %v5617_v19, %v5615_v18  ;;  %v5623_v21 = vld [vmem:[#allocation11 + $0x8] ss:$12 sps:$4 sm:$0xff]   ;;  %v5625_v22 = vld [vmem:[#allocation11 + $0xc0] ss:$12 sps:$4 sm:$0xff]   ;;  %vm2265_vm6 = vcmp.gt.s32.totalorder %v5588_v10, 5  ;;  %vm2439_vm7 = vcmp.gt.s32.totalorder %v5588_v10, 3 }
  0x69   :  { %483 = vmatpush1.bf16.msra.mxu0 %v4708_v27  ;;  %596 = vmatpush1.bf16.msra.mxu1 %v4709_v28  ;;  %v5627_v23 = vld [vmem:[#allocation11 + $0xdc] ss:$12 sps:$4 sm:$0xff]   ;;  %v5633_v24 = vld [vmem:[#allocation11 + $0x20] ss:$12 sps:$4 sm:$0xff]   ;;  %v5645_v27 = vld [vmem:[#allocation11 + $0x38] ss:$12 sps:$4 sm:$0xff]  }
  0x6a   :  { %484 = vmatprep.subr.bf16.mxu0 %v4710_v29  ;;  %597 = vmatprep.subr.bf16.mxu1 %v4712_v30  ;;  %v5639_v26 = vld [vmem:[#allocation11 + $0xf4] ss:$12 sps:$4 sm:$0xff]   ;;  %v4785_v28 = vld [vmem:[#allocation11 + $0xf0] ss:$12 sps:$4 sm:$0xff]   ;;  %v4788_v29 = vld [vmem:[#allocation11 + $0x10c] ss:$12 sps:$4 sm:$0xff]  }
  0x6b   :  { %1269 = vperm.xlu0 %4666, %v1264_v14   ;;  %v5652_v30 = vld [vmem:[#allocation11 + $0x50] ss:$12 sps:$4 sm:$0xff]   ;;  %vm2613_vm8 = vcmp.gt.s32.totalorder %v5588_v10, 4  ;;  %vm1569_vm9 = vcmp.gt.s32.totalorder %v5588_v10, 7  ;;  %vm1570_vm10 = vcmp.gt.s32.totalorder %v5596_v12, 7  ;;  %vm1744_vm11 = vcmp.gt.s32.totalorder %v5596_v12, 1 }
  0x6c   :  { %v5730_v10 = vld [vmem:[#allocation11 + $0x128] ss:$12 sps:$4 sm:$0xff]   ;;  %vm1918_vm12 = vcmp.gt.s32.totalorder %v5596_v12, 6  ;;  %v5738_v13 = vld [vmem:[#allocation11 + $0x140] ss:$12 sps:$4 sm:$0xff]   ;;  %vm2092_vm13 = vcmp.gt.s32.totalorder %v5596_v12, 2 }
  0x6d   :  { %485 = vmatpush1.bf16.msra.mxu0 %v4714_v31  ;;  %598 = vmatpush1.bf16.msra.mxu1 %v4715_v32  ;;  %v4790_v31 = vld [vmem:[#allocation11 + $0x108] ss:$12 sps:$4 sm:$0xff]   ;;  %v4792_v32 = vld [vmem:[#allocation11 + $0x124] ss:$12 sps:$4 sm:$0xff]   ;;  %v2094_v14 = vsel %vm2092_vm13, 1, %v7209_v0  ;;  %vm2266_vm14 = vcmp.gt.s32.totalorder %v5596_v12, 5 }
  0x6e   :  { %696 = vmatprep.subr.bf16.mxu0 %v4719_v33  ;;  %1121 = vmatprep.subr.bf16.mxu1 %v5499_v35  ;;  %v5657_v33 = vld [vmem:[#allocation11 + $0x68] ss:$12 sps:$4 sm:$0xff]   ;;  %vm2440_vm15 = vcmp.gt.s32.totalorder %v5596_v12, 3  ;;  %vm2614_vm0 = vcmp.gt.s32.totalorder %v5596_v12, 4 }
  0x6f   :  { %1748 = vperm.xlu0 %4666, %v1745_v15   ;;  %v5744_v15 = vld [vmem:[#allocation11 + $0x158] ss:$12 sps:$4 sm:$0xff]  }
  0x70   :  { %503 = vmatmul.mubr.bf16.vlgmr.msra.gmra.mrb[0].mxu0 %v5497_v34  ;;  %616 = vmatmul.mubr.bf16.vlgmr.msra.gmra.mrb[0].mxu1 %v5497_v34 }
  0x71   :  { %697 = vmatpush1.bf16.msra.mxu0 %v4717_v36  ;;  %512 = vmatprep.mubr.bf16.mxu0 %v7209_v0  ;;  %v4795_v36 = vld [vmem:[#allocation11 + $0x13c] ss:$12 sps:$4 sm:$0xff]  }
  0x72   :  { %625 = vmatprep.mubr.bf16.mxu1 %v7209_v0  ;;  %698 = vmatprep.subr.bf16.mxu0 %v4723_v37  ;;  %v5662_v37 = vld [vmem:[#allocation11 + $0x80] ss:$12 sps:$4 sm:$0xff]  }
  0x73   :  { %1122 = vmatpush1.bf16.msra.mxu1 %v5502_v38  ;;  %1922 = vperm.xlu0 %4666, %v1919_v17   ;;  %v5751_v17 = vld [vmem:[#allocation8 + $0x10] sm:$0xff] }
  0x74   :  { %1123 = vmatprep.subr.bf16.mxu1 %v5506_v39 }
  0x75   :  { %699 = vmatpush1.bf16.msra.mxu0 %v4721_v40  ;;  %v5666_v40 = vld [vmem:[#allocation11 + $0x138] ss:$12 sps:$4 sm:$0xff]  }
  0x76   :  { %700 = vmatprep.subr.bf16.mxu0 %v4727_v41  ;;  %v5668_v41 = vld [vmem:[#allocation11 + $0x154] ss:$12 sps:$4 sm:$0xff]  }
  0x77   :  { %1124 = vmatpush1.bf16.msra.mxu1 %v5511_v42 }
  0x78   :  { %513 = vmatmul.mubr.bf16.gmra.mrb[4].mxu0 %v5513_v43  ;;  %626 = vmatmul.mubr.bf16.gmra.mrb[4].mxu1 %v5513_v43 }
  0x79   :  { %522 = vmatprep.mubr.bf16.mxu0 %v7209_v0  ;;  %635 = vmatprep.mubr.bf16.mxu1 %v7209_v0 }
  0x7a   :  { %701 = vmatpush1.bf16.msra.mxu0 %v4725_v44  ;;  %1125 = vmatprep.subr.bf16.mxu1 %v5516_v46  ;;  %v2093_v44 = vsel %vm2091_vm5, 1, %v7209_v0 }
  0x7b   :  { %702 = vmatprep.subr.bf16.mxu0 %v4731_v45  ;;  %1126 = vmatpush1.bf16.msra.mxu1 %v5519_v47  ;;  %v5677_v45 = vld [vmem:[#allocation11 + $0x150] ss:$12 sps:$4 sm:$0xff]  }
  0x7c   :  { %1127 = vmatprep.subr.bf16.mxu1 %v5523_v48  ;;  %2096 = vperm.xlu0 %4666, %v2093_v44  }
  0x7e   :  { %703 = vmatpush1.bf16.msra.mxu0 %v4729_v49  ;;  %v5680_v49 = vld [vmem:[#allocation11 + $0x16c] ss:$12 sps:$4 sm:$0xff]  }
  0x7f   :  { %704 = vmatprep.subr.bf16.mxu0 %v4738_v50  ;;  %1128 = vmatpush1.bf16.msra.mxu1 %v5529_v51  ;;  %v5685_v50 = vld [vmem:[#allocation11 + $0xb0] ss:$12 sps:$4 sm:$0xff]  }
  0x80   :  { %523 = vmatmul.mubr.bf16.gmra.mrb[8].mxu0 %v5531_v52  ;;  %636 = vmatmul.mubr.bf16.gmra.mrb[8].mxu1 %v5531_v52 }
  0x81   :  { %532 = vmatprep.mubr.bf16.mxu0 %v7209_v0  ;;  %645 = vmatprep.mubr.bf16.mxu1 %v7209_v0 }
  0x82   :  { %705 = vmatpush1.bf16.msra.mxu0 %v4736_v53  ;;  %1129 = vmatprep.subr.bf16.mxu1 %v5534_v54  ;;  %v5691_v53 = vld [vmem:[#allocation11 + $0x168] ss:$12 sps:$4 sm:$0xff]  }
  0x83   :  { %706 = vmatprep.subr.bf16.mxu0 %v4747_v55  ;;  %1130 = vmatpush1.bf16.msra.mxu1 %v5537_v56  ;;  %v5696_v55 = vld [vmem:[#allocation11 + $0xc8] ss:$12 sps:$4 sm:$0xff]  }
  0x84   :  { %1131 = vmatprep.subr.bf16.mxu1 %v5541_v57 }
  0x86   :  { %707 = vmatpush1.bf16.msra.mxu0 %v4745_v58  ;;  %v2441_v58 = vsel %vm2439_vm7, 1, %v7209_v0 }
  0x87   :  { %708 = vmatprep.subr.bf16.mxu0 %v4757_v59  ;;  %1132 = vmatpush1.bf16.msra.mxu1 %v5547_v60  ;;  %v5707_v59 = vld [vmem:[#allocation11 + $0xe0] ss:$12 sps:$4 sm:$0xff]  }
  0x88   :  { %533 = vmatmul.mubr.bf16.gmra.mrb[12].mxu0 %v5549_v61  ;;  %646 = vmatmul.mubr.bf16.gmra.mrb[12].mxu1 %v5549_v61 }
  0x89   :  { %542 = vmatprep.mubr.bf16.mxu0 %v7209_v0  ;;  %655 = vmatprep.mubr.bf16.mxu1 %v7209_v0 }
  0x8a   :  { %709 = vmatpush1.bf16.msra.mxu0 %v4755_v62  ;;  %1133 = vmatprep.subr.bf16.mxu1 %v5552_v63  ;;  %v5716_v62 = vld [vmem:[#allocation11 + $0xf8] ss:$12 sps:$4 sm:$0xff]  }
  0x8b   :  { %710 = vmatprep.subr.bf16.mxu0 %v4767_v1  ;;  %1134 = vmatpush1.bf16.msra.mxu1 %v5555_v2  ;;  %v1572_v1 = vsel %vm1570_vm10, 1, %v7209_v0 }
  0x8c   :  { %1135 = vmatprep.subr.bf16.mxu1 %v5559_v3 }
  0x8e   :  { %711 = vmatpush1.bf16.msra.mxu0 %v4765_v4  ;;  %v5724_v4 = vld [vmem:[#allocation11 + $0x110] ss:$12 sps:$4 sm:$0xff]  }
  0x8f   :  { %1136 = vmatpush1.bf16.msra.mxu1 %v5564_v5  ;;  %1429 = vmatprep.subr.bf16.mxu0 %v5567_v6 }
  0x90   :  { %543 = vmatmul.mubr.bf16.gmra.mrb[16].mxu0 %v5569_v7  ;;  %656 = vmatmul.mubr.bf16.gmra.mrb[16].mxu1 %v5569_v7 }
  0x91   :  { %552 = vmatprep.mubr.bf16.mxu0 %v7209_v0  ;;  %665 = vmatprep.mubr.bf16.mxu1 %v7209_v0 }
  0x92   :  { %4329 = vmatprep.subr.bf16.mxu1 %v7211_v8 }
  0x98   :  { %553 = vmatmul.mubr.bf16.gmra.mrb[20].mxu0 %v5579_v9  ;;  %666 = vmatmul.mubr.bf16.gmra.mrb[20].mxu1 %v5579_v9 }
  0x99   :  { %562 = vmatprep.mubr.bf16.mxu0 %v7209_v0  ;;  %675 = vmatprep.mubr.bf16.mxu1 %v7209_v0 }
  0xa0   :  { %563 = vmatmul.mubr.bf16.gmra.mrb[24].mxu0 %v5590_v11  ;;  %676 = vmatmul.mubr.bf16.gmra.mrb[24].mxu1 %v5590_v11 }
  0xa1   :  { %572 = vmatprep.mubr.bf16.mxu0 %v7209_v0  ;;  %685 = vmatprep.mubr.bf16.mxu1 %v7209_v0 }
  0xa8   :  { %573 = vmatmul.mubr.bf16.gmra.mrb[28].mxu0 %v5607_v16  ;;  %686 = vmatmul.mubr.bf16.gmra.mrb[28].mxu1 %v5607_v16 }
  0xa9   :  { %728 = vmatprep.mubr.bf16.mxu0 %v7209_v0  ;;  %1153 = vmatprep.mubr.bf16.mxu1 %v7209_v0 }
  0xb0   :  { %729 = vmatmul.mubr.bf16.vlgmr.msra.gmra.mrb[32].mxu0 %v5497_v34  ;;  %1154 = vmatmul.mubr.bf16.vlgmr.msra.gmra.mrb[32].mxu1 %v5621_v20  ;;  %v4794_v34 = vld [vmem:[#allocation11 + $0x120] ss:$12 sps:$4 sm:$0xff]  }
  0xb1   :  { %4330 = vmatpush3.bf16.msra.mxu1 %v5623_v21  ;;  %1430 = vmatpush1.bf16.msra.mxu0 %v5625_v22 }
  0xb2   :  { %4331 = vmatprep.subr.bf16.mxu1 %v7211_v8  ;;  %738 = vmatprep.mubr.bf16.mxu0 %v7209_v0 }
  0xb3   :  { %1431 = vmatprep.subr.bf16.mxu0 %v5627_v23  ;;  %4345 = vmatprep.mubr.msk.bf16.mxu1 %vm5394_vm4, %v7211_v8 }
  0xb5   :  { %4332 = vmatpush3.bf16.msra.mxu1 %v5633_v24  ;;  %1432 = vmatpush1.bf16.msra.mxu0 %v5635_v25 }
  0xb6   :  { %4333 = vmatprep.subr.bf16.mxu1 %v7211_v8  ;;  %1433 = vmatprep.subr.bf16.mxu0 %v5639_v26 }
  0xb8   :  { %739 = vmatmul.mubr.bf16.gmra.mrb[36].mxu0 %v5513_v43  ;;  %v5672_v43 = vld [vmem:[#allocation11 + $0x98] ss:$12 sps:$4 sm:$0xff]  }
  0xb9   :  { %4334 = vmatpush3.bf16.msra.mxu1 %v5645_v27  ;;  %748 = vmatprep.mubr.bf16.mxu0 %v7209_v0 }
  0xba   :  { %4335 = vmatprep.subr.bf16.mxu1 %v7211_v8  ;;  %1434 = vmatpush1.bf16.msra.mxu0 %v4785_v28  ;;  %v5756_v28 = vld [vmem:[#allocation11 + $0x170] ss:$12 sps:$4 sm:$0xff]  }
  0xbb   :  { %1435 = vmatprep.subr.bf16.mxu0 %v4788_v29  ;;  %v2442_v29 = vsel %vm2440_vm15, 1, %v7209_v0 }
  0xbd   :  { %4336 = vmatpush3.bf16.msra.mxu1 %v5652_v30 }
  0xbe   :  { %4337 = vmatprep.subr.bf16.mxu1 %v7211_v8  ;;  %1436 = vmatpush1.bf16.msra.mxu0 %v4790_v31  ;;  %v2616_v31 = vsel %vm2614_vm0, 1, %v7209_v0 }
  0xbf   :  { %1437 = vmatprep.subr.bf16.mxu0 %v4792_v32 }
  0xc0   :  { %749 = vmatmul.mubr.bf16.gmra.mrb[40].mxu0 %v5531_v52  ;;  %v2267_v52 = vsel %vm2265_vm6, 1, %v7209_v0 }
  0xc1   :  { %4338 = vmatpush3.bf16.msra.mxu1 %v5657_v33  ;;  %758 = vmatprep.mubr.bf16.mxu0 %v7209_v0 }
  0xc2   :  { %4339 = vmatprep.subr.bf16.mxu1 %v7211_v8  ;;  %1438 = vmatpush1.bf16.msra.mxu0 %v4794_v34 }
  0xc3   :  { %1439 = vmatprep.subr.bf16.mxu0 %v4795_v36  ;;  %2270 = vperm.xlu0 %4666, %v2267_v52  }
  0xc5   :  { %4340 = vmatpush3.bf16.msra.mxu1 %v5662_v37 }
  0xc6   :  { %4341 = vmatprep.subr.bf16.mxu1 %v7211_v8  ;;  %1440 = vmatpush1.bf16.msra.mxu0 %v5666_v40 }
  0xc7   :  { %1441 = vmatprep.subr.bf16.mxu0 %v5668_v41  ;;  %2444 = vperm.xlu0 %4666, %v2441_v58  }
  0xc8   :  { %759 = vmatmul.mubr.bf16.gmra.mrb[44].mxu0 %v5549_v61  ;;  %v2615_v61 = vsel %vm2613_vm8, 1, %v7209_v0 }
  0xc9   :  { %4342 = vmatpush3.bf16.msra.mxu1 %v5672_v43  ;;  %768 = vmatprep.mubr.bf16.mxu0 %v7209_v0 }
  0xca   :  { %4343 = vmatprep.subr.bf16.mxu1 %v7211_v8  ;;  %1442 = vmatpush1.bf16.msra.mxu0 %v5677_v45 }
  0xcb   :  { %1443 = vmatprep.subr.bf16.mxu0 %v5680_v49  ;;  %2618 = vperm.xlu0 %4666, %v2615_v61  }
  0xcd   :  { %4344 = vmatpush3.bf16.msra.mxu1 %v5685_v50 }
  0xce   :  { %4349 = vmatprep.subr.bf16.mxu1 %v7211_v8  ;;  %1444 = vmatpush1.bf16.msra.mxu0 %v5691_v53 }
  0xcf   :  { %1609 = vmatprep.subr.bf16.mxu0 %v5499_v35  ;;  %v1571_v35 = vsel %vm1569_vm9, 1, %v7209_v0 }
  0xd0   :  { %4346 = vmatmul.mubr.bf16.vlgmr.msra.gmra.mrb[36].mxu1 %v5621_v20  ;;  %769 = vmatmul.mubr.bf16.gmra.mrb[48].mxu0 %v5569_v7  ;;  %v1746_v7 = vsel %vm1744_vm11, 1, %v7209_v0  ;;  %v5753_v20 = vld [vmem:[#allocation8 + $0x18] sm:$0xff] }
  0xd1   :  { %778 = vmatprep.mubr.bf16.mxu0 %v7209_v0  ;;  %4350 = vmatpush3.bf16.msra.mxu1 %v5696_v55 }
  0xd2   :  { %4351 = vmatprep.subr.bf16.mxu1 %v7211_v8  ;;  %4365 = vmatprep.mubr.msk.bf16.mxu1 %vm5394_vm4, %v7211_v8 }
  0xd3   :  { %1574 = vperm.xlu1 %4667, %v1571_v35  }
  0xd5   :  { %4352 = vmatpush3.bf16.msra.mxu1 %v5707_v59 }
  0xd6   :  { %4353 = vmatprep.subr.bf16.mxu1 %v7211_v8 }
  0xd7   :  { %1577 = vperm.xlu1 %4667, %v1572_v1  }
  0xd8   :  { %779 = vmatmul.mubr.bf16.gmra.mrb[52].mxu0 %v5579_v9  ;;  %v1920_v9 = vsel %vm1918_vm12, 1, %v7209_v0 }
  0xd9   :  { %788 = vmatprep.mubr.bf16.mxu0 %v7209_v0  ;;  %4354 = vmatpush3.bf16.msra.mxu1 %v5716_v62 }
  0xda   :  { %4355 = vmatprep.subr.bf16.mxu1 %v7211_v8 }
  0xdb   :  { %1751 = vperm.xlu1 %4667, %v1746_v7  }
  0xdd   :  { %4356 = vmatpush3.bf16.msra.mxu1 %v5724_v4 }
  0xde   :  { %4357 = vmatprep.subr.bf16.mxu1 %v7211_v8 }
  0xdf   :  { %1925 = vperm.xlu1 %4667, %v1920_v9  }
  0xe0   :  { %789 = vmatmul.mubr.bf16.gmra.mrb[56].mxu0 %v5590_v11  ;;  %v2268_v11 = vsel %vm2266_vm14, 1, %v7209_v0 }
  0xe1   :  { %798 = vmatprep.mubr.bf16.mxu0 %v7209_v0  ;;  %4358 = vmatpush3.bf16.msra.mxu1 %v5730_v10 }
  0xe2   :  { %4359 = vmatprep.subr.bf16.mxu1 %v7211_v8 }
  0xe3   :  { %2099 = vperm.xlu1 %4667, %v2094_v14  }
  0xe5   :  { %4360 = vmatpush3.bf16.msra.mxu1 %v5738_v13 }
  0xe6   :  { %4361 = vmatprep.subr.bf16.mxu1 %v7211_v8 }
  0xe7   :  { %2273 = vperm.xlu1 %4667, %v2268_v11  }
  0xe8   :  { %799 = vmatmul.mubr.bf16.gmra.mrb[60].mxu0 %v5607_v16  ;;  %v1300_v16 = vpack.c.bf16 %v5753_v20, %v5751_v17 }
  0xe9   :  { %1461 = vmatprep.mubr.bf16.mxu0 %v7209_v0  ;;  %4362 = vmatpush3.bf16.msra.mxu1 %v5744_v15 }
  0xea   :  { %4363 = vmatprep.subr.bf16.mxu1 %v7211_v8 }
  0xeb   :  { %2447 = vperm.xlu1 %4667, %v2442_v29  }
  0xed   :  { %4364 = vmatpush3.bf16.msra.mxu1 %v5756_v28 }
  0xee   :  { %4369 = vmatprep.subr.bf16.mxu1 %v7211_v8 }
  0xef   :  { %2621 = vperm.xlu1 %4667, %v2616_v31  }
  0xf0   :  { %1462 = vmatmul.mubr.bf16.vlgmr.msra.gmra.mrb[64].mxu0 %v1300_v16  ;;  %4366 = vmatmul.mubr.bf16.vlgmr.msra.gmra.mrb[40].mxu1 %v1300_v16 }
  0xf1   :  { %1610 = vmatpush1.bf16.msra.mxu0 %v5502_v38  ;;  %4370 = vmatpush3.bf16.msra.mxu1 %v5623_v21  ;;  %v152_v38 = vlaneseq }
  0xf2   :  { %1611 = vmatprep.subr.bf16.mxu0 %v5506_v39  ;;  %4371 = vmatprep.subr.bf16.mxu1 %v7211_v8 }
  0xf3   :  { %1641 = vmatprep.mubr.bf16.mxu0 %v7209_v0  ;;  %4385 = vmatprep.mubr.msk.bf16.mxu1 %vm5394_vm4, %v7211_v8  ;;  %v5802_v39 = vshrl.u32 %v152_v38, 7 }
  0xf5   :  { %1612 = vmatpush1.bf16.msra.mxu0 %v5511_v42  ;;  %4372 = vmatpush3.bf16.msra.mxu1 %v5633_v24  ;;  %v162_v42 = vsub.s32 2, %v5802_v39 }
  0xf6   :  { %1613 = vmatprep.subr.bf16.mxu0 %v5516_v46  ;;  %4373 = vmatprep.subr.bf16.mxu1 %v7211_v8  ;;  %v166_v46 = vsub.s32 3, %v5802_v39 }
  0xf9   :  { %1614 = vmatpush1.bf16.msra.mxu0 %v5519_v47  ;;  %4374 = vmatpush3.bf16.msra.mxu1 %v5645_v27  ;;  %v154_v47 = vsub.s32 0, %v5802_v39 }
  0xfa   :  { %1615 = vmatprep.subr.bf16.mxu0 %v5523_v48  ;;  %4375 = vmatprep.subr.bf16.mxu1 %v7211_v8  ;;  %v5810_v48 = vld [vmem:[%s7205_s5] sm:$0x3f] }
  0xfd   :  { %1616 = vmatpush1.bf16.msra.mxu0 %v5529_v51  ;;  %4376 = vmatpush3.bf16.msra.mxu1 %v5652_v30  ;;  %v158_v51 = vsub.s32 1, %v5802_v39 }
  0xfe   :  { %1617 = vmatprep.subr.bf16.mxu0 %v5534_v54  ;;  %4377 = vmatprep.subr.bf16.mxu1 %v7211_v8  ;;  %v5814_v54 = vrot.slane %v5810_v48, %v162_v42 }
 0x101   :  { %1618 = vmatpush1.bf16.msra.mxu0 %v5537_v56  ;;  %4378 = vmatpush3.bf16.msra.mxu1 %v5657_v33  ;;  %v5817_v56 = vrot.slane %v5810_v48, %v166_v46 }
 0x102   :  { %1619 = vmatprep.subr.bf16.mxu0 %v5541_v57  ;;  %4379 = vmatprep.subr.bf16.mxu1 %v7211_v8  ;;  %v5820_v57 = vrot.slane %v5810_v48, %v154_v47 }
 0x105   :  { %1620 = vmatpush1.bf16.msra.mxu0 %v5547_v60  ;;  %4380 = vmatpush3.bf16.msra.mxu1 %v5662_v37 }
 0x106   :  { %1621 = vmatprep.subr.bf16.mxu0 %v5552_v63  ;;  %4381 = vmatprep.subr.bf16.mxu1 %v7211_v8  ;;  %v5823_v63 = vrot.slane %v5810_v48, %v158_v51 }
 0x109   :  { %1622 = vmatpush1.bf16.msra.mxu0 %v5555_v2  ;;  %4382 = vmatpush3.bf16.msra.mxu1 %v5672_v43 }
 0x10a   :  { %1623 = vmatprep.subr.bf16.mxu0 %v5559_v3  ;;  %4383 = vmatprep.subr.bf16.mxu1 %v7211_v8 }
 0x10d   :  { %1624 = vmatpush1.bf16.msra.mxu0 %v5564_v5  ;;  %4384 = vmatpush3.bf16.msra.mxu1 %v5685_v50 }
 0x10e   :  { %1783 = vmatprep.subr.bf16.mxu0 %v5567_v6  ;;  %4389 = vmatprep.subr.bf16.mxu1 %v7211_v8 }
 0x143   :  { %v504_v60 = vpop.f32.mrb[0].mxu0  ;;  %v617_v2 = vpop.f32.mrb[0].mxu1 }
 0x144   :  { %v506_v3 = vpop.f32.mrb[1].mxu0  ;;  %v618_v5 = vadd.f32 %v617_v2, %v5814_v54  ;;  %v619_v6 = vpop.f32.mrb[1].mxu1  ;;  %v505_v27 = vadd.f32 %v504_v60, %v5820_v57 }
 0x145   :  { %v508_v12 = vpop.f32.mrb[2].mxu0  ;;  %v620_v21 = vadd.f32 %v619_v6, %v5817_v56  ;;  %v621_v24 = vpop.f32.mrb[2].mxu1  ;;  %v507_v36 = vadd.f32 %v506_v3, %v5823_v63 }
 0x146   :  { %v509_v30 = vadd.f32 %v508_v12, %v5820_v57  ;;  %v510_v32 = vpop.f32.mrb[3].mxu0  ;;  %v622_v33 = vadd.f32 %v621_v24, %v5814_v54  ;;  %v623_v34 = vpop.f32.mrb[3].mxu1 }
 0x147   :  { %v511_v37 = vadd.f32 %v510_v32, %v5823_v63  ;;  %v624_v43 = vadd.f32 %v623_v34, %v5817_v56 }
 0x148   :  { %v5833_v44 = vpack.c.bf16 %v509_v30, %v505_v27  ;;  %v5835_v50 = vpack.c.bf16 %v622_v33, %v618_v5 }
 0x149   :  { %v5837_v52 = vpack.c.bf16 %v511_v37, %v507_v36  ;;  %v5839_v58 = vpack.c.bf16 %v624_v43, %v620_v21 }
 0x14b   :  { %7324 = vst [vmem:[#allocation21_spill] sm:$0xff] %v5839_v58  ;;  %v514_v61 = vpop.f32.mrb[4].mxu0  ;;  %v627_v35 = vpop.f32.mrb[4].mxu1 }
 0x14c   :  { %v515_v1 = vadd.f32 %v514_v61, %v5820_v57  ;;  %v516_v7 = vpop.f32.mrb[5].mxu0  ;;  %v628_v9 = vadd.f32 %v627_v35, %v5814_v54  ;;  %v629_v14 = vpop.f32.mrb[5].mxu1 }
 0x14d   :  { %v517_v11 = vadd.f32 %v516_v7, %v5823_v63  ;;  %v518_v16 = vpop.f32.mrb[6].mxu0  ;;  %v630_v29 = vadd.f32 %v629_v14, %v5817_v56  ;;  %v631_v31 = vpop.f32.mrb[6].mxu1 }
 0x14e   :  { %v519_v38 = vadd.f32 %v518_v16, %v5820_v57  ;;  %v520_v42 = vpop.f32.mrb[7].mxu0  ;;  %v632_v46 = vadd.f32 %v631_v31, %v5814_v54  ;;  %v633_v47 = vpop.f32.mrb[7].mxu1 }
 0x14f   :  { %v521_v51 = vadd.f32 %v520_v42, %v5823_v63  ;;  %v634_v60 = vadd.f32 %v633_v47, %v5817_v56 }
 0x150   :  { %v5849_v2 = vpack.c.bf16 %v519_v38, %v515_v1  ;;  %v5851_v3 = vpack.c.bf16 %v632_v46, %v628_v9 }
 0x151   :  { %v5853_v5 = vpack.c.bf16 %v521_v51, %v517_v11  ;;  %v5855_v6 = vpack.c.bf16 %v634_v60, %v630_v29 }
 0x153   :  { %7325 = vst [vmem:[#allocation22_spill] sm:$0xff] %v5855_v6  ;;  %v524_v12 = vpop.f32.mrb[8].mxu0  ;;  %v637_v21 = vpop.f32.mrb[8].mxu1 }
 0x154   :  { %v525_v24 = vadd.f32 %v524_v12, %v5820_v57  ;;  %v526_v27 = vpop.f32.mrb[9].mxu0  ;;  %v638_v30 = vadd.f32 %v637_v21, %v5814_v54  ;;  %v639_v32 = vpop.f32.mrb[9].mxu1 }
 0x155   :  { %v527_v33 = vadd.f32 %v526_v27, %v5823_v63  ;;  %v528_v34 = vpop.f32.mrb[10].mxu0  ;;  %v640_v36 = vadd.f32 %v639_v32, %v5817_v56  ;;  %v641_v37 = vpop.f32.mrb[10].mxu1 }
 0x156   :  { %v529_v43 = vadd.f32 %v528_v34, %v5820_v57  ;;  %v530_v61 = vpop.f32.mrb[11].mxu0  ;;  %v642_v35 = vadd.f32 %v641_v37, %v5814_v54  ;;  %v643_v1 = vpop.f32.mrb[11].mxu1 }
 0x157   :  { %v531_v7 = vadd.f32 %v530_v61, %v5823_v63  ;;  %v644_v9 = vadd.f32 %v643_v1, %v5817_v56 }
 0x158   :  { %v5865_v14 = vpack.c.bf16 %v529_v43, %v525_v24  ;;  %v5867_v11 = vpack.c.bf16 %v642_v35, %v638_v30 }
 0x159   :  { %v5869_v16 = vpack.c.bf16 %v531_v7, %v527_v33  ;;  %v5871_v29 = vpack.c.bf16 %v644_v9, %v640_v36 }
 0x15a   :  { %7326 = vst [vmem:[#allocation23_spill] sm:$0xff] %v5865_v14  ;;  %7327 = vst [vmem:[#allocation24_spill] sm:$0xff] %v5867_v11 }
 0x15b   :  { %7328 = vst [vmem:[#allocation25_spill] sm:$0xff] %v5869_v16  ;;  %7329 = vst [vmem:[#allocation26_spill] sm:$0xff] %v5871_v29  ;;  %v534_v31 = vpop.f32.mrb[12].mxu0  ;;  %v647_v38 = vpop.f32.mrb[12].mxu1 }
 0x15c   :  { %v535_v42 = vadd.f32 %v534_v31, %v5820_v57  ;;  %v536_v46 = vpop.f32.mrb[13].mxu0  ;;  %v648_v47 = vadd.f32 %v647_v38, %v5814_v54  ;;  %v649_v51 = vpop.f32.mrb[13].mxu1 }
 0x15d   :  { %v537_v60 = vadd.f32 %v536_v46, %v5823_v63  ;;  %v538_v12 = vpop.f32.mrb[14].mxu0  ;;  %v650_v21 = vadd.f32 %v649_v51, %v5817_v56  ;;  %v651_v24 = vpop.f32.mrb[14].mxu1 }
 0x15e   :  { %v539_v27 = vadd.f32 %v538_v12, %v5820_v57  ;;  %v540_v30 = vpop.f32.mrb[15].mxu0  ;;  %v652_v32 = vadd.f32 %v651_v24, %v5814_v54  ;;  %v653_v33 = vpop.f32.mrb[15].mxu1 }
 0x15f   :  { %v541_v34 = vadd.f32 %v540_v30, %v5823_v63  ;;  %v654_v36 = vadd.f32 %v653_v33, %v5817_v56 }
 0x160   :  { %v5881_v37 = vpack.c.bf16 %v539_v27, %v535_v42  ;;  %v5883_v43 = vpack.c.bf16 %v652_v32, %v648_v47 }
 0x161   :  { %v5885_v61 = vpack.c.bf16 %v541_v34, %v537_v60  ;;  %v5887_v35 = vpack.c.bf16 %v654_v36, %v650_v21 }
 0x162   :  { %7330 = vst [vmem:[#allocation27_spill] sm:$0xff] %v5881_v37  ;;  %7331 = vst [vmem:[#allocation28_spill] sm:$0xff] %v5883_v43 }
 0x163   :  { %7332 = vst [vmem:[#allocation29_spill] sm:$0xff] %v5885_v61  ;;  %7333 = vst [vmem:[#allocation30_spill] sm:$0xff] %v5887_v35  ;;  %v544_v1 = vpop.f32.mrb[16].mxu0  ;;  %v657_v7 = vpop.f32.mrb[16].mxu1  ;;  %v1697_v61 = vunpack.c.h.bf16 %v5853_v5 }
 0x164   :  { %v545_v9 = vadd.f32 %v544_v1, %v5820_v57  ;;  %v546_v31 = vpop.f32.mrb[17].mxu0  ;;  %v658_v38 = vadd.f32 %v657_v7, %v5814_v54  ;;  %v659_v46 = vpop.f32.mrb[17].mxu1 }
 0x165   :  { %v547_v51 = vadd.f32 %v546_v31, %v5823_v63  ;;  %v548_v12 = vpop.f32.mrb[18].mxu0  ;;  %v660_v42 = vadd.f32 %v659_v46, %v5817_v56  ;;  %v661_v24 = vpop.f32.mrb[18].mxu1 }
 0x166   :  { %v549_v47 = vadd.f32 %v548_v12, %v5820_v57  ;;  %v550_v60 = vpop.f32.mrb[19].mxu0  ;;  %v662_v21 = vadd.f32 %v661_v24, %v5814_v54  ;;  %v663_v27 = vpop.f32.mrb[19].mxu1 }
 0x167   :  { %v551_v30 = vadd.f32 %v550_v60, %v5823_v63  ;;  %v664_v32 = vadd.f32 %v663_v27, %v5817_v56 }
 0x168   :  { %v5897_v33 = vpack.c.bf16 %v549_v47, %v545_v9  ;;  %v5899_v34 = vpack.c.bf16 %v662_v21, %v658_v38 }
 0x169   :  { %v5901_v36 = vpack.c.bf16 %v551_v30, %v547_v51  ;;  %v5903_v1 = vpack.c.bf16 %v664_v32, %v660_v42 }
 0x16a   :  { %7334 = vst [vmem:[#allocation31_spill] sm:$0xff] %v5897_v33  ;;  %7335 = vst [vmem:[#allocation32_spill] sm:$0xff] %v5899_v34 }
 0x16b   :  { %7336 = vst [vmem:[#allocation33_spill] sm:$0xff] %v5901_v36  ;;  %7337 = vst [vmem:[#allocation34_spill] sm:$0xff] %v5903_v1  ;;  %v554_v7 = vpop.f32.mrb[20].mxu0  ;;  %v667_v31 = vpop.f32.mrb[20].mxu1 }
 0x16c   :  { %v555_v46 = vadd.f32 %v554_v7, %v5820_v57  ;;  %v556_v12 = vpop.f32.mrb[21].mxu0  ;;  %v668_v24 = vadd.f32 %v667_v31, %v5814_v54  ;;  %v669_v0 = vpop.f32.mrb[21].mxu1 }
 0x16d   :  { %v557_v60 = vadd.f32 %v556_v12, %v5823_v63  ;;  %v558_v8 = vpop.f32.mrb[22].mxu0  ;;  %v670_v9 = vadd.f32 %v669_v0, %v5817_v56  ;;  %v671_v47 = vpop.f32.mrb[22].mxu1 }
 0x16e   :  { %v559_v38 = vadd.f32 %v558_v8, %v5820_v57  ;;  %v560_v51 = vpop.f32.mrb[23].mxu0  ;;  %v672_v42 = vadd.f32 %v671_v47, %v5814_v54  ;;  %v673_v21 = vpop.f32.mrb[23].mxu1 }
 0x16f   :  { %v561_v27 = vadd.f32 %v560_v51, %v5823_v63  ;;  %v674_v30 = vadd.f32 %v673_v21, %v5817_v56 }
 0x170   :  { %v5913_v32 = vpack.c.bf16 %v559_v38, %v555_v46  ;;  %v5915_v7 = vpack.c.bf16 %v672_v42, %v668_v24 }
 0x171   :  { %v5917_v31 = vpack.c.bf16 %v561_v27, %v557_v60  ;;  %v5919_v12 = vpack.c.bf16 %v674_v30, %v670_v9 }
 0x172   :  { %7338 = vst [vmem:[#allocation35_spill] sm:$0xff] %v5913_v32  ;;  %7339 = vst [vmem:[#allocation36_spill] sm:$0xff] %v5915_v7 }
 0x173   :  { %7340 = vst [vmem:[#allocation37_spill] sm:$0xff] %v5917_v31  ;;  %7341 = vst [vmem:[#allocation38_spill] sm:$0xff] %v5919_v12  ;;  %v564_v0 = vpop.f32.mrb[24].mxu0  ;;  %v677_v58 = vpop.f32.mrb[24].mxu1 }
 0x174   :  { %v565_v8 = vadd.f32 %v564_v0, %v5820_v57  ;;  %v566_v6 = vpop.f32.mrb[25].mxu0  ;;  %v678_v47 = vadd.f32 %v677_v58, %v5814_v54  ;;  %v679_v29 = vpop.f32.mrb[25].mxu1 }
 0x175   :  { %v567_v51 = vadd.f32 %v566_v6, %v5823_v63  ;;  %v568_v35 = vpop.f32.mrb[26].mxu0  ;;  %v680_v46 = vadd.f32 %v679_v29, %v5817_v56  ;;  %v681_v38 = vpop.f32.mrb[26].mxu1 }
 0x176   :  { %v569_v24 = vadd.f32 %v568_v35, %v5820_v57  ;;  %v570_v60 = vpop.f32.mrb[27].mxu0  ;;  %v682_v9 = vadd.f32 %v681_v38, %v5814_v54  ;;  %v683_v42 = vpop.f32.mrb[27].mxu1 }
 0x177   :  { %v571_v21 = vadd.f32 %v570_v60, %v5823_v63  ;;  %v684_v27 = vadd.f32 %v683_v42, %v5817_v56  ;;  %v170_v60 = vsub.s32 4, %v5802_v39 }
 0x178   :  { %v5929_v30 = vpack.c.bf16 %v569_v24, %v565_v8  ;;  %v5931_v58 = vpack.c.bf16 %v682_v9, %v678_v47 }
 0x179   :  { %v5933_v0 = vpack.c.bf16 %v571_v21, %v567_v51  ;;  %v5935_v6 = vpack.c.bf16 %v684_v27, %v680_v46  ;;  %v174_v51 = vsub.s32 5, %v5802_v39 }
 0x17a   :  { %7342 = vst [vmem:[#allocation39_spill] sm:$0xff] %v5929_v30  ;;  %7343 = vst [vmem:[#allocation40_spill] sm:$0xff] %v5931_v58 }
 0x17b   :  { %7344 = vst [vmem:[#allocation41_spill] sm:$0xff] %v5933_v0  ;;  %v574_v29 = vpop.f32.mrb[28].mxu0  ;;  %v687_v7 = vpop.f32.mrb[28].mxu1 }
 0x17c   :  { %v575_v35 = vadd.f32 %v574_v29, %v5820_v57  ;;  %v576_v31 = vpop.f32.mrb[29].mxu0  ;;  %v688_v38 = vadd.f32 %v687_v7, %v5814_v54  ;;  %v689_v32 = vpop.f32.mrb[29].mxu1 }
 0x17d   :  { %v577_v42 = vadd.f32 %v576_v31, %v5823_v63  ;;  %v578_v8 = vpop.f32.mrb[30].mxu0  ;;  %v690_v47 = vadd.f32 %v689_v32, %v5817_v56  ;;  %v691_v24 = vpop.f32.mrb[30].mxu1  ;;  %v5952_v31 = vrot.slane %v5810_v48, %v170_v60  ;;  %v1208_v60 = vunpack.c.h.bf16 %v5833_v44 }
 0x17e   :  { %v579_v46 = vadd.f32 %v578_v8, %v5820_v57  ;;  %v580_v9 = vpop.f32.mrb[31].mxu0  ;;  %v692_v21 = vadd.f32 %v691_v24, %v5814_v54  ;;  %v693_v27 = vpop.f32.mrb[31].mxu1  ;;  %v5959_v57 = vrot.slane %v5810_v48, %v174_v51  ;;  %v1205_v54 = vunpack.c.l.bf16 %v5833_v44 }
 0x17f   :  { %v581_v29 = vadd.f32 %v580_v9, %v5823_v63  ;;  %v694_v7 = vadd.f32 %v693_v27, %v5817_v56  ;;  %v1206_v56 = vunpack.c.l.bf16 %v5837_v52  ;;  %v1209_v48 = vunpack.c.h.bf16 %v5837_v52 }
 0x180   :  { %v5947_v58 = vpack.c.bf16 %v579_v46, %v575_v35  ;;  %v5949_v0 = vpack.c.bf16 %v692_v21, %v688_v38 }
 0x181   :  { %v5954_v32 = vpack.c.bf16 %v581_v29, %v577_v42  ;;  %v5956_v39 = vpack.c.bf16 %v694_v7, %v690_v47 }
 0x182   :  { %7345 = vst [vmem:[#allocation42_spill] sm:$0xff] %v5947_v58  ;;  %7346 = vst [vmem:[#allocation43_spill] sm:$0xff] %v5949_v0 }
 0x183   :  { %7347 = vst [vmem:[#allocation44_spill] sm:$0xff] %v5954_v32  ;;  %v730_v8 = vpop.f32.mrb[32].mxu0  ;;  %v1155_v63 = vpop.f32.mrb[32].mxu1 }
 0x184   :  { %v731_v35 = vadd.f32 %v730_v8, %v5952_v31  ;;  %v1211_v38 = vadd.f32 %v1205_v54, %v1155_v63  ;;  %v732_v24 = vpop.f32.mrb[33].mxu0  ;;  %v1157_v46 = vpop.f32.mrb[33].mxu1 }
 0x185   :  { %v733_v42 = vadd.f32 %v732_v24, %v5959_v57  ;;  %v1225_v47 = vadd.f32 %v1206_v56, %v1157_v46  ;;  %v734_v9 = vpop.f32.mrb[34].mxu0  ;;  %v1159_v21 = vpop.f32.mrb[34].mxu1 }
 0x186   :  { %v4031_v51 = vmul.f32 -1.442695, %v1211_v38  ;;  %v735_v27 = vadd.f32 %v734_v9, %v5952_v31  ;;  %v1212_v29 = vadd.f32 %v1208_v60, %v1159_v21  ;;  %v736_v7 = vpop.f32.mrb[35].mxu0  ;;  %v1161_v0 = vpop.f32.mrb[35].mxu1 }
 0x187   :  { %v737_v8 = vadd.f32 %v736_v7, %v5959_v57  ;;  %v1226_v54 = vadd.f32 %v1209_v48, %v1161_v0 }
 0x188   :  { %v5969_v63 = vpack.c.bf16 %v735_v27, %v731_v35  ;;  %v4032_v32 = vmul.f32 -1.442695, %v1212_v29  ;;  %4812 = vpow2.f32 %v4031_v51  ;;  %v4033_v35 = vmul.f32 -1.442695, %v1225_v47 }
 0x189   :  { %v5971_v44 = vpack.c.bf16 %v737_v8, %v733_v42  ;;  %v4034_v42 = vmul.f32 -1.442695, %v1226_v54 }
 0x18a   :  { %7348 = vst [vmem:[#allocation45_spill] sm:$0xff] %v5969_v63  ;;  %4814 = vpow2.f32 %v4032_v32 }
 0x18b   :  { %7349 = vst [vmem:[#allocation46_spill] sm:$0xff] %v5971_v44  ;;  %v740_v56 = vpop.f32.mrb[36].mxu0  ;;  %4816 = vpow2.f32 %v4033_v35 }
 0x18c   :  { %v741_v24 = vadd.f32 %v740_v56, %v5952_v31  ;;  %v742_v52 = vpop.f32.mrb[37].mxu0  ;;  %4818 = vpow2.f32 %v4034_v42 }
 0x18d   :  { %v743_v38 = vadd.f32 %v742_v52, %v5959_v57  ;;  %v744_v46 = vpop.f32.mrb[38].mxu0 }
 0x18e   :  { %v745_v60 = vadd.f32 %v744_v46, %v5952_v31  ;;  %v746_v9 = vpop.f32.mrb[39].mxu0 }
 0x18f   :  { %v747_v21 = vadd.f32 %v746_v9, %v5959_v57 }
 0x190   :  { %v5977_v0 = vpack.c.bf16 %v745_v60, %v741_v24 }
 0x191   :  { %v5979_v48 = vpack.c.bf16 %v747_v21, %v743_v38 }
 0x192   :  { %7350 = vst [vmem:[#allocation47_spill] sm:$0xff] %v5977_v0  ;;  %v4813_v27 = vpop.eup %4812 }
 0x193   :  { %7351 = vst [vmem:[#allocation48_spill] sm:$0xff] %v5979_v48  ;;  %v750_v51 = vpop.f32.mrb[40].mxu0  ;;  %v1219_v9 = vadd.f32 1.0, %v4813_v27 }
 0x194   :  { %v751_v32 = vadd.f32 %v750_v51, %v5952_v31  ;;  %v752_v29 = vpop.f32.mrb[41].mxu0  ;;  %v4815_v56 = vpop.eup %4814 }
 0x195   :  { %v753_v7 = vadd.f32 %v752_v29, %v5959_v57  ;;  %v754_v8 = vpop.f32.mrb[42].mxu0  ;;  %v1220_v54 = vadd.f32 1.0, %v4815_v56  ;;  %4820 = vrcp.f32 %v1219_v9  ;;  %v4817_v42 = vpop.eup %4816 }
 0x196   :  { %v755_v52 = vadd.f32 %v754_v8, %v5952_v31  ;;  %v756_v46 = vpop.f32.mrb[43].mxu0  ;;  %v4819_v56 = vpop.eup %4818  ;;  %v1233_v9 = vadd.f32 1.0, %v4817_v42 }
 0x197   :  { %v757_v47 = vadd.f32 %v756_v46, %v5959_v57  ;;  %4822 = vrcp.f32 %v1220_v54 }
 0x198   :  { %v5985_v24 = vpack.c.bf16 %v755_v52, %v751_v32  ;;  %v6000_v52 = vld [vmem:[%s7206_s6] ss:$0 sm:$0xff]  ;;  %4824 = vrcp.f32 %v1233_v9 }
 0x199   :  { %v5987_v38 = vpack.c.bf16 %v757_v47, %v753_v7 }
 0x19a   :  { %7352 = vst [vmem:[#allocation49_spill] sm:$0xff] %v5985_v24 }
 0x19b   :  { %7353 = vst [vmem:[#allocation50_spill] sm:$0xff] %v5987_v38  ;;  %v760_v60 = vpop.f32.mrb[44].mxu0 }
 0x19c   :  { %v761_v21 = vadd.f32 %v760_v60, %v5952_v31  ;;  %v762_v35 = vpop.f32.mrb[45].mxu0  ;;  %v1234_v60 = vadd.f32 1.0, %v4819_v56 }
 0x19d   :  { %v763_v51 = vadd.f32 %v762_v35, %v5959_v57  ;;  %v764_v29 = vpop.f32.mrb[46].mxu0 }
 0x19e   :  { %v765_v8 = vadd.f32 %v764_v29, %v5952_v31  ;;  %v766_v27 = vpop.f32.mrb[47].mxu0  ;;  %4826 = vrcp.f32 %v1234_v60  ;;  %v6018_v60 = vpop.permute.xlu0 %1266 }
 0x19f   :  { %v767_v46 = vadd.f32 %v766_v27, %v5959_v57  ;;  %7358 = vst [vmem:[#allocation55_spill] sm:$0xff] %v6018_v60  ;;  %vm1271_vm1 = vcmp.eq.s32.totalorder %v6018_v60, 1 }
 0x1a0   :  { %v5993_v32 = vpack.c.bf16 %v765_v8, %v761_v21  ;;  %v4821_v21 = vpop.eup %4820  ;;  %v1207_v8 = vunpack.c.l.bf16 %v5835_v50 }
 0x1a1   :  { %v5995_v7 = vpack.c.bf16 %v767_v46, %v763_v51 }
 0x1a2   :  { %7354 = vst [vmem:[#allocation51_spill] sm:$0xff] %v5993_v32 }
 0x1a3   :  { %7355 = vst [vmem:[#allocation52_spill] sm:$0xff] %v5995_v7  ;;  %v1198_v47 = vpop.f32.mrb[36].mxu1  ;;  %v770_v54 = vpop.f32.mrb[48].mxu0 }
 0x1a4   :  { %v1245_v35 = vadd.f32 %v6000_v52, %v1198_v47  ;;  %v771_v29 = vadd.f32 %v770_v54, %v5952_v31  ;;  %v4347_v44 = vpop.f32.mrb[37].mxu1  ;;  %v772_v27 = vpop.f32.mrb[49].mxu0  ;;  %v1210_v54 = vunpack.c.h.bf16 %v5835_v50 }
 0x1a5   :  { %v773_v51 = vadd.f32 %v772_v27, %v5959_v57  ;;  %v1201_v46 = vpop.f32.mrb[38].mxu1  ;;  %v774_v63 = vpop.f32.mrb[50].mxu0 }
 0x1a6   :  { %v1247_v58 = vmul.f32 %v4821_v21, %v1245_v35  ;;  %v1246_v42 = vadd.f32 %v6000_v52, %v1201_v46  ;;  %v775_v48 = vadd.f32 %v774_v63, %v5952_v31  ;;  %v776_v56 = vpop.f32.mrb[51].mxu0  ;;  %v4348_v0 = vpop.f32.mrb[39].mxu1 }
 0x1a7   :  { %v4823_v47 = vpop.eup %4822  ;;  %v777_v44 = vadd.f32 %v776_v56, %v5959_v57 }
 0x1a8   :  { %v1249_v30 = vadd.f32 %v1247_v58, %v1207_v8  ;;  %v1248_v38 = vmul.f32 %v4823_v47, %v1246_v42  ;;  %v6010_v24 = vpack.c.bf16 %v775_v48, %v771_v29  ;;  %v4825_v48 = vpop.eup %4824 }
 0x1a9   :  { %v6012_v27 = vpack.c.bf16 %v777_v44, %v773_v51  ;;  %v1253_v51 = vsub.f32 1.0, %v4825_v48 }
 0x1aa   :  { %7356 = vst [vmem:[#allocation53_spill] sm:$0xff] %v6010_v24  ;;  %4828 = vtanh.f32 %v1249_v30  ;;  %v1250_v9 = vadd.f32 %v1248_v38, %v1210_v54  ;;  %v4827_v38 = vpop.eup %4826 }
 0x1ab   :  { %7357 = vst [vmem:[#allocation54_spill] sm:$0xff] %v6012_v27  ;;  %v780_v35 = vpop.f32.mrb[52].mxu0  ;;  %v1696_v27 = vunpack.c.h.bf16 %v5849_v2 }
 0x1ac   :  { %4830 = vtanh.f32 %v1250_v9  ;;  %v781_v63 = vadd.f32 %v780_v35, %v5952_v31  ;;  %v782_v21 = vpop.f32.mrb[53].mxu0  ;;  %v1257_v9 = vmul.f32 %v4825_v48, %v5615_v18 }
 0x1ad   :  { %v783_v0 = vadd.f32 %v782_v21, %v5959_v57  ;;  %v784_v46 = vpop.f32.mrb[54].mxu0 }
 0x1ae   :  { %v785_v50 = vadd.f32 %v784_v46, %v5952_v31  ;;  %v786_v56 = vpop.f32.mrb[55].mxu0  ;;  %v6027_v46 = vpop.permute.xlu0 %1269 }
 0x1af   :  { %v787_v58 = vadd.f32 %v786_v56, %v5959_v57  ;;  %7361 = vst [vmem:[#allocation58_spill] sm:$0xff] %v6027_v46  ;;  %v1254_v56 = vsub.f32 1.0, %v4827_v38  ;;  %vm7293_vm2 = vcmp.eq.s32.totalorder %v6027_v46, 1 }
 0x1b0   :  { %v6020_v29 = vpack.c.bf16 %v785_v50, %v781_v63 }
 0x1b1   :  { %v6022_v30 = vpack.c.bf16 %v787_v58, %v783_v0 }
 0x1b2   :  { %7359 = vst [vmem:[#allocation56_spill] sm:$0xff] %v6020_v29 }
 0x1b3   :  { %7360 = vst [vmem:[#allocation57_spill] sm:$0xff] %v6022_v30  ;;  %v790_v8 = vpop.f32.mrb[56].mxu0 }
 0x1b4   :  { %v4829_v42 = vpop.eup %4828  ;;  %v791_v47 = vadd.f32 %v790_v8, %v5952_v31  ;;  %v792_v54 = vpop.f32.mrb[57].mxu0 }
 0x1b5   :  { %v1255_v44 = vmul.f32 %v4829_v42, %v1253_v51  ;;  %v793_v35 = vadd.f32 %v792_v54, %v5959_v57  ;;  %v794_v21 = vpop.f32.mrb[58].mxu0  ;;  %v1258_v51 = vmul.f32 %v4827_v38, %v5617_v19 }
 0x1b6   :  { %v4831_v63 = vpop.eup %4830  ;;  %v795_v0 = vadd.f32 %v794_v21, %v5952_v31  ;;  %v796_v50 = vpop.f32.mrb[59].mxu0 }
 0x1b7   :  { %v1259_v58 = vadd.f32 %v1257_v9, %v1255_v44  ;;  %v797_v7 = vadd.f32 %v796_v50, %v5959_v57  ;;  %v1256_v8 = vmul.f32 %v4831_v63, %v1254_v56  ;;  %v7362_v50 = vmov 0.0  }
 0x1b8   :  { %v6033_v42 = vpack.c.bf16 %v795_v0, %v791_v47 }
 0x1b9   :  { %v1277_v48 = vsel %vm1271_vm1, %v1259_v58, 0.0  ;;  %v6038_v54 = vpack.c.bf16 %v797_v7, %v793_v35  ;;  %v1260_v32 = vadd.f32 %v1258_v51, %v1256_v8  ;;  %v6043_v44 = vsel %vm1271_vm1, %v1259_v58, %v5615_v18 }
 0x1ba   :  { %v4153_v34 = vpack.c.bf16 %v1277_v48, %v1277_v48  ;;  %v7363_v8 = vmov 0  }
 0x1bb   :  { %v6048_v38 = vsel %vm7293_vm2, %v1260_v32, %v5617_v19  ;;  %v1278_v47 = vsel %vm7293_vm2, %v1260_v32, 0.0  ;;  %v800_v9 = vpop.f32.mrb[60].mxu0 }
 0x1bc   :  { %1290 = vst [vmem:[#allocation13] sm:$0xf] %v4153_v34  ;;  %v4154_v21 = vpack.c.bf16 %v1278_v47, %v1278_v47  ;;  %v1608_v7 = vpack.c.bf16 %v6048_v38, %v6043_v44  ;;  %v802_v35 = vpop.f32.mrb[61].mxu0  ;;  %v801_v18 = vadd.f32 %v800_v9, %v5952_v31 }
 0x1bd   :  { %v804_v56 = vpop.f32.mrb[62].mxu0  ;;  %v803_v0 = vadd.f32 %v802_v35, %v5959_v57 }
 0x1be   :  { %1291 = vst [vmem:[#allocation13 + $0x8] sm:$0xf] %v4154_v21  ;;  %v805_v63 = vadd.f32 %v804_v56, %v5952_v31  ;;  %1642 = vmatmul.mubr.bf16.vlgmr.msra.gmra.mrb[68].mxu0 %v1608_v7  ;;  %4386 = vmatmul.mubr.bf16.vlgmr.msra.gmra.mrb[44].mxu1 %v1608_v7  ;;  %v806_v19 = vpop.f32.mrb[63].mxu0  ;;  %v1513_v31 = vunpack.c.l.bf16 %v5956_v39 }
 0x1bf   :  { %v807_v32 = vadd.f32 %v806_v19, %v5959_v57  ;;  %1784 = vmatpush1.bf16.msra.mxu0 %v5625_v22  ;;  %4390 = vmatpush3.bf16.msra.mxu1 %v5696_v55  ;;  %v1516_v55 = vunpack.c.h.bf16 %v5956_v39 }
 0x1c0   :  { %v855_v34 = vpack.c.bf16 %v805_v63, %v801_v18  ;;  %1785 = vmatprep.subr.bf16.mxu0 %v5627_v23  ;;  %4391 = vmatprep.subr.bf16.mxu1 %v7362_v50 }
 0x1c1   :  { %v6062_v58 = vpack.c.bf16 %v807_v32, %v803_v0  ;;  %1815 = vmatprep.mubr.bf16.mxu0 %v7363_v8  ;;  %4405 = vmatprep.mubr.msk.bf16.mxu1 %vm5394_vm4, %v7362_v50  ;;  %v6075_v0 = vld [vmem:[#allocation11 + $0xf0] ss:$12 sps:$4 sm:$0xff]   ;;  %v6083_v32 = vld [vmem:[#allocation11 + $0x108] ss:$12 sps:$4 sm:$0xff]  }
 0x1c2   :  { %v1514_v51 = vunpack.c.l.bf16 %v855_v34  ;;  %v1517_v7 = vunpack.c.h.bf16 %v855_v34  ;;  %v6087_v34 = vld [vmem:[#allocation11 + $0x124] ss:$12 sps:$4 sm:$0xff]  }
 0x1c3   :  { %v1463_v57 = vpop.f32.mrb[64].mxu0  ;;  %v6068_v48 = vpop.f32.mrb[40].mxu1  ;;  %1786 = vmatpush1.bf16.msra.mxu0 %v5635_v25  ;;  %4392 = vmatpush3.bf16.msra.mxu1 %v5707_v59 }
 0x1c4   :  { %v1519_v22 = vadd.f32 %v1513_v31, %v1463_v57  ;;  %v1465_v23 = vpop.f32.mrb[65].mxu0  ;;  %v4367_v47 = vpop.f32.mrb[41].mxu1  ;;  %1787 = vmatprep.subr.bf16.mxu0 %v5639_v26  ;;  %4393 = vmatprep.subr.bf16.mxu1 %v7362_v50  ;;  %v6079_v26 = vld [vmem:[#allocation11 + $0x10c] ss:$12 sps:$4 sm:$0xff]  }
 0x1c5   :  { %v1533_v9 = vadd.f32 %v1514_v51, %v1465_v23  ;;  %v1467_v21 = vpop.f32.mrb[66].mxu0  ;;  %v1509_v35 = vpop.f32.mrb[42].mxu1  ;;  %v6091_v31 = vld [vmem:[#allocation11 + $0x120] ss:$12 sps:$4 sm:$0xff]   ;;  %v6095_v51 = vld [vmem:[#allocation11 + $0x13c] ss:$12 sps:$4 sm:$0xff]   ;;  %v1515_v47 = vunpack.c.l.bf16 %v6062_v58 }
 0x1c6   :  { %v4062_v56 = vmul.f32 -1.442695, %v1519_v22  ;;  %v1520_v18 = vadd.f32 %v1516_v55, %v1467_v21  ;;  %v1469_v63 = vpop.f32.mrb[67].mxu0  ;;  %v4368_v19 = vpop.f32.mrb[43].mxu1  ;;  %7364 = vst [vmem:[#allocation59_spill] sm:$0xff] %v6095_v51 }
 0x1c7   :  { %v1534_v25 = vadd.f32 %v1517_v7, %v1469_v63  ;;  %1788 = vmatpush1.bf16.msra.mxu0 %v6075_v0  ;;  %4394 = vmatpush3.bf16.msra.mxu1 %v5716_v62  ;;  %v4064_v39 = vmul.f32 -1.442695, %v1533_v9 }
 0x1c8   :  { %4832 = vpow2.f32 %v4062_v56  ;;  %v4063_v59 = vmul.f32 -1.442695, %v1520_v18  ;;  %1789 = vmatprep.subr.bf16.mxu0 %v6079_v26  ;;  %4395 = vmatprep.subr.bf16.mxu1 %v7362_v50 }
 0x1c9   :  { %v4065_v62 = vmul.f32 -1.442695, %v1534_v25  ;;  %v6123_v25 = vpop.permute.xlu1 %1574 }
 0x1ca   :  { %4834 = vpow2.f32 %v4063_v59  ;;  %7366 = vst [vmem:[#allocation61_spill] sm:$0xff] %v6123_v25  ;;  %vm1579_vm3 = vcmp.eq.s32.totalorder %v6123_v25, 1 }
 0x1cb   :  { %1790 = vmatpush1.bf16.msra.mxu0 %v6083_v32  ;;  %4396 = vmatpush3.bf16.msra.mxu1 %v5724_v4  ;;  %4836 = vpow2.f32 %v4064_v39 }
 0x1cc   :  { %1791 = vmatprep.subr.bf16.mxu0 %v6087_v34  ;;  %4397 = vmatprep.subr.bf16.mxu1 %v7362_v50  ;;  %4838 = vpow2.f32 %v4065_v62 }
 0x1cf   :  { %1792 = vmatpush1.bf16.msra.mxu0 %v6091_v31  ;;  %4398 = vmatpush3.bf16.msra.mxu1 %v5730_v10 }
 0x1d0   :  { %1793 = vmatprep.subr.bf16.mxu0 %v6095_v51  ;;  %4399 = vmatprep.subr.bf16.mxu1 %v7362_v50 }
 0x1d2   :  { %v4833_v4 = vpop.eup %4832 }
 0x1d3   :  { %v1527_v57 = vadd.f32 1.0, %v4833_v4  ;;  %1794 = vmatpush1.bf16.msra.mxu0 %v5666_v40  ;;  %4400 = vmatpush3.bf16.msra.mxu1 %v5738_v13  ;;  %v6110_v40 = vld [vmem:[%s7206_s6 + $0x1] ss:$0 sm:$0xff] }
 0x1d4   :  { %v4835_v22 = vpop.eup %4834  ;;  %1795 = vmatprep.subr.bf16.mxu0 %v5668_v41  ;;  %4401 = vmatprep.subr.bf16.mxu1 %v7362_v50 }
 0x1d5   :  { %4840 = vrcp.f32 %v1527_v57  ;;  %v1528_v10 = vadd.f32 1.0, %v4835_v22  ;;  %v4837_v23 = vpop.eup %4836 }
 0x1d6   :  { %v4839_v41 = vpop.eup %4838  ;;  %v1541_v13 = vadd.f32 1.0, %v4837_v23 }
 0x1d7   :  { %4842 = vrcp.f32 %v1528_v10  ;;  %1796 = vmatpush1.bf16.msra.mxu0 %v5677_v45  ;;  %4402 = vmatpush3.bf16.msra.mxu1 %v5744_v15  ;;  %v1553_v45 = vadd.f32 %v6110_v40, %v6068_v48  ;;  %v6116_v15 = vld [vmem:[#allocation11 + $0x4] ss:$12 sps:$4 sm:$0xff]   ;;  %v6128_v10 = vpop.permute.xlu1 %1577 }
 0x1d8   :  { %1797 = vmatprep.subr.bf16.mxu0 %v5680_v49  ;;  %4403 = vmatprep.subr.bf16.mxu1 %v7362_v50  ;;  %7365 = vst [vmem:[#allocation60_spill] sm:$0xff] %v6116_v15  ;;  %v1542_v49 = vadd.f32 1.0, %v4839_v41  ;;  %4844 = vrcp.f32 %v1541_v13  ;;  %7367 = vst [vmem:[#allocation62_spill] sm:$0xff] %v6128_v10  ;;  %vm1580_vm5 = vcmp.eq.s32.totalorder %v6128_v10, 1  ;;  %v1694_v10 = vunpack.c.l.bf16 %v5853_v5 }
 0x1da   :  { %4846 = vrcp.f32 %v1542_v49 }
 0x1db   :  { %1798 = vmatpush1.bf16.msra.mxu0 %v5691_v53  ;;  %4404 = vmatpush3.bf16.msra.mxu1 %v5756_v28  ;;  %v1554_v53 = vadd.f32 %v6110_v40, %v1509_v35  ;;  %v1518_v28 = vunpack.c.h.bf16 %v6062_v58 }
 0x1dc   :  { %1957 = vmatprep.subr.bf16.mxu0 %v6116_v15  ;;  %4409 = vmatprep.subr.bf16.mxu1 %v7362_v50 }
 0x1df   :  { %v4841_v55 = vpop.eup %4840 }
 0x1e0   :  { %v1555_v9 = vmul.f32 %v4841_v55, %v1553_v45 }
 0x1e1   :  { %v4843_v21 = vpop.eup %4842 }
 0x1e2   :  { %v1557_v7 = vadd.f32 %v1555_v9, %v1515_v47  ;;  %v1556_v48 = vmul.f32 %v4843_v21, %v1554_v53  ;;  %v4845_v18 = vpop.eup %4844  ;;  %v6147_v53 = vld [vmem:[#allocation11] ss:$12 sps:$4 sm:$0xff]   ;;  %v6160_v21 = vld [vmem:[#allocation11 + $0x18] ss:$12 sps:$4 sm:$0xff]  }
 0x1e3   :  { %v1561_v19 = vsub.f32 1.0, %v4845_v18  ;;  %v1565_v39 = vmul.f32 %v4845_v18, %v5751_v17  ;;  %v6176_v18 = vld [vmem:[#allocation11 + $0x4c] ss:$12 sps:$4 sm:$0xff]  }
 0x1e4   :  { %4848 = vtanh.f32 %v1557_v7  ;;  %v1558_v56 = vadd.f32 %v1556_v48, %v1518_v28  ;;  %v4847_v63 = vpop.eup %4846  ;;  %v6163_v28 = vld [vmem:[#allocation11 + $0x20] ss:$12 sps:$4 sm:$0xff]   ;;  %v6170_v48 = vld [vmem:[#allocation11 + $0x30] ss:$12 sps:$4 sm:$0xff]  }
 0x1e5   :  { %v1562_v62 = vsub.f32 1.0, %v4847_v63  ;;  %v1566_v57 = vmul.f32 %v4847_v63, %v5753_v20  ;;  %v6166_v7 = vld [vmem:[#allocation11 + $0x34] ss:$12 sps:$4 sm:$0xff]  }
 0x1e6   :  { %4850 = vtanh.f32 %v1558_v56  ;;  %v6173_v56 = vld [vmem:[#allocation11 + $0x38] ss:$12 sps:$4 sm:$0xff]   ;;  %v6180_v63 = vld [vmem:[#allocation11 + $0x48] ss:$12 sps:$4 sm:$0xff]  }
 0x1ee   :  { %v4849_v59 = vpop.eup %4848 }
 0x1ef   :  { %v1563_v4 = vmul.f32 %v4849_v59, %v1561_v19  ;;  %v6183_v19 = vld [vmem:[#allocation11 + $0x50] ss:$12 sps:$4 sm:$0xff]  }
 0x1f0   :  { %v4851_v35 = vpop.eup %4850  ;;  %v6186_v59 = vld [vmem:[#allocation11 + $0x64] ss:$12 sps:$4 sm:$0xff]  }
 0x1f1   :  { %v1564_v58 = vmul.f32 %v4851_v35, %v1562_v62  ;;  %v1567_v22 = vadd.f32 %v1565_v39, %v1563_v4  ;;  %v6190_v39 = vld [vmem:[#allocation11 + $0x60] ss:$12 sps:$4 sm:$0xff]   ;;  %v6193_v62 = vld [vmem:[#allocation11 + $0x68] ss:$12 sps:$4 sm:$0xff]   ;;  %v6200_v35 = vld [vmem:[#allocation11 + $0x78] ss:$12 sps:$4 sm:$0xff]  }
 0x1f2   :  { %v6196_v4 = vld [vmem:[#allocation11 + $0x7c] ss:$12 sps:$4 sm:$0xff]  }
 0x1f3   :  { %v1568_v23 = vadd.f32 %v1566_v57, %v1564_v58  ;;  %v1585_v41 = vsel %vm1579_vm3, %v1567_v22, 0.0  ;;  %v6136_v45 = vsel %vm1579_vm3, %v1567_v22, %v5751_v17  ;;  %v6150_v17 = vld [vmem:[#allocation11 + $0x8] ss:$12 sps:$4 sm:$0xff]   ;;  %v6203_v57 = vld [vmem:[#allocation11 + $0x80] ss:$12 sps:$4 sm:$0xff]  }
 0x1f4   :  { %v4155_v13 = vpack.c.bf16 %v1585_v41, %v1585_v41  ;;  %v6206_v58 = vld [vmem:[#allocation11 + $0x94] ss:$12 sps:$4 sm:$0xff]   ;;  %v6210_v22 = vld [vmem:[#allocation11 + $0x90] ss:$12 sps:$4 sm:$0xff]   ;;  %v6216_v41 = vld [vmem:[#allocation11 + $0xac] ss:$12 sps:$4 sm:$0xff]  }
 0x1f5   :  { %v6141_v49 = vsel %vm1580_vm5, %v1568_v23, %v5753_v20  ;;  %v1586_v55 = vsel %vm1580_vm5, %v1568_v23, 0.0  ;;  %v6153_v20 = vld [vmem:[#allocation11 + $0x1c] ss:$12 sps:$4 sm:$0xff]   ;;  %v6213_v23 = vld [vmem:[#allocation11 + $0x98] ss:$12 sps:$4 sm:$0xff]  }
 0x1f6   :  { %v4156_v47 = vpack.c.bf16 %v1586_v55, %v1586_v55  ;;  %1598 = vst [vmem:[#allocation13 + $0x74] sm:$0xf] %v4155_v13  ;;  %v1782_v9 = vpack.c.bf16 %v6141_v49, %v6136_v45  ;;  %v6220_v13 = vld [vmem:[#allocation11 + $0xa8] ss:$12 sps:$4 sm:$0xff]   ;;  %v6223_v55 = vld [vmem:[#allocation11 + $0xb0] ss:$12 sps:$4 sm:$0xff]  }
 0x1f7   :  { %7368 = vst [vmem:[#allocation63_spill] sm:$0xff] %v6220_v13  ;;  %7369 = vst [vmem:[#allocation64_spill] sm:$0xff] %v6223_v55 }
 0x1f8   :  { %1599 = vst [vmem:[#allocation13 + $0x7c] sm:$0xf] %v4156_v47  ;;  %1816 = vmatmul.mubr.bf16.vlgmr.msra.gmra.mrb[72].mxu0 %v1782_v9  ;;  %4406 = vmatmul.mubr.bf16.vlgmr.msra.gmra.mrb[48].mxu1 %v1782_v9  ;;  %v6226_v47 = vld [vmem:[#allocation11 + $0xc4] ss:$12 sps:$4 sm:$0xff]   ;;  %v1693_v9 = vunpack.c.l.bf16 %v5849_v2 }
 0x1f9   :  { %1958 = vmatpush1.bf16.msra.mxu0 %v6147_v53  ;;  %4410 = vmatpush3.bf16.msra.mxu1 %v6150_v17  ;;  %7370 = vst [vmem:[#allocation65_spill] sm:$0xff] %v6226_v47 }
 0x1fa   :  { %1959 = vmatprep.subr.bf16.mxu0 %v6153_v20  ;;  %4411 = vmatprep.subr.bf16.mxu1 %v7362_v50 }
 0x1fb   :  { %1989 = vmatprep.mubr.bf16.mxu0 %v7363_v8  ;;  %4425 = vmatprep.mubr.msk.bf16.mxu1 %vm5394_vm4, %v7362_v50 }
 0x1fd   :  { %1960 = vmatpush1.bf16.msra.mxu0 %v6160_v21  ;;  %4412 = vmatpush3.bf16.msra.mxu1 %v6163_v28 }
 0x1fe   :  { %1961 = vmatprep.subr.bf16.mxu0 %v6166_v7  ;;  %4413 = vmatprep.subr.bf16.mxu1 %v7362_v50 }
 0x201   :  { %1962 = vmatpush1.bf16.msra.mxu0 %v6170_v48  ;;  %4414 = vmatpush3.bf16.msra.mxu1 %v6173_v56 }
 0x202   :  { %1963 = vmatprep.subr.bf16.mxu0 %v6176_v18  ;;  %4415 = vmatprep.subr.bf16.mxu1 %v7362_v50 }
 0x205   :  { %1964 = vmatpush1.bf16.msra.mxu0 %v6180_v63  ;;  %4416 = vmatpush3.bf16.msra.mxu1 %v6183_v19 }
 0x206   :  { %1965 = vmatprep.subr.bf16.mxu0 %v6186_v59  ;;  %4417 = vmatprep.subr.bf16.mxu1 %v7362_v50 }
 0x209   :  { %1966 = vmatpush1.bf16.msra.mxu0 %v6190_v39  ;;  %4418 = vmatpush3.bf16.msra.mxu1 %v6193_v62 }
 0x20a   :  { %1967 = vmatprep.subr.bf16.mxu0 %v6196_v4  ;;  %4419 = vmatprep.subr.bf16.mxu1 %v7362_v50 }
 0x20d   :  { %1968 = vmatpush1.bf16.msra.mxu0 %v6200_v35  ;;  %4420 = vmatpush3.bf16.msra.mxu1 %v6203_v57 }
 0x20e   :  { %1969 = vmatprep.subr.bf16.mxu0 %v6206_v58  ;;  %4421 = vmatprep.subr.bf16.mxu1 %v7362_v50 }
 0x211   :  { %1970 = vmatpush1.bf16.msra.mxu0 %v6210_v22  ;;  %4422 = vmatpush3.bf16.msra.mxu1 %v6213_v23 }
 0x212   :  { %1971 = vmatprep.subr.bf16.mxu0 %v6216_v41  ;;  %4423 = vmatprep.subr.bf16.mxu1 %v7362_v50 }
 0x215   :  { %1972 = vmatpush1.bf16.msra.mxu0 %v6220_v13  ;;  %4424 = vmatpush3.bf16.msra.mxu1 %v6223_v55 }
 0x216   :  { %2131 = vmatprep.subr.bf16.mxu0 %v6226_v47  ;;  %4429 = vmatprep.subr.bf16.mxu1 %v7362_v50 }
 0x291   :  { %v1643_v46 = vpop.f32.mrb[68].mxu0  ;;  %v1686_v60 = vpop.f32.mrb[44].mxu1 }
 0x292   :  { %v1699_v25 = vadd.f32 %v1693_v9, %v1643_v46  ;;  %v1645_v36 = vpop.f32.mrb[69].mxu0  ;;  %v4387_v33 = vpop.f32.mrb[45].mxu1 }
 0x293   :  { %v1713_v24 = vadd.f32 %v1694_v10, %v1645_v36  ;;  %v1647_v1 = vpop.f32.mrb[70].mxu0  ;;  %v1689_v43 = vpop.f32.mrb[46].mxu1 }
 0x294   :  { %v4069_v37 = vmul.f32 -1.442695, %v1699_v25  ;;  %v1700_v30 = vadd.f32 %v1696_v27, %v1647_v1  ;;  %v1649_v29 = vpop.f32.mrb[71].mxu0  ;;  %v4388_v12 = vpop.f32.mrb[47].mxu1  ;;  %v1727_v1 = vadd.f32 %v6000_v52, %v1686_v60 }
 0x295   :  { %v1714_v11 = vadd.f32 %v1697_v61, %v1649_v29  ;;  %v4071_v14 = vmul.f32 -1.442695, %v1713_v24  ;;  %v1698_v24 = vunpack.c.h.bf16 %v5851_v3 }
 0x296   :  { %4852 = vpow2.f32 %v4069_v37  ;;  %v4070_v16 = vmul.f32 -1.442695, %v1700_v30  ;;  %v1695_v37 = vunpack.c.l.bf16 %v5851_v3 }
 0x297   :  { %v4072_v47 = vmul.f32 -1.442695, %v1714_v11 }
 0x298   :  { %4854 = vpow2.f32 %v4070_v16 }
 0x299   :  { %4856 = vpow2.f32 %v4071_v14  ;;  %v1728_v14 = vadd.f32 %v6000_v52, %v1689_v43 }
 0x29a   :  { %4858 = vpow2.f32 %v4072_v47 }
 0x2a0   :  { %v4853_v33 = vpop.eup %4852 }
 0x2a1   :  { %v1707_v46 = vadd.f32 1.0, %v4853_v33 }
 0x2a2   :  { %v4855_v2 = vpop.eup %4854 }
 0x2a3   :  { %4860 = vrcp.f32 %v1707_v46  ;;  %v1708_v36 = vadd.f32 1.0, %v4855_v2  ;;  %v4857_v10 = vpop.eup %4856 }
 0x2a4   :  { %v4859_v5 = vpop.eup %4858  ;;  %v1721_v25 = vadd.f32 1.0, %v4857_v10 }
 0x2a5   :  { %4862 = vrcp.f32 %v1708_v36  ;;  %v1722_v12 = vadd.f32 1.0, %v4859_v5  ;;  %v6239_v5 = vpop.permute.xlu0 %1748 }
 0x2a6   :  { %4864 = vrcp.f32 %v1721_v25  ;;  %7371 = vst [vmem:[#allocation66_spill] sm:$0xff] %v6239_v5  ;;  %vm1753_vm6 = vcmp.eq.s32.totalorder %v6239_v5, 1 }
 0x2a7   :  { %4866 = vrcp.f32 %v1722_v12 }
 0x2ad   :  { %v4861_v61 = vpop.eup %4860 }
 0x2ae   :  { %v1729_v16 = vmul.f32 %v4861_v61, %v1727_v1  ;;  %v6243_v1 = vpop.permute.xlu1 %1751 }
 0x2af   :  { %v4863_v11 = vpop.eup %4862  ;;  %7372 = vst [vmem:[#allocation67_spill] sm:$0xff] %v6243_v1  ;;  %vm1754_vm7 = vcmp.eq.s32.totalorder %v6243_v1, 1 }
 0x2b0   :  { %v1731_v27 = vadd.f32 %v1729_v16, %v1695_v37  ;;  %v1730_v29 = vmul.f32 %v4863_v11, %v1728_v14  ;;  %v4865_v47 = vpop.eup %4864 }
 0x2b1   :  { %v4867_v9 = vpop.eup %4866  ;;  %v1735_v60 = vsub.f32 1.0, %v4865_v47  ;;  %v1739_v46 = vmul.f32 %v4865_v47, %v6043_v44 }
 0x2b2   :  { %4868 = vtanh.f32 %v1731_v27  ;;  %v1732_v30 = vadd.f32 %v1730_v29, %v1698_v24  ;;  %v1736_v2 = vsub.f32 1.0, %v4867_v9  ;;  %v1740_v43 = vmul.f32 %v4867_v9, %v6048_v38  ;;  %v6262_v29 = vld [vmem:[#allocation11 + $0xc0] ss:$12 sps:$4 sm:$0xff]  }
 0x2b4   :  { %4870 = vtanh.f32 %v1732_v30  ;;  %v1867_v30 = vunpack.c.l.bf16 %v5935_v6 }
 0x2bc   :  { %v4869_v33 = vpop.eup %4868 }
 0x2bd   :  { %v1737_v36 = vmul.f32 %v4869_v33, %v1735_v60  ;;  %v1868_v60 = vunpack.c.l.bf16 %v6033_v42  ;;  %v6279_v33 = vld [vmem:[#allocation11 + $0xd8] ss:$12 sps:$4 sm:$0xff]  }
 0x2be   :  { %v4871_v10 = vpop.eup %4870 }
 0x2bf   :  { %v1738_v3 = vmul.f32 %v4871_v10, %v1736_v2  ;;  %v1741_v25 = vadd.f32 %v1739_v46, %v1737_v36  ;;  %v6282_v46 = vld [vmem:[#allocation11 + $0xe0] ss:$12 sps:$4 sm:$0xff]  }
 0x2c1   :  { %v1742_v12 = vadd.f32 %v1740_v43, %v1738_v3  ;;  %v1759_v61 = vsel %vm1753_vm6, %v1741_v25, 0.0  ;;  %v6251_v16 = vsel %vm1753_vm6, %v1741_v25, %v6043_v44  ;;  %v6265_v44 = vld [vmem:[#allocation11 + $0xc8] ss:$12 sps:$4 sm:$0xff]   ;;  %v1870_v43 = vunpack.c.h.bf16 %v5935_v6  ;;  %v6294_v6 = vld [vmem:[#allocation11 + $0xf8] ss:$12 sps:$4 sm:$0xff]  }
 0x2c2   :  { %v4157_v37 = vpack.c.bf16 %v1759_v61, %v1759_v61  ;;  %v6286_v3 = vld [vmem:[#allocation11 + $0xf4] ss:$12 sps:$4 sm:$0xff]  }
 0x2c3   :  { %v6256_v14 = vsel %vm1754_vm7, %v1742_v12, %v6048_v38  ;;  %v1760_v11 = vsel %vm1754_vm7, %v1742_v12, 0.0  ;;  %v6268_v38 = vld [vmem:[#allocation11 + $0xdc] ss:$12 sps:$4 sm:$0xff]  }
 0x2c4   :  { %v4158_v24 = vpack.c.bf16 %v1760_v11, %v1760_v11  ;;  %1772 = vst [vmem:[#allocation13 + $0x10] sm:$0xf] %v4157_v37  ;;  %v1956_v27 = vpack.c.bf16 %v6256_v14, %v6251_v16  ;;  %v1871_v37 = vunpack.c.h.bf16 %v6033_v42  ;;  %v6300_v42 = vld [vmem:[#allocation11 + $0x110] ss:$12 sps:$4 sm:$0xff]  }
 0x2c6   :  { %1773 = vst [vmem:[#allocation13 + $0x18] sm:$0xf] %v4158_v24  ;;  %1990 = vmatmul.mubr.bf16.vlgmr.msra.gmra.mrb[76].mxu0 %v1956_v27  ;;  %4426 = vmatmul.mubr.bf16.vlgmr.msra.gmra.mrb[52].mxu1 %v1956_v27 }
 0x2c7   :  { %2132 = vmatpush1.bf16.msra.mxu0 %v6262_v29  ;;  %4430 = vmatpush3.bf16.msra.mxu1 %v6265_v44 }
 0x2c8   :  { %2133 = vmatprep.subr.bf16.mxu0 %v6268_v38  ;;  %4431 = vmatprep.subr.bf16.mxu1 %v7362_v50 }
 0x2c9   :  { %2163 = vmatprep.mubr.bf16.mxu0 %v7363_v8  ;;  %4445 = vmatprep.mubr.msk.bf16.mxu1 %vm5394_vm4, %v7362_v50 }
 0x2cb   :  { %v1817_v47 = vpop.f32.mrb[72].mxu0  ;;  %v6276_v9 = vpop.f32.mrb[48].mxu1  ;;  %2134 = vmatpush1.bf16.msra.mxu0 %v6279_v33  ;;  %4432 = vmatpush3.bf16.msra.mxu1 %v6282_v46 }
 0x2cc   :  { %v1873_v2 = vadd.f32 %v1867_v30, %v1817_v47  ;;  %v1819_v36 = vpop.f32.mrb[73].mxu0  ;;  %v4407_v10 = vpop.f32.mrb[49].mxu1  ;;  %2135 = vmatprep.subr.bf16.mxu0 %v6286_v3  ;;  %4433 = vmatprep.subr.bf16.mxu1 %v7362_v50 }
 0x2cd   :  { %v1887_v25 = vadd.f32 %v1868_v60, %v1819_v36  ;;  %v1821_v12 = vpop.f32.mrb[74].mxu0  ;;  %v6290_v61 = vpop.f32.mrb[50].mxu1  ;;  %v6306_v36 = vld [vmem:[#allocation11 + $0x128] ss:$12 sps:$4 sm:$0xff]  }
 0x2ce   :  { %v4075_v11 = vmul.f32 -1.442695, %v1873_v2  ;;  %v1874_v24 = vadd.f32 %v1870_v43, %v1821_v12  ;;  %v1823_v27 = vpop.f32.mrb[75].mxu0  ;;  %v4408_v30 = vpop.f32.mrb[51].mxu1  ;;  %7373 = vst [vmem:[#allocation68_spill] sm:$0xff] %v6306_v36 }
 0x2cf   :  { %v1888_v47 = vadd.f32 %v1871_v37, %v1823_v27  ;;  %2136 = vmatpush1.bf16.msra.mxu0 %v6075_v0  ;;  %4434 = vmatpush3.bf16.msra.mxu1 %v6294_v6  ;;  %v4077_v60 = vmul.f32 -1.442695, %v1887_v25  ;;  %v6311_v12 = vld [vmem:[#allocation11 + $0x138] ss:$12 sps:$4 sm:$0xff]   ;;  %v6314_v37 = vld [vmem:[#allocation11 + $0x140] ss:$12 sps:$4 sm:$0xff]  }
 0x2d0   :  { %4872 = vpow2.f32 %v4075_v11  ;;  %v4076_v10 = vmul.f32 -1.442695, %v1874_v24  ;;  %2137 = vmatprep.subr.bf16.mxu0 %v6079_v26  ;;  %4435 = vmatprep.subr.bf16.mxu1 %v7362_v50  ;;  %7374 = vst [vmem:[#allocation69_spill] sm:$0xff] %v6311_v12  ;;  %7375 = vst [vmem:[#allocation70_spill] sm:$0xff] %v6314_v37  ;;  %v6317_v24 = vld [vmem:[#allocation11 + $0x154] ss:$12 sps:$4 sm:$0xff]  }
 0x2d1   :  { %v4078_v2 = vmul.f32 -1.442695, %v1888_v47  ;;  %7376 = vst [vmem:[#allocation71_spill] sm:$0xff] %v6317_v24  ;;  %v6321_v30 = vld [vmem:[#allocation11 + $0x150] ss:$12 sps:$4 sm:$0xff]  }
 0x2d2   :  { %4874 = vpow2.f32 %v4076_v10  ;;  %7377 = vst [vmem:[#allocation72_spill] sm:$0xff] %v6321_v30  ;;  %v6324_v47 = vld [vmem:[#allocation11 + $0x158] ss:$12 sps:$4 sm:$0xff]  }
 0x2d3   :  { %2138 = vmatpush1.bf16.msra.mxu0 %v6083_v32  ;;  %4436 = vmatpush3.bf16.msra.mxu1 %v6300_v42  ;;  %4876 = vpow2.f32 %v4077_v60  ;;  %7378 = vst [vmem:[#allocation73_spill] sm:$0xff] %v6324_v47  ;;  %v6327_v10 = vld [vmem:[#allocation11 + $0x16c] ss:$12 sps:$4 sm:$0xff]  }
 0x2d4   :  { %2139 = vmatprep.subr.bf16.mxu0 %v6087_v34  ;;  %4437 = vmatprep.subr.bf16.mxu1 %v7362_v50  ;;  %4878 = vpow2.f32 %v4078_v2  ;;  %7379 = vst [vmem:[#allocation74_spill] sm:$0xff] %v6327_v10 }
 0x2d7   :  { %2140 = vmatpush1.bf16.msra.mxu0 %v6091_v31  ;;  %4438 = vmatpush3.bf16.msra.mxu1 %v6306_v36  ;;  %v6346_v36 = vpop.permute.xlu0 %1922 }
 0x2d8   :  { %2141 = vmatprep.subr.bf16.mxu0 %v6095_v51  ;;  %4439 = vmatprep.subr.bf16.mxu1 %v7362_v50  ;;  %7382 = vst [vmem:[#allocation77_spill] sm:$0xff] %v6346_v36  ;;  %vm1927_vm8 = vcmp.eq.s32.totalorder %v6346_v36, 1 }
 0x2da   :  { %v4873_v43 = vpop.eup %4872 }
 0x2db   :  { %v1881_v25 = vadd.f32 1.0, %v4873_v43  ;;  %2142 = vmatpush1.bf16.msra.mxu0 %v6311_v12  ;;  %4440 = vmatpush3.bf16.msra.mxu1 %v6314_v37  ;;  %v6331_v43 = vld [vmem:[#allocation11 + $0x168] ss:$12 sps:$4 sm:$0xff]  }
 0x2dc   :  { %v4875_v11 = vpop.eup %4874  ;;  %2143 = vmatprep.subr.bf16.mxu0 %v6317_v24  ;;  %4441 = vmatprep.subr.bf16.mxu1 %v7362_v50  ;;  %7380 = vst [vmem:[#allocation75_spill] sm:$0xff] %v6331_v43 }
 0x2dd   :  { %4880 = vrcp.f32 %v1881_v25  ;;  %v1882_v27 = vadd.f32 1.0, %v4875_v11  ;;  %v4877_v60 = vpop.eup %4876  ;;  %v6334_v25 = vld [vmem:[#allocation11 + $0x170] ss:$12 sps:$4 sm:$0xff]  }
 0x2de   :  { %v4879_v2 = vpop.eup %4878  ;;  %7381 = vst [vmem:[#allocation76_spill] sm:$0xff] %v6334_v25  ;;  %v1895_v11 = vadd.f32 1.0, %v4877_v60 }
 0x2df   :  { %4882 = vrcp.f32 %v1882_v27  ;;  %2144 = vmatpush1.bf16.msra.mxu0 %v6321_v30  ;;  %4442 = vmatpush3.bf16.msra.mxu1 %v6324_v47  ;;  %v1901_v27 = vadd.f32 %v6110_v40, %v6276_v9  ;;  %v1896_v1 = vadd.f32 1.0, %v4879_v2 }
 0x2e0   :  { %2145 = vmatprep.subr.bf16.mxu0 %v6327_v10  ;;  %4443 = vmatprep.subr.bf16.mxu1 %v7362_v50  ;;  %v1869_v10 = vunpack.c.l.bf16 %v6038_v54  ;;  %4884 = vrcp.f32 %v1895_v11 }
 0x2e1   :  { %4886 = vrcp.f32 %v1896_v1  ;;  %v6350_v1 = vpop.permute.xlu1 %1925 }
 0x2e2   :  { %7383 = vst [vmem:[#allocation78_spill] sm:$0xff] %v6350_v1  ;;  %vm1928_vm9 = vcmp.eq.s32.totalorder %v6350_v1, 1 }
 0x2e3   :  { %2146 = vmatpush1.bf16.msra.mxu0 %v6331_v43  ;;  %4444 = vmatpush3.bf16.msra.mxu1 %v6334_v25  ;;  %v1902_v43 = vadd.f32 %v6110_v40, %v6290_v61  ;;  %v1872_v25 = vunpack.c.h.bf16 %v6038_v54 }
 0x2e4   :  { %2305 = vmatprep.subr.bf16.mxu0 %v6116_v15  ;;  %4449 = vmatprep.subr.bf16.mxu1 %v7362_v50 }
 0x2e7   :  { %v4881_v5 = vpop.eup %4880 }
 0x2e8   :  { %v1903_v47 = vmul.f32 %v4881_v5, %v1901_v27 }
 0x2e9   :  { %v4883_v30 = vpop.eup %4882 }
 0x2ea   :  { %v1905_v60 = vadd.f32 %v1903_v47, %v1869_v10  ;;  %v1904_v24 = vmul.f32 %v4883_v30, %v1902_v43  ;;  %v4885_v37 = vpop.eup %4884 }
 0x2eb   :  { %v4887_v9 = vpop.eup %4886  ;;  %v1909_v2 = vsub.f32 1.0, %v4885_v37  ;;  %v1913_v51 = vmul.f32 %v4885_v37, %v6136_v45 }
 0x2ec   :  { %4888 = vtanh.f32 %v1905_v60  ;;  %v1906_v15 = vadd.f32 %v1904_v24, %v1872_v25  ;;  %v1910_v5 = vsub.f32 1.0, %v4887_v9  ;;  %v1914_v61 = vmul.f32 %v4887_v9, %v6141_v49 }
 0x2ee   :  { %4890 = vtanh.f32 %v1906_v15 }
 0x2f6   :  { %v4889_v12 = vpop.eup %4888 }
 0x2f7   :  { %v1911_v11 = vmul.f32 %v4889_v12, %v1909_v2  ;;  %v7386_v2 = vld [vmem:[#allocation25_spill] sm:$0xff] }
 0x2f8   :  { %v4891_v27 = vpop.eup %4890 }
 0x2f9   :  { %v1912_v54 = vmul.f32 %v4891_v27, %v1910_v5  ;;  %v1915_v47 = vadd.f32 %v1913_v51, %v1911_v11  ;;  %v2042_v5 = vunpack.c.l.bf16 %v7386_v2 }
 0x2fb   :  { %v1916_v15 = vadd.f32 %v1914_v61, %v1912_v54  ;;  %v1933_v24 = vsel %vm1927_vm8, %v1915_v47, 0.0  ;;  %v6358_v12 = vsel %vm1927_vm8, %v1915_v47, %v6136_v45  ;;  %v7384_v45 = vld [vmem:[#allocation65_spill] sm:$0xff] }
 0x2fc   :  { %v4159_v37 = vpack.c.bf16 %v1933_v24, %v1933_v24 }
 0x2fd   :  { %v6363_v51 = vsel %vm1928_vm9, %v1916_v15, %v6141_v49  ;;  %v1934_v30 = vsel %vm1928_vm9, %v1916_v15, 0.0  ;;  %v7385_v49 = vld [vmem:[#allocation23_spill] sm:$0xff] }
 0x2fe   :  { %v4160_v10 = vpack.c.bf16 %v1934_v30, %v1934_v30  ;;  %1946 = vst [vmem:[#allocation13 + $0x64] sm:$0xf] %v4159_v37  ;;  %v2130_v43 = vpack.c.bf16 %v6363_v51, %v6358_v12  ;;  %v2041_v25 = vunpack.c.l.bf16 %v7385_v49  ;;  %v2044_v54 = vunpack.c.h.bf16 %v7385_v49 }
 0x2ff   :  { %v2045_v37 = vunpack.c.h.bf16 %v7386_v2 }
 0x300   :  { %1947 = vst [vmem:[#allocation13 + $0x6c] sm:$0xf] %v4160_v10  ;;  %2164 = vmatmul.mubr.bf16.vlgmr.msra.gmra.mrb[80].mxu0 %v2130_v43  ;;  %4446 = vmatmul.mubr.bf16.vlgmr.msra.gmra.mrb[56].mxu1 %v2130_v43 }
 0x301   :  { %2306 = vmatpush1.bf16.msra.mxu0 %v6147_v53  ;;  %4450 = vmatpush3.bf16.msra.mxu1 %v6150_v17 }
 0x302   :  { %2307 = vmatprep.subr.bf16.mxu0 %v6153_v20  ;;  %4451 = vmatprep.subr.bf16.mxu1 %v7362_v50 }
 0x303   :  { %2337 = vmatprep.mubr.bf16.mxu0 %v7363_v8  ;;  %4465 = vmatprep.mubr.msk.bf16.mxu1 %vm5394_vm4, %v7362_v50 }
 0x305   :  { %2308 = vmatpush1.bf16.msra.mxu0 %v6160_v21  ;;  %4452 = vmatpush3.bf16.msra.mxu1 %v6163_v28 }
 0x306   :  { %2309 = vmatprep.subr.bf16.mxu0 %v6166_v7  ;;  %4453 = vmatprep.subr.bf16.mxu1 %v7362_v50 }
 0x309   :  { %2310 = vmatpush1.bf16.msra.mxu0 %v6170_v48  ;;  %4454 = vmatpush3.bf16.msra.mxu1 %v6173_v56 }
 0x30a   :  { %2311 = vmatprep.subr.bf16.mxu0 %v6176_v18  ;;  %4455 = vmatprep.subr.bf16.mxu1 %v7362_v50 }
 0x30d   :  { %2312 = vmatpush1.bf16.msra.mxu0 %v6180_v63  ;;  %4456 = vmatpush3.bf16.msra.mxu1 %v6183_v19 }
 0x30e   :  { %2313 = vmatprep.subr.bf16.mxu0 %v6186_v59  ;;  %4457 = vmatprep.subr.bf16.mxu1 %v7362_v50 }
 0x311   :  { %2314 = vmatpush1.bf16.msra.mxu0 %v6190_v39  ;;  %4458 = vmatpush3.bf16.msra.mxu1 %v6193_v62 }
 0x312   :  { %2315 = vmatprep.subr.bf16.mxu0 %v6196_v4  ;;  %4459 = vmatprep.subr.bf16.mxu1 %v7362_v50 }
 0x315   :  { %2316 = vmatpush1.bf16.msra.mxu0 %v6200_v35  ;;  %4460 = vmatpush3.bf16.msra.mxu1 %v6203_v57 }
 0x316   :  { %2317 = vmatprep.subr.bf16.mxu0 %v6206_v58  ;;  %4461 = vmatprep.subr.bf16.mxu1 %v7362_v50 }
 0x319   :  { %2318 = vmatpush1.bf16.msra.mxu0 %v6210_v22  ;;  %4462 = vmatpush3.bf16.msra.mxu1 %v6213_v23 }
 0x31a   :  { %2319 = vmatprep.subr.bf16.mxu0 %v6216_v41  ;;  %4463 = vmatprep.subr.bf16.mxu1 %v7362_v50 }
 0x31d   :  { %2320 = vmatpush1.bf16.msra.mxu0 %v6220_v13  ;;  %4464 = vmatpush3.bf16.msra.mxu1 %v6223_v55 }
 0x31e   :  { %2479 = vmatprep.subr.bf16.mxu0 %v7384_v45  ;;  %4469 = vmatprep.subr.bf16.mxu1 %v7362_v50 }
 0x399   :  { %v1991_v60 = vpop.f32.mrb[76].mxu0  ;;  %v2034_v9 = vpop.f32.mrb[52].mxu1 }
 0x39a   :  { %v2047_v11 = vadd.f32 %v2041_v25, %v1991_v60  ;;  %v1993_v27 = vpop.f32.mrb[77].mxu0  ;;  %v4427_v61 = vpop.f32.mrb[53].mxu1 }
 0x39b   :  { %v2061_v47 = vadd.f32 %v2042_v5, %v1993_v27  ;;  %v1995_v15 = vpop.f32.mrb[78].mxu0  ;;  %v2037_v24 = vpop.f32.mrb[54].mxu1  ;;  %v2075_v61 = vadd.f32 %v6000_v52, %v2034_v9 }
 0x39c   :  { %v4081_v30 = vmul.f32 -1.442695, %v2047_v11  ;;  %v2048_v10 = vadd.f32 %v2044_v54, %v1995_v15  ;;  %v1997_v43 = vpop.f32.mrb[79].mxu0  ;;  %v4428_v1 = vpop.f32.mrb[55].mxu1  ;;  %v7387_v15 = vld [vmem:[#allocation24_spill] sm:$0xff] }
 0x39d   :  { %v2062_v36 = vadd.f32 %v2045_v37, %v1997_v43  ;;  %v4083_v55 = vmul.f32 -1.442695, %v2061_v47  ;;  %v2043_v37 = vunpack.c.l.bf16 %v7387_v15 }
 0x39e   :  { %4892 = vpow2.f32 %v4081_v30  ;;  %v4082_v45 = vmul.f32 -1.442695, %v2048_v10 }
 0x39f   :  { %v4084_v13 = vmul.f32 -1.442695, %v2062_v36  ;;  %v2046_v36 = vunpack.c.h.bf16 %v7387_v15 }
 0x3a0   :  { %4894 = vpow2.f32 %v4082_v45 }
 0x3a1   :  { %4896 = vpow2.f32 %v4083_v55  ;;  %v2076_v55 = vadd.f32 %v6000_v52, %v2037_v24 }
 0x3a2   :  { %4898 = vpow2.f32 %v4084_v13 }
 0x3a8   :  { %v4893_v25 = vpop.eup %4892 }
 0x3a9   :  { %v2055_v60 = vadd.f32 1.0, %v4893_v25 }
 0x3aa   :  { %v4895_v49 = vpop.eup %4894 }
 0x3ab   :  { %4900 = vrcp.f32 %v2055_v60  ;;  %v2056_v5 = vadd.f32 1.0, %v4895_v49  ;;  %v4897_v27 = vpop.eup %4896 }
 0x3ac   :  { %v4899_v2 = vpop.eup %4898  ;;  %v2069_v11 = vadd.f32 1.0, %v4897_v27 }
 0x3ad   :  { %4902 = vrcp.f32 %v2056_v5  ;;  %v2070_v1 = vadd.f32 1.0, %v4899_v2 }
 0x3ae   :  { %4904 = vrcp.f32 %v2069_v11  ;;  %v6413_v11 = vpop.permute.xlu0 %2096 }
 0x3af   :  { %4906 = vrcp.f32 %v2070_v1  ;;  %7388 = vst [vmem:[#allocation23_spill] sm:$0xff] %v6413_v11  ;;  %vm2101_vm10 = vcmp.eq.s32.totalorder %v6413_v11, 1  ;;  %v6417_v1 = vpop.permute.xlu1 %2099 }
 0x3b0   :  { %7389 = vst [vmem:[#allocation25_spill] sm:$0xff] %v6417_v1  ;;  %vm2102_vm11 = vcmp.eq.s32.totalorder %v6417_v1, 1 }
 0x3b5   :  { %v4901_v54 = vpop.eup %4900 }
 0x3b6   :  { %v2077_v45 = vmul.f32 %v4901_v54, %v2075_v61 }
 0x3b7   :  { %v4903_v13 = vpop.eup %4902 }
 0x3b8   :  { %v2079_v47 = vadd.f32 %v2077_v45, %v2043_v37  ;;  %v2078_v30 = vmul.f32 %v4903_v13, %v2076_v55  ;;  %v4905_v43 = vpop.eup %4904 }
 0x3b9   :  { %v4907_v25 = vpop.eup %4906  ;;  %v2083_v9 = vsub.f32 1.0, %v4905_v43  ;;  %v2087_v49 = vmul.f32 %v4905_v43, %v6251_v16  ;;  %v7391_v43 = vld [vmem:[#allocation56_spill] sm:$0xff] }
 0x3ba   :  { %4908 = vtanh.f32 %v2079_v47  ;;  %v2080_v10 = vadd.f32 %v2078_v30, %v2046_v36  ;;  %v2084_v5 = vsub.f32 1.0, %v4907_v25  ;;  %v2088_v52 = vmul.f32 %v4907_v25, %v6256_v14 }
 0x3bb   :  { %v2216_v25 = vunpack.c.l.bf16 %v7391_v43 }
 0x3bc   :  { %4910 = vtanh.f32 %v2080_v10 }
 0x3c4   :  { %v4909_v60 = vpop.eup %4908 }
 0x3c5   :  { %v2085_v27 = vmul.f32 %v4909_v60, %v2083_v9 }
 0x3c6   :  { %v4911_v2 = vpop.eup %4910 }
 0x3c7   :  { %v2086_v24 = vmul.f32 %v4911_v2, %v2084_v5  ;;  %v2089_v61 = vadd.f32 %v2087_v49, %v2085_v27 }
 0x3c9   :  { %v2090_v54 = vadd.f32 %v2088_v52, %v2086_v24  ;;  %v2107_v15 = vsel %vm2101_vm10, %v2089_v61, 0.0  ;;  %v6425_v45 = vsel %vm2101_vm10, %v2089_v61, %v6251_v16  ;;  %v7390_v16 = vld [vmem:[#allocation38_spill] sm:$0xff]  ;;  %v2219_v24 = vunpack.c.h.bf16 %v7391_v43 }
 0x3ca   :  { %v4161_v37 = vpack.c.bf16 %v2107_v15, %v2107_v15  ;;  %v2218_v5 = vunpack.c.h.bf16 %v7390_v16  ;;  %v7395_v43 = vld [vmem:[#allocation70_spill] sm:$0xff] }
 0x3cb   :  { %v6430_v55 = vsel %vm2102_vm11, %v2090_v54, %v6256_v14  ;;  %v2108_v13 = vsel %vm2102_vm11, %v2090_v54, 0.0  ;;  %v2215_v14 = vunpack.c.l.bf16 %v7390_v16 }
 0x3cc   :  { %v4162_v36 = vpack.c.bf16 %v2108_v13, %v2108_v13  ;;  %2120 = vst [vmem:[#allocation13 + $0x20] sm:$0xf] %v4161_v37  ;;  %v2304_v47 = vpack.c.bf16 %v6430_v55, %v6425_v45 }
 0x3ce   :  { %2121 = vst [vmem:[#allocation13 + $0x28] sm:$0xf] %v4162_v36  ;;  %2338 = vmatmul.mubr.bf16.vlgmr.msra.gmra.mrb[84].mxu0 %v2304_v47  ;;  %4466 = vmatmul.mubr.bf16.vlgmr.msra.gmra.mrb[60].mxu1 %v2304_v47 }
 0x3cf   :  { %2480 = vmatpush1.bf16.msra.mxu0 %v6262_v29  ;;  %4470 = vmatpush3.bf16.msra.mxu1 %v6265_v44 }
 0x3d0   :  { %2481 = vmatprep.subr.bf16.mxu0 %v6268_v38  ;;  %4471 = vmatprep.subr.bf16.mxu1 %v7362_v50 }
 0x3d1   :  { %2511 = vmatprep.mubr.bf16.mxu0 %v7363_v8  ;;  %4485 = vmatprep.mubr.msk.bf16.mxu1 %vm5394_vm4, %v7362_v50 }
 0x3d3   :  { %v2165_v30 = vpop.f32.mrb[80].mxu0  ;;  %v2208_v10 = vpop.f32.mrb[56].mxu1  ;;  %2482 = vmatpush1.bf16.msra.mxu0 %v6279_v33  ;;  %4472 = vmatpush3.bf16.msra.mxu1 %v6282_v46 }
 0x3d4   :  { %v2221_v9 = vadd.f32 %v2215_v14, %v2165_v30  ;;  %v2167_v60 = vpop.f32.mrb[81].mxu0  ;;  %v4447_v49 = vpop.f32.mrb[57].mxu1  ;;  %2483 = vmatprep.subr.bf16.mxu0 %v6286_v3  ;;  %4473 = vmatprep.subr.bf16.mxu1 %v7362_v50  ;;  %v7393_v14 = vld [vmem:[#allocation59_spill] sm:$0xff] }
 0x3d5   :  { %v2235_v27 = vadd.f32 %v2216_v25, %v2167_v60  ;;  %v2169_v2 = vpop.f32.mrb[82].mxu0  ;;  %v2211_v52 = vpop.f32.mrb[58].mxu1  ;;  %v7396_v25 = vld [vmem:[#allocation71_spill] sm:$0xff]  ;;  %v7398_v60 = vld [vmem:[#allocation73_spill] sm:$0xff]  ;;  %v7399_v49 = vld [vmem:[#allocation74_spill] sm:$0xff] }
 0x3d6   :  { %v4087_v61 = vmul.f32 -1.442695, %v2221_v9  ;;  %v2222_v54 = vadd.f32 %v2218_v5, %v2169_v2  ;;  %v2171_v15 = vpop.f32.mrb[83].mxu0  ;;  %v4448_v37 = vpop.f32.mrb[59].mxu1  ;;  %v7397_v9 = vld [vmem:[#allocation72_spill] sm:$0xff]  ;;  %v7400_v2 = vld [vmem:[#allocation75_spill] sm:$0xff] }
 0x3d7   :  { %v2236_v13 = vadd.f32 %v2219_v24, %v2171_v15  ;;  %2484 = vmatpush1.bf16.msra.mxu0 %v6075_v0  ;;  %4474 = vmatpush3.bf16.msra.mxu1 %v6294_v6  ;;  %v4089_v47 = vmul.f32 -1.442695, %v2235_v27  ;;  %v7392_v0 = vld [vmem:[#allocation68_spill] sm:$0xff]  ;;  %v2249_v15 = vadd.f32 %v6110_v40, %v2208_v10 }
 0x3d8   :  { %4912 = vpow2.f32 %v4087_v61  ;;  %v4088_v36 = vmul.f32 -1.442695, %v2222_v54  ;;  %2485 = vmatprep.subr.bf16.mxu0 %v6079_v26  ;;  %4475 = vmatprep.subr.bf16.mxu1 %v7362_v50  ;;  %v7401_v24 = vld [vmem:[#allocation76_spill] sm:$0xff] }
 0x3d9   :  { %v4090_v16 = vmul.f32 -1.442695, %v2236_v13  ;;  %v7402_v54 = vld [vmem:[#allocation60_spill] sm:$0xff] }
 0x3da   :  { %4914 = vpow2.f32 %v4088_v36  ;;  %v7403_v36 = vld [vmem:[#allocation57_spill] sm:$0xff] }
 0x3db   :  { %2486 = vmatpush1.bf16.msra.mxu0 %v6083_v32  ;;  %4476 = vmatpush3.bf16.msra.mxu1 %v6300_v42  ;;  %4916 = vpow2.f32 %v4089_v47  ;;  %v7394_v32 = vld [vmem:[#allocation69_spill] sm:$0xff]  ;;  %v2217_v47 = vunpack.c.l.bf16 %v7403_v36 }
 0x3dc   :  { %2487 = vmatprep.subr.bf16.mxu0 %v6087_v34  ;;  %4477 = vmatprep.subr.bf16.mxu1 %v7362_v50  ;;  %4918 = vpow2.f32 %v4090_v16 }
 0x3df   :  { %2488 = vmatpush1.bf16.msra.mxu0 %v6091_v31  ;;  %4478 = vmatpush3.bf16.msra.mxu1 %v7392_v0 }
 0x3e0   :  { %2489 = vmatprep.subr.bf16.mxu0 %v7393_v14  ;;  %4479 = vmatprep.subr.bf16.mxu1 %v7362_v50  ;;  %v2250_v14 = vadd.f32 %v6110_v40, %v2211_v52 }
 0x3e2   :  { %v4913_v26 = vpop.eup %4912 }
 0x3e3   :  { %v2229_v30 = vadd.f32 1.0, %v4913_v26  ;;  %2490 = vmatpush1.bf16.msra.mxu0 %v7394_v32  ;;  %4480 = vmatpush3.bf16.msra.mxu1 %v7395_v43 }
 0x3e4   :  { %v4915_v34 = vpop.eup %4914  ;;  %2491 = vmatprep.subr.bf16.mxu0 %v7396_v25  ;;  %4481 = vmatprep.subr.bf16.mxu1 %v7362_v50 }
 0x3e5   :  { %4920 = vrcp.f32 %v2229_v30  ;;  %v2230_v31 = vadd.f32 1.0, %v4915_v34  ;;  %v4917_v5 = vpop.eup %4916  ;;  %v2220_v30 = vunpack.c.h.bf16 %v7403_v36 }
 0x3e6   :  { %v4919_v27 = vpop.eup %4918  ;;  %v2243_v61 = vadd.f32 1.0, %v4917_v5 }
 0x3e7   :  { %4922 = vrcp.f32 %v2230_v31  ;;  %2492 = vmatpush1.bf16.msra.mxu0 %v7397_v9  ;;  %4482 = vmatpush3.bf16.msra.mxu1 %v7398_v60  ;;  %v2244_v37 = vadd.f32 1.0, %v4919_v27 }
 0x3e8   :  { %2493 = vmatprep.subr.bf16.mxu0 %v7399_v49  ;;  %4483 = vmatprep.subr.bf16.mxu1 %v7362_v50  ;;  %4924 = vrcp.f32 %v2243_v61 }
 0x3e9   :  { %4926 = vrcp.f32 %v2244_v37  ;;  %v6484_v37 = vpop.permute.xlu1 %2273 }
 0x3ea   :  { %7405 = vst [vmem:[#allocation38_spill] sm:$0xff] %v6484_v37  ;;  %vm2276_vm13 = vcmp.eq.s32.totalorder %v6484_v37, 1 }
 0x3eb   :  { %2494 = vmatpush1.bf16.msra.mxu0 %v7400_v2  ;;  %4484 = vmatpush3.bf16.msra.mxu1 %v7401_v24 }
 0x3ec   :  { %2650 = vmatprep.subr.bf16.mxu0 %v7402_v54  ;;  %4489 = vmatprep.subr.bf16.mxu1 %v7362_v50 }
 0x3ef   :  { %v4921_v13 = vpop.eup %4920 }
 0x3f0   :  { %v2251_v16 = vmul.f32 %v4921_v13, %v2249_v15  ;;  %v6480_v13 = vpop.permute.xlu0 %2270 }
 0x3f1   :  { %v4923_v26 = vpop.eup %4922  ;;  %7404 = vst [vmem:[#allocation24_spill] sm:$0xff] %v6480_v13  ;;  %vm2275_vm12 = vcmp.eq.s32.totalorder %v6480_v13, 1 }
 0x3f2   :  { %v2253_v34 = vadd.f32 %v2251_v16, %v2217_v47  ;;  %v2252_v31 = vmul.f32 %v4923_v26, %v2250_v14  ;;  %v4925_v54 = vpop.eup %4924 }
 0x3f3   :  { %v4927_v1 = vpop.eup %4926  ;;  %v2257_v10 = vsub.f32 1.0, %v4925_v54  ;;  %v2261_v11 = vmul.f32 %v4925_v54, %v6358_v12 }
 0x3f4   :  { %4928 = vtanh.f32 %v2253_v34  ;;  %v2254_v5 = vadd.f32 %v2252_v31, %v2220_v30  ;;  %v2258_v24 = vsub.f32 1.0, %v4927_v1  ;;  %v2262_v40 = vmul.f32 %v4927_v1, %v6363_v51 }
 0x3f6   :  { %4930 = vtanh.f32 %v2254_v5 }
 0x3fe   :  { %v4929_v27 = vpop.eup %4928 }
 0x3ff   :  { %v2259_v15 = vmul.f32 %v4929_v27, %v2257_v10 }
 0x400   :  { %v4931_v61 = vpop.eup %4930 }
 0x401   :  { %v2260_v52 = vmul.f32 %v4931_v61, %v2258_v24  ;;  %v2263_v36 = vadd.f32 %v2261_v11, %v2259_v15 }
 0x403   :  { %v2264_v47 = vadd.f32 %v2262_v40, %v2260_v52  ;;  %v2281_v16 = vsel %vm2275_vm12, %v2263_v36, 0.0  ;;  %v6492_v26 = vsel %vm2275_vm12, %v2263_v36, %v6358_v12  ;;  %v6545_v52 = vld [vmem:[%s7206_s6] ss:$0 sm:$0xff] }
 0x404   :  { %v4163_v14 = vpack.c.bf16 %v2281_v16, %v2281_v16 }
 0x405   :  { %v6497_v11 = vsel %vm2276_vm13, %v2264_v47, %v6363_v51  ;;  %v2282_v1 = vsel %vm2276_vm13, %v2264_v47, 0.0 }
 0x406   :  { %v4164_v24 = vpack.c.bf16 %v2282_v1, %v2282_v1  ;;  %2294 = vst [vmem:[#allocation13 + $0x54] sm:$0xf] %v4163_v14  ;;  %v2478_v30 = vpack.c.bf16 %v6497_v11, %v6492_v26  ;;  %v7411_v14 = vld [vmem:[#allocation28_spill] sm:$0xff] }
 0x407   :  { %v2391_v1 = vunpack.c.l.bf16 %v7411_v14 }
 0x408   :  { %2295 = vst [vmem:[#allocation13 + $0x5c] sm:$0xf] %v4164_v24  ;;  %2512 = vmatmul.mubr.bf16.vlgmr.msra.gmra.mrb[88].mxu0 %v2478_v30  ;;  %4486 = vmatmul.mubr.bf16.vlgmr.msra.gmra.mrb[64].mxu1 %v2478_v30 }
 0x409   :  { %2651 = vmatpush1.bf16.msra.mxu0 %v6147_v53  ;;  %4490 = vmatpush3.bf16.msra.mxu1 %v6150_v17  ;;  %v7406_v53 = vld [vmem:[#allocation63_spill] sm:$0xff]  ;;  %v7407_v17 = vld [vmem:[#allocation64_spill] sm:$0xff] }
 0x40a   :  { %2652 = vmatprep.subr.bf16.mxu0 %v6153_v20  ;;  %4491 = vmatprep.subr.bf16.mxu1 %v7362_v50  ;;  %v7408_v20 = vld [vmem:[#allocation65_spill] sm:$0xff] }
 0x40b   :  { %2682 = vmatprep.mubr.bf16.mxu0 %v7363_v8  ;;  %4505 = vmatprep.mubr.msk.bf16.mxu1 %vm5394_vm4, %v7362_v50 }
 0x40d   :  { %2653 = vmatpush1.bf16.msra.mxu0 %v6160_v21  ;;  %4492 = vmatpush3.bf16.msra.mxu1 %v6163_v28  ;;  %v7409_v21 = vld [vmem:[#allocation27_spill] sm:$0xff] }
 0x40e   :  { %2654 = vmatprep.subr.bf16.mxu0 %v6166_v7  ;;  %4493 = vmatprep.subr.bf16.mxu1 %v7362_v50  ;;  %v2389_v28 = vunpack.c.l.bf16 %v7409_v21 }
 0x411   :  { %2655 = vmatpush1.bf16.msra.mxu0 %v6170_v48  ;;  %4494 = vmatpush3.bf16.msra.mxu1 %v6173_v56  ;;  %v7410_v56 = vld [vmem:[#allocation29_spill] sm:$0xff] }
 0x412   :  { %2656 = vmatprep.subr.bf16.mxu0 %v6176_v18  ;;  %4495 = vmatprep.subr.bf16.mxu1 %v7362_v50  ;;  %v2390_v18 = vunpack.c.l.bf16 %v7410_v56 }
 0x415   :  { %2657 = vmatpush1.bf16.msra.mxu0 %v6180_v63  ;;  %4496 = vmatpush3.bf16.msra.mxu1 %v6183_v19 }
 0x416   :  { %2658 = vmatprep.subr.bf16.mxu0 %v6186_v59  ;;  %4497 = vmatprep.subr.bf16.mxu1 %v7362_v50 }
 0x419   :  { %2659 = vmatpush1.bf16.msra.mxu0 %v6190_v39  ;;  %4498 = vmatpush3.bf16.msra.mxu1 %v6193_v62  ;;  %v2392_v39 = vunpack.c.h.bf16 %v7409_v21 }
 0x41a   :  { %2660 = vmatprep.subr.bf16.mxu0 %v6196_v4  ;;  %4499 = vmatprep.subr.bf16.mxu1 %v7362_v50 }
 0x41d   :  { %2661 = vmatpush1.bf16.msra.mxu0 %v6200_v35  ;;  %4500 = vmatpush3.bf16.msra.mxu1 %v6203_v57  ;;  %v2393_v57 = vunpack.c.h.bf16 %v7410_v56 }
 0x41e   :  { %2662 = vmatprep.subr.bf16.mxu0 %v6206_v58  ;;  %4501 = vmatprep.subr.bf16.mxu1 %v7362_v50 }
 0x421   :  { %2663 = vmatpush1.bf16.msra.mxu0 %v6210_v22  ;;  %4502 = vmatpush3.bf16.msra.mxu1 %v6213_v23 }
 0x422   :  { %2664 = vmatprep.subr.bf16.mxu0 %v6216_v41  ;;  %4503 = vmatprep.subr.bf16.mxu1 %v7362_v50 }
 0x425   :  { %2665 = vmatpush1.bf16.msra.mxu0 %v7406_v53  ;;  %4504 = vmatpush3.bf16.msra.mxu1 %v7407_v17  ;;  %v2394_v17 = vunpack.c.h.bf16 %v7411_v14 }
 0x426   :  { %2806 = vmatprep.subr.bf16.mxu0 %v7408_v20  ;;  %4509 = vmatprep.subr.bf16.mxu1 %v7362_v50 }
 0x4a1   :  { %v2339_v7 = vpop.f32.mrb[84].mxu0  ;;  %v2382_v48 = vpop.f32.mrb[60].mxu1 }
 0x4a2   :  { %v2395_v63 = vadd.f32 %v2389_v28, %v2339_v7  ;;  %v2341_v19 = vpop.f32.mrb[85].mxu0  ;;  %v4467_v59 = vpop.f32.mrb[61].mxu1  ;;  %v2423_v36 = vadd.f32 %v6545_v52, %v2382_v48 }
 0x4a3   :  { %v2409_v62 = vadd.f32 %v2390_v18, %v2341_v19  ;;  %v2343_v4 = vpop.f32.mrb[86].mxu0  ;;  %v2385_v35 = vpop.f32.mrb[62].mxu1 }
 0x4a4   :  { %v4093_v58 = vmul.f32 -1.442695, %v2395_v63  ;;  %v2396_v22 = vadd.f32 %v2392_v39, %v2343_v4  ;;  %v2345_v23 = vpop.f32.mrb[87].mxu0  ;;  %v4468_v41 = vpop.f32.mrb[63].mxu1  ;;  %v2424_v30 = vadd.f32 %v6545_v52, %v2385_v35 }
 0x4a5   :  { %v2410_v12 = vadd.f32 %v2393_v57, %v2345_v23  ;;  %v4095_v34 = vmul.f32 -1.442695, %v2409_v62  ;;  %v6552_v62 = vpop.permute.xlu0 %2444 }
 0x4a6   :  { %4932 = vpow2.f32 %v4093_v58  ;;  %v4094_v51 = vmul.f32 -1.442695, %v2396_v22  ;;  %vm2449_vm14 = vcmp.eq.s32.totalorder %v6552_v62, 1  ;;  %v6556_v58 = vpop.permute.xlu1 %2447 }
 0x4a7   :  { %v4096_v31 = vmul.f32 -1.442695, %v2410_v12  ;;  %vm2450_vm15 = vcmp.eq.s32.totalorder %v6556_v58, 1  ;;  %v7438_v58 = vld [vmem:[#allocation35_spill] sm:$0xff] }
 0x4a8   :  { %4934 = vpow2.f32 %v4094_v51 }
 0x4a9   :  { %4936 = vpow2.f32 %v4095_v34 }
 0x4aa   :  { %4938 = vpow2.f32 %v4096_v31 }
 0x4b0   :  { %v4933_v5 = vpop.eup %4932 }
 0x4b1   :  { %v2403_v54 = vadd.f32 1.0, %v4933_v5 }
 0x4b2   :  { %v4935_v10 = vpop.eup %4934 }
 0x4b3   :  { %4940 = vrcp.f32 %v2403_v54  ;;  %v2404_v27 = vadd.f32 1.0, %v4935_v10  ;;  %v4937_v15 = vpop.eup %4936 }
 0x4b4   :  { %v4939_v61 = vpop.eup %4938  ;;  %v2417_v40 = vadd.f32 1.0, %v4937_v15 }
 0x4b5   :  { %4942 = vrcp.f32 %v2404_v27  ;;  %v2418_v47 = vadd.f32 1.0, %v4939_v61  ;;  %v7413_v27 = vld [vmem:[#allocation53_spill] sm:$0xff] }
 0x4b6   :  { %4944 = vrcp.f32 %v2417_v40  ;;  %v2564_v15 = vunpack.c.l.bf16 %v7413_v27 }
 0x4b7   :  { %4946 = vrcp.f32 %v2418_v47 }
 0x4bd   :  { %v4941_v16 = vpop.eup %4940 }
 0x4be   :  { %v2425_v24 = vmul.f32 %v4941_v16, %v2423_v36  ;;  %v2567_v16 = vunpack.c.h.bf16 %v7413_v27 }
 0x4bf   :  { %v4943_v53 = vpop.eup %4942 }
 0x4c0   :  { %v2427_v20 = vadd.f32 %v2425_v24, %v2391_v1  ;;  %v2426_v21 = vmul.f32 %v4943_v53, %v2424_v30  ;;  %v4945_v7 = vpop.eup %4944  ;;  %v6596_v53 = vld [vmem:[#allocation11 + $0x10c] ss:$12 sps:$4 sm:$0xff]  }
 0x4c1   :  { %v4947_v56 = vpop.eup %4946  ;;  %v2431_v48 = vsub.f32 1.0, %v4945_v7  ;;  %v2435_v63 = vmul.f32 %v4945_v7, %v6425_v45  ;;  %v6612_v7 = vld [vmem:[#allocation11 + $0x13c] ss:$12 sps:$4 sm:$0xff]  }
 0x4c2   :  { %4948 = vtanh.f32 %v2427_v20  ;;  %v2428_v28 = vadd.f32 %v2426_v21, %v2394_v17  ;;  %v2432_v19 = vsub.f32 1.0, %v4947_v56  ;;  %v2436_v4 = vmul.f32 %v4947_v56, %v6430_v55  ;;  %v6600_v20 = vld [vmem:[#allocation11 + $0x108] ss:$12 sps:$4 sm:$0xff]   ;;  %v6604_v21 = vld [vmem:[#allocation11 + $0x124] ss:$12 sps:$4 sm:$0xff]   ;;  %7416 = vst [vmem:[#allocation59_spill] sm:$0xff] %v6612_v7 }
 0x4c3   :  { %7414 = vst [vmem:[#allocation56_spill] sm:$0xff] %v6604_v21 }
 0x4c4   :  { %4950 = vtanh.f32 %v2428_v28  ;;  %v6608_v28 = vld [vmem:[#allocation11 + $0x120] ss:$12 sps:$4 sm:$0xff]  }
 0x4c5   :  { %7415 = vst [vmem:[#allocation68_spill] sm:$0xff] %v6608_v28 }
 0x4cc   :  { %v4949_v18 = vpop.eup %4948 }
 0x4cd   :  { %v2433_v59 = vmul.f32 %v4949_v18, %v2431_v48 }
 0x4ce   :  { %v4951_v39 = vpop.eup %4950 }
 0x4cf   :  { %v2434_v35 = vmul.f32 %v4951_v39, %v2432_v19  ;;  %v2437_v57 = vadd.f32 %v2435_v63, %v2433_v59  ;;  %v6626_v63 = vld [vmem:[#allocation11 + $0x4] ss:$12 sps:$4 sm:$0xff]  }
 0x4d0   :  { %7418 = vst [vmem:[#allocation69_spill] sm:$0xff] %v6626_v63 }
 0x4d1   :  { %v2438_v22 = vadd.f32 %v2436_v4, %v2434_v35  ;;  %v2455_v23 = vsel %vm2449_vm14, %v2437_v57, 0.0  ;;  %v6564_v12 = vsel %vm2449_vm14, %v2437_v57, %v6425_v45  ;;  %v7412_v45 = vld [vmem:[#allocation34_spill] sm:$0xff] }
 0x4d2   :  { %v4165_v41 = vpack.c.bf16 %v2455_v23, %v2455_v23  ;;  %v2566_v61 = vunpack.c.h.bf16 %v7412_v45 }
 0x4d3   :  { %v6569_v51 = vsel %vm2450_vm15, %v2438_v22, %v6430_v55  ;;  %v2456_v34 = vsel %vm2450_vm15, %v2438_v22, 0.0  ;;  %v2563_v55 = vunpack.c.l.bf16 %v7412_v45 }
 0x4d4   :  { %v4166_v31 = vpack.c.bf16 %v2456_v34, %v2456_v34  ;;  %2468 = vst [vmem:[#allocation13 + $0x30] sm:$0xf] %v4165_v41  ;;  %v2649_v5 = vpack.c.bf16 %v6569_v51, %v6564_v12 }
 0x4d6   :  { %2469 = vst [vmem:[#allocation13 + $0x38] sm:$0xf] %v4166_v31  ;;  %2683 = vmatmul.mubr.bf16.vlgmr.msra.gmra.mrb[92].mxu0 %v2649_v5  ;;  %4506 = vmatmul.mubr.bf16.vlgmr.msra.gmra.mrb[68].mxu1 %v2649_v5 }
 0x4d7   :  { %2807 = vmatpush1.bf16.msra.mxu0 %v6262_v29  ;;  %4510 = vmatpush3.bf16.msra.mxu1 %v6265_v44 }
 0x4d8   :  { %2808 = vmatprep.subr.bf16.mxu0 %v6268_v38  ;;  %4511 = vmatprep.subr.bf16.mxu1 %v7362_v50 }
 0x4d9   :  { %2838 = vmatprep.mubr.bf16.mxu0 %v7363_v8  ;;  %4525 = vmatprep.mubr.msk.bf16.mxu1 %vm5394_vm4, %v7362_v50 }
 0x4db   :  { %v2513_v54 = vpop.f32.mrb[88].mxu0  ;;  %v6583_v10 = vpop.f32.mrb[64].mxu1  ;;  %2809 = vmatpush1.bf16.msra.mxu0 %v6279_v33  ;;  %4512 = vmatpush3.bf16.msra.mxu1 %v6282_v46  ;;  %v6592_v46 = vld [vmem:[#allocation11 + $0xf0] ss:$12 sps:$4 sm:$0xff]  }
 0x4dc   :  { %v2569_v29 = vadd.f32 %v2563_v55, %v2513_v54  ;;  %v2515_v44 = vpop.f32.mrb[89].mxu0  ;;  %v4487_v38 = vpop.f32.mrb[65].mxu1  ;;  %2810 = vmatprep.subr.bf16.mxu0 %v6286_v3  ;;  %4513 = vmatprep.subr.bf16.mxu1 %v7362_v50 }
 0x4dd   :  { %v2583_v40 = vadd.f32 %v2564_v15, %v2515_v44  ;;  %v2517_v36 = vpop.f32.mrb[90].mxu0  ;;  %v2559_v47 = vpop.f32.mrb[66].mxu1 }
 0x4de   :  { %v4099_v14 = vmul.f32 -1.442695, %v2569_v29  ;;  %v2570_v1 = vadd.f32 %v2566_v61, %v2517_v36  ;;  %v2519_v24 = vpop.f32.mrb[91].mxu0  ;;  %v4488_v33 = vpop.f32.mrb[67].mxu1 }
 0x4df   :  { %v2584_v30 = vadd.f32 %v2567_v16, %v2519_v24  ;;  %2811 = vmatpush1.bf16.msra.mxu0 %v6592_v46  ;;  %4514 = vmatpush3.bf16.msra.mxu1 %v6294_v6  ;;  %v4101_v17 = vmul.f32 -1.442695, %v2583_v40  ;;  %v6640_v55 = vpop.permute.xlu0 %2618  ;;  %v6643_v29 = vpop.permute.xlu1 %2621 }
 0x4e0   :  { %4952 = vpow2.f32 %v4099_v14  ;;  %v4100_v3 = vmul.f32 -1.442695, %v2570_v1  ;;  %2812 = vmatprep.subr.bf16.mxu0 %v6596_v53  ;;  %4515 = vmatprep.subr.bf16.mxu1 %v7362_v50  ;;  %vm2623_vm0 = vcmp.eq.s32.totalorder %v6640_v55, 1  ;;  %vm2624_vm2 = vcmp.eq.s32.totalorder %v6643_v29, 1  ;;  %v7425_v55 = vld [vmem:[#allocation30_spill] sm:$0xff] }
 0x4e1   :  { %v4102_v6 = vmul.f32 -1.442695, %v2584_v30  ;;  %v6664_v30 = vld [vmem:[#allocation11] ss:$12 sps:$4 sm:$0xff]   ;;  %v2890_v29 = vunpack.c.l.bf16 %v7425_v55 }
 0x4e2   :  { %4954 = vpow2.f32 %v4100_v3  ;;  %v6677_v3 = vld [vmem:[#allocation11 + $0x18] ss:$12 sps:$4 sm:$0xff]  }
 0x4e3   :  { %2813 = vmatpush1.bf16.msra.mxu0 %v6600_v20  ;;  %4516 = vmatpush3.bf16.msra.mxu1 %v6300_v42  ;;  %4956 = vpow2.f32 %v4101_v17  ;;  %v6680_v17 = vld [vmem:[#allocation11 + $0x20] ss:$12 sps:$4 sm:$0xff]  }
 0x4e4   :  { %2814 = vmatprep.subr.bf16.mxu0 %v6604_v21  ;;  %4517 = vmatprep.subr.bf16.mxu1 %v7362_v50  ;;  %4958 = vpow2.f32 %v4102_v6  ;;  %v6683_v6 = vld [vmem:[#allocation11 + $0x34] ss:$12 sps:$4 sm:$0xff]  }
 0x4e7   :  { %2815 = vmatpush1.bf16.msra.mxu0 %v6608_v28  ;;  %4518 = vmatpush3.bf16.msra.mxu1 %v7392_v0 }
 0x4e8   :  { %2816 = vmatprep.subr.bf16.mxu0 %v6612_v7  ;;  %4519 = vmatprep.subr.bf16.mxu1 %v7362_v50 }
 0x4ea   :  { %v4953_v42 = vpop.eup %4952 }
 0x4eb   :  { %v2577_v56 = vadd.f32 1.0, %v4953_v42  ;;  %2817 = vmatpush1.bf16.msra.mxu0 %v7394_v32  ;;  %4520 = vmatpush3.bf16.msra.mxu1 %v7395_v43  ;;  %v7417_v43 = vld [vmem:[#allocation76_spill] sm:$0xff] }
 0x4ec   :  { %v4955_v48 = vpop.eup %4954  ;;  %2818 = vmatprep.subr.bf16.mxu0 %v7396_v25  ;;  %4521 = vmatprep.subr.bf16.mxu1 %v7362_v50  ;;  %v6687_v42 = vld [vmem:[#allocation11 + $0x30] ss:$12 sps:$4 sm:$0xff]  }
 0x4ed   :  { %4960 = vrcp.f32 %v2577_v56  ;;  %v2578_v0 = vadd.f32 1.0, %v4955_v48  ;;  %v4957_v18 = vpop.eup %4956  ;;  %v6690_v56 = vld [vmem:[#allocation11 + $0x38] ss:$12 sps:$4 sm:$0xff]  }
 0x4ee   :  { %v4959_v32 = vpop.eup %4958  ;;  %v2591_v25 = vadd.f32 1.0, %v4957_v18  ;;  %v6693_v48 = vld [vmem:[#allocation11 + $0x4c] ss:$12 sps:$4 sm:$0xff]   ;;  %v6700_v18 = vld [vmem:[#allocation11 + $0x50] ss:$12 sps:$4 sm:$0xff]  }
 0x4ef   :  { %4962 = vrcp.f32 %v2578_v0  ;;  %2819 = vmatpush1.bf16.msra.mxu0 %v7397_v9  ;;  %4522 = vmatpush3.bf16.msra.mxu1 %v7398_v60  ;;  %v6633_v9 = vld [vmem:[%s7206_s6 + $0x1] ss:$0 sm:$0xff]  ;;  %v6697_v0 = vld [vmem:[#allocation11 + $0x48] ss:$12 sps:$4 sm:$0xff]  }
 0x4f0   :  { %2820 = vmatprep.subr.bf16.mxu0 %v7399_v49  ;;  %4523 = vmatprep.subr.bf16.mxu1 %v7362_v50  ;;  %7419 = vst [vmem:[#allocation70_spill] sm:$0xff] %v6633_v9  ;;  %v2597_v60 = vadd.f32 %v6633_v9, %v6583_v10  ;;  %v2592_v49 = vadd.f32 1.0, %v4959_v32  ;;  %4964 = vrcp.f32 %v2591_v25  ;;  %v2598_v4 = vadd.f32 %v6633_v9, %v2559_v47  ;;  %v6703_v32 = vld [vmem:[#allocation11 + $0x64] ss:$12 sps:$4 sm:$0xff]   ;;  %v6710_v25 = vld [vmem:[#allocation11 + $0x68] ss:$12 sps:$4 sm:$0xff]  }
 0x4f2   :  { %4966 = vrcp.f32 %v2592_v49  ;;  %v6717_v49 = vld [vmem:[#allocation11 + $0x78] ss:$12 sps:$4 sm:$0xff]  }
 0x4f3   :  { %2821 = vmatpush1.bf16.msra.mxu0 %v7400_v2  ;;  %4524 = vmatpush3.bf16.msra.mxu1 %v7417_v43  ;;  %v7420_v2 = vld [vmem:[#allocation54_spill] sm:$0xff] }
 0x4f4   :  { %2962 = vmatprep.subr.bf16.mxu0 %v6626_v63  ;;  %4529 = vmatprep.subr.bf16.mxu1 %v7362_v50  ;;  %v2565_v59 = vunpack.c.l.bf16 %v7420_v2  ;;  %v2568_v57 = vunpack.c.h.bf16 %v7420_v2  ;;  %v6707_v43 = vld [vmem:[#allocation11 + $0x60] ss:$12 sps:$4 sm:$0xff]  }
 0x4f5   :  { %v6723_v2 = vld [vmem:[#allocation11 + $0x94] ss:$12 sps:$4 sm:$0xff]  }
 0x4f7   :  { %v4961_v19 = vpop.eup %4960 }
 0x4f8   :  { %v2599_v39 = vmul.f32 %v4961_v19, %v2597_v60  ;;  %v6713_v60 = vld [vmem:[#allocation11 + $0x7c] ss:$12 sps:$4 sm:$0xff]   ;;  %v6720_v19 = vld [vmem:[#allocation11 + $0x80] ss:$12 sps:$4 sm:$0xff]  }
 0x4f9   :  { %v4963_v35 = vpop.eup %4962 }
 0x4fa   :  { %v2601_v22 = vadd.f32 %v2599_v39, %v2565_v59  ;;  %v2600_v23 = vmul.f32 %v4963_v35, %v2598_v4  ;;  %v4965_v34 = vpop.eup %4964  ;;  %v6727_v59 = vld [vmem:[#allocation11 + $0x90] ss:$12 sps:$4 sm:$0xff]   ;;  %v6730_v39 = vld [vmem:[#allocation11 + $0x98] ss:$12 sps:$4 sm:$0xff]   ;;  %v6737_v35 = vld [vmem:[#allocation11 + $0xa8] ss:$12 sps:$4 sm:$0xff]  }
 0x4fb   :  { %v2605_v5 = vsub.f32 1.0, %v4965_v34  ;;  %v2609_v54 = vmul.f32 %v4965_v34, %v6492_v26  ;;  %v6733_v4 = vld [vmem:[#allocation11 + $0xac] ss:$12 sps:$4 sm:$0xff]  }
 0x4fc   :  { %4968 = vtanh.f32 %v2601_v22  ;;  %v2602_v41 = vadd.f32 %v2600_v23, %v2568_v57  ;;  %v4967_v31 = vpop.eup %4966  ;;  %v6740_v57 = vld [vmem:[#allocation11 + $0xb0] ss:$12 sps:$4 sm:$0xff]  }
 0x4fd   :  { %v2606_v10 = vsub.f32 1.0, %v4967_v31  ;;  %v2610_v44 = vmul.f32 %v4967_v31, %v6497_v11  ;;  %v6743_v22 = vld [vmem:[#allocation11 + $0xc4] ss:$12 sps:$4 sm:$0xff]  }
 0x4fe   :  { %4970 = vtanh.f32 %v2602_v41  ;;  %7421 = vst [vmem:[#allocation71_spill] sm:$0xff] %v6743_v22  ;;  %v7422_v23 = vld [vmem:[#allocation31_spill] sm:$0xff] }
 0x4ff   :  { %v2734_v41 = vunpack.c.l.bf16 %v7422_v23 }
 0x505   :  { %v7437_v62 = vld [vmem:[#allocation71_spill] sm:$0xff] }
 0x506   :  { %v4969_v45 = vpop.eup %4968 }
 0x507   :  { %v2607_v27 = vmul.f32 %v4969_v45, %v2605_v5  ;;  %v7423_v5 = vld [vmem:[#allocation33_spill] sm:$0xff] }
 0x508   :  { %v4971_v15 = vpop.eup %4970  ;;  %v2735_v45 = vunpack.c.l.bf16 %v7423_v5 }
 0x509   :  { %v2608_v38 = vmul.f32 %v4971_v15, %v2606_v10  ;;  %v2611_v61 = vadd.f32 %v2609_v54, %v2607_v27  ;;  %v2737_v15 = vunpack.c.h.bf16 %v7422_v23 }
 0x50b   :  { %v2612_v40 = vadd.f32 %v2610_v44, %v2608_v38  ;;  %v2629_v36 = vsel %vm2623_vm0, %v2611_v61, 0.0  ;;  %v6653_v16 = vsel %vm2623_vm0, %v2611_v61, %v6492_v26  ;;  %v6667_v26 = vld [vmem:[#allocation11 + $0x8] ss:$12 sps:$4 sm:$0xff]  }
 0x50c   :  { %v4167_v47 = vpack.c.bf16 %v2629_v36, %v2629_v36 }
 0x50d   :  { %v6658_v14 = vsel %vm2624_vm2, %v2612_v40, %v6497_v11  ;;  %v2630_v1 = vsel %vm2624_vm2, %v2612_v40, 0.0  ;;  %v6670_v11 = vld [vmem:[#allocation11 + $0x1c] ss:$12 sps:$4 sm:$0xff]   ;;  %v2738_v40 = vunpack.c.h.bf16 %v7423_v5 }
 0x50e   :  { %v4168_v24 = vpack.c.bf16 %v2630_v1, %v2630_v1  ;;  %2642 = vst [vmem:[#allocation13 + $0x44] sm:$0xf] %v4167_v47  ;;  %v2805_v33 = vpack.c.bf16 %v6658_v14, %v6653_v16 }
 0x510   :  { %2643 = vst [vmem:[#allocation13 + $0x4c] sm:$0xf] %v4168_v24  ;;  %2839 = vmatmul.mubr.bf16.vlgmr.msra.gmra.mrb[96].mxu0 %v2805_v33  ;;  %4526 = vmatmul.mubr.bf16.vlgmr.msra.gmra.mrb[72].mxu1 %v2805_v33 }
 0x511   :  { %2963 = vmatpush1.bf16.msra.mxu0 %v6664_v30  ;;  %4530 = vmatpush3.bf16.msra.mxu1 %v6667_v26 }
 0x512   :  { %2964 = vmatprep.subr.bf16.mxu0 %v6670_v11  ;;  %4531 = vmatprep.subr.bf16.mxu1 %v7362_v50 }
 0x513   :  { %2994 = vmatprep.mubr.bf16.mxu0 %v7363_v8  ;;  %4545 = vmatprep.mubr.msk.bf16.mxu1 %vm5394_vm4, %v7362_v50 }
 0x515   :  { %2965 = vmatpush1.bf16.msra.mxu0 %v6677_v3  ;;  %4532 = vmatpush3.bf16.msra.mxu1 %v6680_v17 }
 0x516   :  { %2966 = vmatprep.subr.bf16.mxu0 %v6683_v6  ;;  %4533 = vmatprep.subr.bf16.mxu1 %v7362_v50 }
 0x519   :  { %2967 = vmatpush1.bf16.msra.mxu0 %v6687_v42  ;;  %4534 = vmatpush3.bf16.msra.mxu1 %v6690_v56 }
 0x51a   :  { %2968 = vmatprep.subr.bf16.mxu0 %v6693_v48  ;;  %4535 = vmatprep.subr.bf16.mxu1 %v7362_v50 }
 0x51d   :  { %2969 = vmatpush1.bf16.msra.mxu0 %v6697_v0  ;;  %4536 = vmatpush3.bf16.msra.mxu1 %v6700_v18 }
 0x51e   :  { %2970 = vmatprep.subr.bf16.mxu0 %v6703_v32  ;;  %4537 = vmatprep.subr.bf16.mxu1 %v7362_v50 }
 0x521   :  { %2971 = vmatpush1.bf16.msra.mxu0 %v6707_v43  ;;  %4538 = vmatpush3.bf16.msra.mxu1 %v6710_v25 }
 0x522   :  { %2972 = vmatprep.subr.bf16.mxu0 %v6713_v60  ;;  %4539 = vmatprep.subr.bf16.mxu1 %v7362_v50 }
 0x525   :  { %2973 = vmatpush1.bf16.msra.mxu0 %v6717_v49  ;;  %4540 = vmatpush3.bf16.msra.mxu1 %v6720_v19 }
 0x526   :  { %2974 = vmatprep.subr.bf16.mxu0 %v6723_v2  ;;  %4541 = vmatprep.subr.bf16.mxu1 %v7362_v50 }
 0x529   :  { %2975 = vmatpush1.bf16.msra.mxu0 %v6727_v59  ;;  %4542 = vmatpush3.bf16.msra.mxu1 %v6730_v39 }
 0x52a   :  { %2976 = vmatprep.subr.bf16.mxu0 %v6733_v4  ;;  %4543 = vmatprep.subr.bf16.mxu1 %v7362_v50 }
 0x52d   :  { %2977 = vmatpush1.bf16.msra.mxu0 %v6737_v35  ;;  %4544 = vmatpush3.bf16.msra.mxu1 %v6740_v57 }
 0x52e   :  { %3118 = vmatprep.subr.bf16.mxu0 %v6743_v22  ;;  %4549 = vmatprep.subr.bf16.mxu1 %v7362_v50 }
 0x5a9   :  { %v2684_v34 = vpop.f32.mrb[92].mxu0  ;;  %v2727_v31 = vpop.f32.mrb[68].mxu1 }
 0x5aa   :  { %v2740_v54 = vadd.f32 %v2734_v41, %v2684_v34  ;;  %v2686_v10 = vpop.f32.mrb[93].mxu0  ;;  %v4507_v27 = vpop.f32.mrb[69].mxu1 }
 0x5ab   :  { %v2754_v44 = vadd.f32 %v2735_v45, %v2686_v10  ;;  %v2688_v38 = vpop.f32.mrb[94].mxu0  ;;  %v2730_v61 = vpop.f32.mrb[70].mxu1  ;;  %v2768_v27 = vadd.f32 %v6545_v52, %v2727_v31 }
 0x5ac   :  { %v4105_v36 = vmul.f32 -1.442695, %v2740_v54  ;;  %v2741_v47 = vadd.f32 %v2737_v15, %v2688_v38  ;;  %v2690_v1 = vpop.f32.mrb[95].mxu0  ;;  %v4508_v24 = vpop.f32.mrb[71].mxu1 }
 0x5ad   :  { %v2755_v33 = vadd.f32 %v2738_v40, %v2690_v1  ;;  %v4107_v13 = vmul.f32 -1.442695, %v2754_v44  ;;  %v7424_v40 = vld [vmem:[#allocation32_spill] sm:$0xff] }
 0x5ae   :  { %4972 = vpow2.f32 %v4105_v36  ;;  %v4106_v37 = vmul.f32 -1.442695, %v2741_v47  ;;  %v2736_v36 = vunpack.c.l.bf16 %v7424_v40  ;;  %v2739_v44 = vunpack.c.h.bf16 %v7424_v40 }
 0x5af   :  { %v4108_v22 = vmul.f32 -1.442695, %v2755_v33 }
 0x5b0   :  { %4974 = vpow2.f32 %v4106_v37 }
 0x5b1   :  { %4976 = vpow2.f32 %v4107_v13  ;;  %v2769_v13 = vadd.f32 %v6545_v52, %v2730_v61 }
 0x5b2   :  { %4978 = vpow2.f32 %v4108_v22 }
 0x5b8   :  { %v4973_v41 = vpop.eup %4972 }
 0x5b9   :  { %v2748_v34 = vadd.f32 1.0, %v4973_v41 }
 0x5ba   :  { %v4975_v23 = vpop.eup %4974 }
 0x5bb   :  { %4980 = vrcp.f32 %v2748_v34  ;;  %v2749_v45 = vadd.f32 1.0, %v4975_v23  ;;  %v4977_v10 = vpop.eup %4976 }
 0x5bc   :  { %v4979_v5 = vpop.eup %4978  ;;  %v2762_v54 = vadd.f32 1.0, %v4977_v10 }
 0x5bd   :  { %4982 = vrcp.f32 %v2749_v45  ;;  %v2763_v15 = vadd.f32 1.0, %v4979_v5 }
 0x5be   :  { %4984 = vrcp.f32 %v2762_v54 }
 0x5bf   :  { %4986 = vrcp.f32 %v2763_v15 }
 0x5c5   :  { %v4981_v38 = vpop.eup %4980 }
 0x5c6   :  { %v2770_v37 = vmul.f32 %v4981_v38, %v2768_v27 }
 0x5c7   :  { %v4983_v22 = vpop.eup %4982 }
 0x5c8   :  { %v2772_v47 = vadd.f32 %v2770_v37, %v2736_v36  ;;  %v2771_v1 = vmul.f32 %v4983_v22, %v2769_v13  ;;  %v4985_v33 = vpop.eup %4984 }
 0x5c9   :  { %v4987_v41 = vpop.eup %4986  ;;  %v2776_v31 = vsub.f32 1.0, %v4985_v33  ;;  %v2780_v23 = vmul.f32 %v4985_v33, %v6564_v12  ;;  %v7426_v33 = vld [vmem:[#allocation51_spill] sm:$0xff] }
 0x5ca   :  { %4988 = vtanh.f32 %v2772_v47  ;;  %v2773_v24 = vadd.f32 %v2771_v1, %v2739_v44  ;;  %v2777_v45 = vsub.f32 1.0, %v4987_v41  ;;  %v2781_v61 = vmul.f32 %v4987_v41, %v6569_v51  ;;  %v6773_v47 = vld [vmem:[#allocation11 + $0xc0] ss:$12 sps:$4 sm:$0xff]  }
 0x5cb   :  { %v2891_v41 = vunpack.c.l.bf16 %v7426_v33 }
 0x5cc   :  { %4990 = vtanh.f32 %v2773_v24 }
 0x5d4   :  { %v4989_v34 = vpop.eup %4988 }
 0x5d5   :  { %v2778_v10 = vmul.f32 %v4989_v34, %v2776_v31  ;;  %v6790_v31 = vld [vmem:[#allocation11 + $0xd8] ss:$12 sps:$4 sm:$0xff]   ;;  %v6793_v34 = vld [vmem:[#allocation11 + $0xe0] ss:$12 sps:$4 sm:$0xff]  }
 0x5d6   :  { %v4991_v5 = vpop.eup %4990 }
 0x5d7   :  { %v2779_v54 = vmul.f32 %v4991_v5, %v2777_v45  ;;  %v2782_v27 = vadd.f32 %v2780_v23, %v2778_v10  ;;  %v2893_v5 = vunpack.c.h.bf16 %v7425_v55  ;;  %v6805_v55 = vld [vmem:[#allocation11 + $0xf8] ss:$12 sps:$4 sm:$0xff]  }
 0x5d9   :  { %v2783_v38 = vadd.f32 %v2781_v61, %v2779_v54  ;;  %v2788_v15 = vsel %vm2623_vm0, %v2782_v27, 0.0  ;;  %v6762_v36 = vsel %vm2623_vm0, %v2782_v27, %v6564_v12  ;;  %v6776_v12 = vld [vmem:[#allocation11 + $0xc8] ss:$12 sps:$4 sm:$0xff]  }
 0x5da   :  { %v4169_v40 = vpack.c.bf16 %v2788_v15, %v2788_v15  ;;  %v6797_v61 = vld [vmem:[#allocation11 + $0xf4] ss:$12 sps:$4 sm:$0xff]   ;;  %v2894_v15 = vunpack.c.h.bf16 %v7426_v33  ;;  %v6811_v33 = vld [vmem:[#allocation11 + $0x110] ss:$12 sps:$4 sm:$0xff]  }
 0x5db   :  { %v6767_v37 = vsel %vm2624_vm2, %v2783_v38, %v6569_v51  ;;  %v2789_v13 = vsel %vm2624_vm2, %v2783_v38, 0.0  ;;  %v6779_v51 = vld [vmem:[#allocation11 + $0xdc] ss:$12 sps:$4 sm:$0xff]  }
 0x5dc   :  { %v4170_v22 = vpack.c.bf16 %v2789_v13, %v2789_v13  ;;  %2798 = vst [vmem:[#allocation13 + $0x40] sm:$0xf] %v4169_v40  ;;  %v2961_v44 = vpack.c.bf16 %v6767_v37, %v6762_v36 }
 0x5de   :  { %2799 = vst [vmem:[#allocation13 + $0x48] sm:$0xf] %v4170_v22  ;;  %2995 = vmatmul.mubr.bf16.vlgmr.msra.gmra.mrb[100].mxu0 %v2961_v44  ;;  %4546 = vmatmul.mubr.bf16.vlgmr.msra.gmra.mrb[76].mxu1 %v2961_v44 }
 0x5df   :  { %3119 = vmatpush1.bf16.msra.mxu0 %v6773_v47  ;;  %4550 = vmatpush3.bf16.msra.mxu1 %v6776_v12 }
 0x5e0   :  { %3120 = vmatprep.subr.bf16.mxu0 %v6779_v51  ;;  %4551 = vmatprep.subr.bf16.mxu1 %v7362_v50 }
 0x5e1   :  { %3150 = vmatprep.mubr.bf16.mxu0 %v7363_v8  ;;  %4565 = vmatprep.mubr.msk.bf16.mxu1 %vm5394_vm4, %v7362_v50 }
 0x5e3   :  { %v2840_v1 = vpop.f32.mrb[96].mxu0  ;;  %v6787_v24 = vpop.f32.mrb[72].mxu1  ;;  %3121 = vmatpush1.bf16.msra.mxu0 %v6790_v31  ;;  %4552 = vmatpush3.bf16.msra.mxu1 %v6793_v34 }
 0x5e4   :  { %v2896_v23 = vadd.f32 %v2890_v29, %v2840_v1  ;;  %v2842_v45 = vpop.f32.mrb[97].mxu0  ;;  %v4527_v10 = vpop.f32.mrb[73].mxu1  ;;  %3122 = vmatprep.subr.bf16.mxu0 %v6797_v61  ;;  %4553 = vmatprep.subr.bf16.mxu1 %v7362_v50 }
 0x5e5   :  { %v2910_v54 = vadd.f32 %v2891_v41, %v2842_v45  ;;  %v2844_v27 = vpop.f32.mrb[98].mxu0  ;;  %v6801_v38 = vpop.f32.mrb[74].mxu1  ;;  %v6817_v45 = vld [vmem:[#allocation11 + $0x128] ss:$12 sps:$4 sm:$0xff]  }
 0x5e6   :  { %v4111_v40 = vmul.f32 -1.442695, %v2896_v23  ;;  %v2897_v13 = vadd.f32 %v2893_v5, %v2844_v27  ;;  %v2846_v22 = vpop.f32.mrb[99].mxu0  ;;  %v4528_v44 = vpop.f32.mrb[75].mxu1  ;;  %7427 = vst [vmem:[#allocation72_spill] sm:$0xff] %v6817_v45 }
 0x5e7   :  { %v2911_v29 = vadd.f32 %v2894_v15, %v2846_v22  ;;  %3123 = vmatpush1.bf16.msra.mxu0 %v6592_v46  ;;  %4554 = vmatpush3.bf16.msra.mxu1 %v6805_v55  ;;  %v4113_v41 = vmul.f32 -1.442695, %v2910_v54  ;;  %v6822_v54 = vld [vmem:[#allocation11 + $0x138] ss:$12 sps:$4 sm:$0xff]   ;;  %v6825_v27 = vld [vmem:[#allocation11 + $0x140] ss:$12 sps:$4 sm:$0xff]  }
 0x5e8   :  { %4992 = vpow2.f32 %v4111_v40  ;;  %v4112_v1 = vmul.f32 -1.442695, %v2897_v13  ;;  %3124 = vmatprep.subr.bf16.mxu0 %v6596_v53  ;;  %4555 = vmatprep.subr.bf16.mxu1 %v7362_v50  ;;  %7428 = vst [vmem:[#allocation73_spill] sm:$0xff] %v6822_v54  ;;  %7429 = vst [vmem:[#allocation74_spill] sm:$0xff] %v6825_v27  ;;  %v6828_v40 = vld [vmem:[#allocation11 + $0x154] ss:$12 sps:$4 sm:$0xff]  }
 0x5e9   :  { %v4114_v23 = vmul.f32 -1.442695, %v2911_v29  ;;  %7430 = vst [vmem:[#allocation75_spill] sm:$0xff] %v6828_v40  ;;  %v6832_v22 = vld [vmem:[#allocation11 + $0x150] ss:$12 sps:$4 sm:$0xff]  }
 0x5ea   :  { %4994 = vpow2.f32 %v4112_v1  ;;  %7431 = vst [vmem:[#allocation60_spill] sm:$0xff] %v6832_v22  ;;  %v6835_v44 = vld [vmem:[#allocation11 + $0x158] ss:$12 sps:$4 sm:$0xff]  }
 0x5eb   :  { %3125 = vmatpush1.bf16.msra.mxu0 %v6600_v20  ;;  %4556 = vmatpush3.bf16.msra.mxu1 %v6811_v33  ;;  %4996 = vpow2.f32 %v4113_v41  ;;  %7432 = vst [vmem:[#allocation57_spill] sm:$0xff] %v6835_v44  ;;  %v6838_v29 = vld [vmem:[#allocation11 + $0x16c] ss:$12 sps:$4 sm:$0xff]  }
 0x5ec   :  { %3126 = vmatprep.subr.bf16.mxu0 %v6604_v21  ;;  %4557 = vmatprep.subr.bf16.mxu1 %v7362_v50  ;;  %4998 = vpow2.f32 %v4114_v23  ;;  %7433 = vst [vmem:[#allocation63_spill] sm:$0xff] %v6838_v29  ;;  %v6842_v23 = vld [vmem:[#allocation11 + $0x168] ss:$12 sps:$4 sm:$0xff]  }
 0x5ed   :  { %7434 = vst [vmem:[#allocation64_spill] sm:$0xff] %v6842_v23 }
 0x5ef   :  { %3127 = vmatpush1.bf16.msra.mxu0 %v6608_v28  ;;  %4558 = vmatpush3.bf16.msra.mxu1 %v6817_v45 }
 0x5f0   :  { %3128 = vmatprep.subr.bf16.mxu0 %v6612_v7  ;;  %4559 = vmatprep.subr.bf16.mxu1 %v7362_v50 }
 0x5f2   :  { %v4993_v10 = vpop.eup %4992 }
 0x5f3   :  { %v2904_v5 = vadd.f32 1.0, %v4993_v10  ;;  %3129 = vmatpush1.bf16.msra.mxu0 %v6822_v54  ;;  %4560 = vmatpush3.bf16.msra.mxu1 %v6825_v27  ;;  %v6845_v10 = vld [vmem:[#allocation11 + $0x170] ss:$12 sps:$4 sm:$0xff]  }
 0x5f4   :  { %v4995_v15 = vpop.eup %4994  ;;  %3130 = vmatprep.subr.bf16.mxu0 %v6828_v40  ;;  %4561 = vmatprep.subr.bf16.mxu1 %v7362_v50  ;;  %7435 = vst [vmem:[#allocation65_spill] sm:$0xff] %v6845_v10 }
 0x5f5   :  { %5000 = vrcp.f32 %v2904_v5  ;;  %v2905_v13 = vadd.f32 1.0, %v4995_v15  ;;  %v4997_v1 = vpop.eup %4996  ;;  %v2924_v15 = vadd.f32 %v6633_v9, %v6787_v24 }
 0x5f6   :  { %v4999_v41 = vpop.eup %4998  ;;  %v2918_v5 = vadd.f32 1.0, %v4997_v1 }
 0x5f7   :  { %5002 = vrcp.f32 %v2905_v13  ;;  %3131 = vmatpush1.bf16.msra.mxu0 %v6832_v22  ;;  %4562 = vmatpush3.bf16.msra.mxu1 %v6835_v44  ;;  %v2919_v13 = vadd.f32 1.0, %v4999_v41  ;;  %v7436_v44 = vld [vmem:[#allocation52_spill] sm:$0xff] }
 0x5f8   :  { %3132 = vmatprep.subr.bf16.mxu0 %v6838_v29  ;;  %4563 = vmatprep.subr.bf16.mxu1 %v7362_v50  ;;  %v2892_v22 = vunpack.c.l.bf16 %v7436_v44  ;;  %5004 = vrcp.f32 %v2918_v5 }
 0x5f9   :  { %5006 = vrcp.f32 %v2919_v13 }
 0x5fb   :  { %3133 = vmatpush1.bf16.msra.mxu0 %v6842_v23  ;;  %4564 = vmatpush3.bf16.msra.mxu1 %v6845_v10  ;;  %v2925_v23 = vadd.f32 %v6633_v9, %v6801_v38  ;;  %v2895_v10 = vunpack.c.h.bf16 %v7436_v44 }
 0x5fc   :  { %3274 = vmatprep.subr.bf16.mxu0 %v6626_v63  ;;  %4569 = vmatprep.subr.bf16.mxu1 %v7362_v50 }
 0x5ff   :  { %v5001_v29 = vpop.eup %5000 }
 0x600   :  { %v2926_v40 = vmul.f32 %v5001_v29, %v2924_v15 }
 0x601   :  { %v5003_v27 = vpop.eup %5002 }
 0x602   :  { %v2928_v1 = vadd.f32 %v2926_v40, %v2892_v22  ;;  %v2927_v54 = vmul.f32 %v5003_v27, %v2925_v23  ;;  %v5005_v7 = vpop.eup %5004 }
 0x603   :  { %v5007_v24 = vpop.eup %5006  ;;  %v2932_v41 = vsub.f32 1.0, %v5005_v7  ;;  %v2936_v28 = vmul.f32 %v5005_v7, %v6653_v16 }
 0x604   :  { %5008 = vtanh.f32 %v2928_v1  ;;  %v2929_v63 = vadd.f32 %v2927_v54, %v2895_v10  ;;  %v2933_v29 = vsub.f32 1.0, %v5007_v24  ;;  %v2937_v38 = vmul.f32 %v5007_v24, %v6658_v14 }
 0x605   :  { %v3049_v1 = vunpack.c.h.bf16 %v7438_v58 }
 0x606   :  { %5010 = vtanh.f32 %v2929_v63 }
 0x60e   :  { %v5009_v45 = vpop.eup %5008 }
 0x60f   :  { %v2934_v5 = vmul.f32 %v5009_v45, %v2932_v41 }
 0x610   :  { %v5011_v15 = vpop.eup %5010 }
 0x611   :  { %v2935_v9 = vmul.f32 %v5011_v15, %v2933_v29  ;;  %v2938_v21 = vadd.f32 %v2936_v28, %v2934_v5 }
 0x613   :  { %v2939_v44 = vadd.f32 %v2937_v38, %v2935_v9  ;;  %v2944_v27 = vsel %vm2449_vm14, %v2938_v21, 0.0  ;;  %v6863_v63 = vsel %vm2449_vm14, %v2938_v21, %v6653_v16  ;;  %v3046_v21 = vunpack.c.l.bf16 %v7438_v58 }
 0x614   :  { %v4171_v40 = vpack.c.bf16 %v2944_v27, %v2944_v27 }
 0x615   :  { %v6868_v7 = vsel %vm2450_vm15, %v2939_v44, %v6658_v14  ;;  %v2945_v45 = vsel %vm2450_vm15, %v2939_v44, 0.0  ;;  %v7439_v14 = vld [vmem:[#allocation37_spill] sm:$0xff] }
 0x616   :  { %v4172_v54 = vpack.c.bf16 %v2945_v45, %v2945_v45  ;;  %2954 = vst [vmem:[#allocation13 + $0x34] sm:$0xf] %v4171_v40  ;;  %v3117_v28 = vpack.c.bf16 %v6868_v7, %v6863_v63  ;;  %v3047_v22 = vunpack.c.l.bf16 %v7439_v14  ;;  %v3050_v5 = vunpack.c.h.bf16 %v7439_v14 }
 0x618   :  { %2955 = vst [vmem:[#allocation13 + $0x3c] sm:$0xf] %v4172_v54  ;;  %3151 = vmatmul.mubr.bf16.vlgmr.msra.gmra.mrb[104].mxu0 %v3117_v28  ;;  %4566 = vmatmul.mubr.bf16.vlgmr.msra.gmra.mrb[80].mxu1 %v3117_v28 }
 0x619   :  { %3275 = vmatpush1.bf16.msra.mxu0 %v6664_v30  ;;  %4570 = vmatpush3.bf16.msra.mxu1 %v6667_v26 }
 0x61a   :  { %3276 = vmatprep.subr.bf16.mxu0 %v6670_v11  ;;  %4571 = vmatprep.subr.bf16.mxu1 %v7362_v50 }
 0x61b   :  { %3306 = vmatprep.mubr.bf16.mxu0 %v7363_v8  ;;  %4585 = vmatprep.mubr.msk.bf16.mxu1 %vm5394_vm4, %v7362_v50 }
 0x61d   :  { %3277 = vmatpush1.bf16.msra.mxu0 %v6677_v3  ;;  %4572 = vmatpush3.bf16.msra.mxu1 %v6680_v17 }
 0x61e   :  { %3278 = vmatprep.subr.bf16.mxu0 %v6683_v6  ;;  %4573 = vmatprep.subr.bf16.mxu1 %v7362_v50 }
 0x621   :  { %3279 = vmatpush1.bf16.msra.mxu0 %v6687_v42  ;;  %4574 = vmatpush3.bf16.msra.mxu1 %v6690_v56 }
 0x622   :  { %3280 = vmatprep.subr.bf16.mxu0 %v6693_v48  ;;  %4575 = vmatprep.subr.bf16.mxu1 %v7362_v50 }
 0x625   :  { %3281 = vmatpush1.bf16.msra.mxu0 %v6697_v0  ;;  %4576 = vmatpush3.bf16.msra.mxu1 %v6700_v18 }
 0x626   :  { %3282 = vmatprep.subr.bf16.mxu0 %v6703_v32  ;;  %4577 = vmatprep.subr.bf16.mxu1 %v7362_v50 }
 0x629   :  { %3283 = vmatpush1.bf16.msra.mxu0 %v6707_v43  ;;  %4578 = vmatpush3.bf16.msra.mxu1 %v6710_v25 }
 0x62a   :  { %3284 = vmatprep.subr.bf16.mxu0 %v6713_v60  ;;  %4579 = vmatprep.subr.bf16.mxu1 %v7362_v50 }
 0x62d   :  { %3285 = vmatpush1.bf16.msra.mxu0 %v6717_v49  ;;  %4580 = vmatpush3.bf16.msra.mxu1 %v6720_v19 }
 0x62e   :  { %3286 = vmatprep.subr.bf16.mxu0 %v6723_v2  ;;  %4581 = vmatprep.subr.bf16.mxu1 %v7362_v50 }
 0x631   :  { %3287 = vmatpush1.bf16.msra.mxu0 %v6727_v59  ;;  %4582 = vmatpush3.bf16.msra.mxu1 %v6730_v39 }
 0x632   :  { %3288 = vmatprep.subr.bf16.mxu0 %v6733_v4  ;;  %4583 = vmatprep.subr.bf16.mxu1 %v7362_v50 }
 0x635   :  { %3289 = vmatpush1.bf16.msra.mxu0 %v6737_v35  ;;  %4584 = vmatpush3.bf16.msra.mxu1 %v6740_v57 }
 0x636   :  { %3430 = vmatprep.subr.bf16.mxu0 %v7437_v62  ;;  %4589 = vmatprep.subr.bf16.mxu1 %v7362_v50 }
 0x6b1   :  { %v2996_v9 = vpop.f32.mrb[100].mxu0  ;;  %v3039_v16 = vpop.f32.mrb[76].mxu1 }
 0x6b2   :  { %v3052_v23 = vadd.f32 %v3046_v21, %v2996_v9  ;;  %v2998_v10 = vpop.f32.mrb[101].mxu0  ;;  %v4547_v13 = vpop.f32.mrb[77].mxu1 }
 0x6b3   :  { %v3066_v24 = vadd.f32 %v3047_v22, %v2998_v10  ;;  %v3000_v41 = vpop.f32.mrb[102].mxu0  ;;  %v3042_v29 = vpop.f32.mrb[78].mxu1  ;;  %v3080_v13 = vadd.f32 %v6545_v52, %v3039_v16 }
 0x6b4   :  { %v4117_v15 = vmul.f32 -1.442695, %v3052_v23  ;;  %v3053_v38 = vadd.f32 %v3049_v1, %v3000_v41  ;;  %v3002_v44 = vpop.f32.mrb[103].mxu0  ;;  %v4548_v27 = vpop.f32.mrb[79].mxu1 }
 0x6b5   :  { %v3067_v40 = vadd.f32 %v3050_v5, %v3002_v44  ;;  %v4119_v54 = vmul.f32 -1.442695, %v3066_v24  ;;  %v7440_v5 = vld [vmem:[#allocation36_spill] sm:$0xff]  ;;  %v3081_v24 = vadd.f32 %v6545_v52, %v3042_v29 }
 0x6b6   :  { %5012 = vpow2.f32 %v4117_v15  ;;  %v4118_v45 = vmul.f32 -1.442695, %v3053_v38  ;;  %v3048_v15 = vunpack.c.l.bf16 %v7440_v5  ;;  %v3051_v27 = vunpack.c.h.bf16 %v7440_v5 }
 0x6b7   :  { %v4120_v28 = vmul.f32 -1.442695, %v3067_v40 }
 0x6b8   :  { %5014 = vpow2.f32 %v4118_v45 }
 0x6b9   :  { %5016 = vpow2.f32 %v4119_v54 }
 0x6ba   :  { %5018 = vpow2.f32 %v4120_v28 }
 0x6c0   :  { %v5013_v21 = vpop.eup %5012 }
 0x6c1   :  { %v3060_v9 = vadd.f32 1.0, %v5013_v21 }
 0x6c2   :  { %v5015_v58 = vpop.eup %5014 }
 0x6c3   :  { %5020 = vrcp.f32 %v3060_v9  ;;  %v3061_v22 = vadd.f32 1.0, %v5015_v58  ;;  %v5017_v10 = vpop.eup %5016 }
 0x6c4   :  { %v5019_v14 = vpop.eup %5018  ;;  %v3074_v23 = vadd.f32 1.0, %v5017_v10 }
 0x6c5   :  { %5022 = vrcp.f32 %v3061_v22  ;;  %v3075_v1 = vadd.f32 1.0, %v5019_v14 }
 0x6c6   :  { %5024 = vrcp.f32 %v3074_v23 }
 0x6c7   :  { %5026 = vrcp.f32 %v3075_v1 }
 0x6cd   :  { %v5021_v41 = vpop.eup %5020 }
 0x6ce   :  { %v3082_v38 = vmul.f32 %v5021_v41, %v3080_v13 }
 0x6cf   :  { %v5023_v44 = vpop.eup %5022 }
 0x6d0   :  { %v3084_v40 = vadd.f32 %v3082_v38, %v3048_v15  ;;  %v3083_v45 = vmul.f32 %v5023_v44, %v3081_v24  ;;  %v5025_v28 = vpop.eup %5024 }
 0x6d1   :  { %v5027_v21 = vpop.eup %5026  ;;  %v3088_v16 = vsub.f32 1.0, %v5025_v28  ;;  %v3092_v58 = vmul.f32 %v5025_v28, %v6762_v36  ;;  %v7444_v28 = vld [vmem:[#allocation49_spill] sm:$0xff] }
 0x6d2   :  { %5028 = vtanh.f32 %v3084_v40  ;;  %v3085_v54 = vadd.f32 %v3083_v45, %v3051_v27  ;;  %v3089_v22 = vsub.f32 1.0, %v5027_v21  ;;  %v3093_v52 = vmul.f32 %v5027_v21, %v6767_v37 }
 0x6d3   :  { %v3203_v21 = vunpack.c.l.bf16 %v7444_v28 }
 0x6d4   :  { %5030 = vtanh.f32 %v3085_v54 }
 0x6dc   :  { %v5029_v9 = vpop.eup %5028 }
 0x6dd   :  { %v3090_v10 = vmul.f32 %v5029_v9, %v3088_v16 }
 0x6de   :  { %v5031_v14 = vpop.eup %5030 }
 0x6df   :  { %v3091_v29 = vmul.f32 %v5031_v14, %v3089_v22  ;;  %v3094_v23 = vadd.f32 %v3092_v58, %v3090_v10 }
 0x6e1   :  { %v3095_v13 = vadd.f32 %v3093_v52, %v3091_v29  ;;  %v3100_v1 = vsel %vm2275_vm12, %v3094_v23, 0.0  ;;  %v6924_v15 = vsel %vm2275_vm12, %v3094_v23, %v6762_v36  ;;  %v7443_v36 = vld [vmem:[#allocation26_spill] sm:$0xff]  ;;  %v3206_v29 = vunpack.c.h.bf16 %v7444_v28 }
 0x6e2   :  { %v4173_v5 = vpack.c.bf16 %v3100_v1, %v3100_v1  ;;  %v3205_v22 = vunpack.c.h.bf16 %v7443_v36  ;;  %v7450_v28 = vld [vmem:[#allocation74_spill] sm:$0xff] }
 0x6e3   :  { %v6929_v24 = vsel %vm2276_vm13, %v3095_v13, %v6767_v37  ;;  %v3101_v44 = vsel %vm2276_vm13, %v3095_v13, 0.0  ;;  %v3202_v37 = vunpack.c.l.bf16 %v7443_v36  ;;  %v7447_v36 = vld [vmem:[#allocation72_spill] sm:$0xff] }
 0x6e4   :  { %v4174_v27 = vpack.c.bf16 %v3101_v44, %v3101_v44  ;;  %3110 = vst [vmem:[#allocation13 + $0x50] sm:$0xf] %v4173_v5  ;;  %v3273_v40 = vpack.c.bf16 %v6929_v24, %v6924_v15 }
 0x6e6   :  { %3111 = vst [vmem:[#allocation13 + $0x58] sm:$0xf] %v4174_v27  ;;  %3307 = vmatmul.mubr.bf16.vlgmr.msra.gmra.mrb[108].mxu0 %v3273_v40  ;;  %4586 = vmatmul.mubr.bf16.vlgmr.msra.gmra.mrb[84].mxu1 %v3273_v40  ;;  %v7445_v27 = vld [vmem:[#allocation56_spill] sm:$0xff] }
 0x6e7   :  { %3431 = vmatpush1.bf16.msra.mxu0 %v6773_v47  ;;  %4590 = vmatpush3.bf16.msra.mxu1 %v6776_v12 }
 0x6e8   :  { %3432 = vmatprep.subr.bf16.mxu0 %v6779_v51  ;;  %4591 = vmatprep.subr.bf16.mxu1 %v7362_v50 }
 0x6e9   :  { %3462 = vmatprep.mubr.bf16.mxu0 %v7363_v8  ;;  %4605 = vmatprep.mubr.msk.bf16.mxu1 %vm5394_vm4, %v7362_v50 }
 0x6eb   :  { %v3152_v45 = vpop.f32.mrb[104].mxu0  ;;  %v3195_v54 = vpop.f32.mrb[80].mxu1  ;;  %3433 = vmatpush1.bf16.msra.mxu0 %v6790_v31  ;;  %4592 = vmatpush3.bf16.msra.mxu1 %v6793_v34 }
 0x6ec   :  { %v3208_v16 = vadd.f32 %v3202_v37, %v3152_v45  ;;  %v3154_v9 = vpop.f32.mrb[105].mxu0  ;;  %v4567_v58 = vpop.f32.mrb[81].mxu1  ;;  %3434 = vmatprep.subr.bf16.mxu0 %v6797_v61  ;;  %4593 = vmatprep.subr.bf16.mxu1 %v7362_v50  ;;  %v7448_v37 = vld [vmem:[#allocation59_spill] sm:$0xff] }
 0x6ed   :  { %v3222_v10 = vadd.f32 %v3203_v21, %v3154_v9  ;;  %v3156_v14 = vpop.f32.mrb[106].mxu0  ;;  %v3198_v52 = vpop.f32.mrb[82].mxu1  ;;  %v7452_v58 = vld [vmem:[#allocation60_spill] sm:$0xff] }
 0x6ee   :  { %v4123_v23 = vmul.f32 -1.442695, %v3208_v16  ;;  %v3209_v13 = vadd.f32 %v3205_v22, %v3156_v14  ;;  %v3158_v41 = vpop.f32.mrb[107].mxu0  ;;  %v4568_v1 = vpop.f32.mrb[83].mxu1  ;;  %v7451_v16 = vld [vmem:[#allocation75_spill] sm:$0xff]  ;;  %v7453_v22 = vld [vmem:[#allocation57_spill] sm:$0xff] }
 0x6ef   :  { %v3223_v5 = vadd.f32 %v3206_v29, %v3158_v41  ;;  %3435 = vmatpush1.bf16.msra.mxu0 %v6592_v46  ;;  %4594 = vmatpush3.bf16.msra.mxu1 %v6805_v55  ;;  %v4125_v44 = vmul.f32 -1.442695, %v3222_v10  ;;  %v7446_v46 = vld [vmem:[#allocation68_spill] sm:$0xff]  ;;  %v7454_v10 = vld [vmem:[#allocation63_spill] sm:$0xff]  ;;  %v7457_v1 = vld [vmem:[#allocation69_spill] sm:$0xff] }
 0x6f0   :  { %5032 = vpow2.f32 %v4123_v23  ;;  %v4124_v38 = vmul.f32 -1.442695, %v3209_v13  ;;  %3436 = vmatprep.subr.bf16.mxu0 %v6596_v53  ;;  %4595 = vmatprep.subr.bf16.mxu1 %v7362_v50  ;;  %v7455_v23 = vld [vmem:[#allocation64_spill] sm:$0xff]  ;;  %v7456_v13 = vld [vmem:[#allocation65_spill] sm:$0xff] }
 0x6f1   :  { %v4126_v40 = vmul.f32 -1.442695, %v3223_v5  ;;  %v7458_v5 = vld [vmem:[#allocation70_spill] sm:$0xff] }
 0x6f2   :  { %5034 = vpow2.f32 %v4124_v38  ;;  %v3236_v38 = vadd.f32 %v7458_v5, %v3195_v54 }
 0x6f3   :  { %3437 = vmatpush1.bf16.msra.mxu0 %v6600_v20  ;;  %4596 = vmatpush3.bf16.msra.mxu1 %v6811_v33  ;;  %5036 = vpow2.f32 %v4125_v44  ;;  %v7449_v20 = vld [vmem:[#allocation73_spill] sm:$0xff] }
 0x6f4   :  { %3438 = vmatprep.subr.bf16.mxu0 %v7445_v27  ;;  %4597 = vmatprep.subr.bf16.mxu1 %v7362_v50  ;;  %5038 = vpow2.f32 %v4126_v40  ;;  %v7459_v40 = vld [vmem:[#allocation50_spill] sm:$0xff] }
 0x6f7   :  { %3439 = vmatpush1.bf16.msra.mxu0 %v7446_v46  ;;  %4598 = vmatpush3.bf16.msra.mxu1 %v7447_v36  ;;  %v3204_v46 = vunpack.c.l.bf16 %v7459_v40 }
 0x6f8   :  { %3440 = vmatprep.subr.bf16.mxu0 %v7448_v37  ;;  %4599 = vmatprep.subr.bf16.mxu1 %v7362_v50 }
 0x6fa   :  { %v5033_v53 = vpop.eup %5032 }
 0x6fb   :  { %v3216_v45 = vadd.f32 1.0, %v5033_v53  ;;  %3441 = vmatpush1.bf16.msra.mxu0 %v7449_v20  ;;  %4600 = vmatpush3.bf16.msra.mxu1 %v7450_v28  ;;  %v3237_v53 = vadd.f32 %v7458_v5, %v3198_v52 }
 0x6fc   :  { %v5035_v21 = vpop.eup %5034  ;;  %3442 = vmatprep.subr.bf16.mxu0 %v7451_v16  ;;  %4601 = vmatprep.subr.bf16.mxu1 %v7362_v50 }
 0x6fd   :  { %5040 = vrcp.f32 %v3216_v45  ;;  %v3217_v9 = vadd.f32 1.0, %v5035_v21  ;;  %v5037_v14 = vpop.eup %5036  ;;  %v3207_v21 = vunpack.c.h.bf16 %v7459_v40 }
 0x6fe   :  { %v5039_v29 = vpop.eup %5038  ;;  %v3230_v41 = vadd.f32 1.0, %v5037_v14 }
 0x6ff   :  { %5042 = vrcp.f32 %v3217_v9  ;;  %3443 = vmatpush1.bf16.msra.mxu0 %v7452_v58  ;;  %4602 = vmatpush3.bf16.msra.mxu1 %v7453_v22  ;;  %v3231_v44 = vadd.f32 1.0, %v5039_v29 }
 0x700   :  { %3444 = vmatprep.subr.bf16.mxu0 %v7454_v10  ;;  %4603 = vmatprep.subr.bf16.mxu1 %v7362_v50  ;;  %5044 = vrcp.f32 %v3230_v41 }
 0x701   :  { %5046 = vrcp.f32 %v3231_v44 }
 0x703   :  { %3445 = vmatpush1.bf16.msra.mxu0 %v7455_v23  ;;  %4604 = vmatpush3.bf16.msra.mxu1 %v7456_v13 }
 0x704   :  { %3586 = vmatprep.subr.bf16.mxu0 %v7457_v1  ;;  %4609 = vmatprep.subr.bf16.mxu1 %v7362_v50 }
 0x707   :  { %v5041_v27 = vpop.eup %5040 }
 0x708   :  { %v3238_v37 = vmul.f32 %v5041_v27, %v3236_v38 }
 0x709   :  { %v5043_v45 = vpop.eup %5042 }
 0x70a   :  { %v3240_v9 = vadd.f32 %v3238_v37, %v3204_v46  ;;  %v3239_v13 = vmul.f32 %v5043_v45, %v3237_v53  ;;  %v5045_v1 = vpop.eup %5044 }
 0x70b   :  { %v5047_v23 = vpop.eup %5046  ;;  %v3244_v54 = vsub.f32 1.0, %v5045_v1  ;;  %v3248_v10 = vmul.f32 %v5045_v1, %v6863_v63  ;;  %v7038_v1 = vld [vmem:[%s7206_s6] ss:$0 sm:$0xff] }
 0x70c   :  { %5048 = vtanh.f32 %v3240_v9  ;;  %v3241_v14 = vadd.f32 %v3239_v13, %v3207_v21  ;;  %v3245_v22 = vsub.f32 1.0, %v5047_v23  ;;  %v3249_v52 = vmul.f32 %v5047_v23, %v6868_v7 }
 0x70e   :  { %5050 = vtanh.f32 %v3241_v14 }
 0x716   :  { %v5049_v29 = vpop.eup %5048 }
 0x717   :  { %v3246_v38 = vmul.f32 %v5049_v29, %v3244_v54 }
 0x718   :  { %v5051_v41 = vpop.eup %5050 }
 0x719   :  { %v3247_v5 = vmul.f32 %v5051_v41, %v3245_v22  ;;  %v3250_v27 = vadd.f32 %v3248_v10, %v3246_v38  ;;  %v7464_v41 = vld [vmem:[#allocation40_spill] sm:$0xff] }
 0x71a   :  { %v3363_v46 = vunpack.c.h.bf16 %v7464_v41 }
 0x71b   :  { %v3251_v40 = vadd.f32 %v3249_v52, %v3247_v5  ;;  %v3256_v44 = vsel %vm2101_vm10, %v3250_v27, 0.0  ;;  %v6985_v13 = vsel %vm2101_vm10, %v3250_v27, %v6863_v63  ;;  %v3360_v52 = vunpack.c.l.bf16 %v7464_v41  ;;  %v5233_v41 = vld [vmem:[#allocation11 + $0x108] ss:$12 sps:$4 sm:$0xff]  }
 0x71c   :  { %v4175_v37 = vpack.c.bf16 %v3256_v44, %v3256_v44 }
 0x71d   :  { %v6990_v45 = vsel %vm2102_vm11, %v3251_v40, %v6868_v7  ;;  %v3257_v23 = vsel %vm2102_vm11, %v3251_v40, 0.0 }
 0x71e   :  { %v4176_v22 = vpack.c.bf16 %v3257_v23, %v3257_v23  ;;  %3266 = vst [vmem:[#allocation13 + $0x24] sm:$0xf] %v4175_v37  ;;  %v3429_v10 = vpack.c.bf16 %v6990_v45, %v6985_v13 }
 0x720   :  { %3267 = vst [vmem:[#allocation13 + $0x2c] sm:$0xf] %v4176_v22  ;;  %3463 = vmatmul.mubr.bf16.vlgmr.msra.gmra.mrb[112].mxu0 %v3429_v10  ;;  %4606 = vmatmul.mubr.bf16.vlgmr.msra.gmra.mrb[88].mxu1 %v3429_v10 }
 0x721   :  { %3587 = vmatpush1.bf16.msra.mxu0 %v6664_v30  ;;  %4610 = vmatpush3.bf16.msra.mxu1 %v6667_v26  ;;  %v7462_v30 = vld [vmem:[#allocation39_spill] sm:$0xff] }
 0x722   :  { %3588 = vmatprep.subr.bf16.mxu0 %v6670_v11  ;;  %4611 = vmatprep.subr.bf16.mxu1 %v7362_v50  ;;  %v3358_v26 = vunpack.c.l.bf16 %v7462_v30 }
 0x723   :  { %3618 = vmatprep.mubr.bf16.mxu0 %v7363_v8  ;;  %4625 = vmatprep.mubr.msk.bf16.mxu1 %vm5394_vm4, %v7362_v50 }
 0x725   :  { %3589 = vmatpush1.bf16.msra.mxu0 %v6677_v3  ;;  %4612 = vmatpush3.bf16.msra.mxu1 %v6680_v17  ;;  %v7463_v17 = vld [vmem:[#allocation41_spill] sm:$0xff] }
 0x726   :  { %3590 = vmatprep.subr.bf16.mxu0 %v6683_v6  ;;  %4613 = vmatprep.subr.bf16.mxu1 %v7362_v50  ;;  %v3359_v6 = vunpack.c.l.bf16 %v7463_v17 }
 0x729   :  { %3591 = vmatpush1.bf16.msra.mxu0 %v6687_v42  ;;  %4614 = vmatpush3.bf16.msra.mxu1 %v6690_v56 }
 0x72a   :  { %3592 = vmatprep.subr.bf16.mxu0 %v6693_v48  ;;  %4615 = vmatprep.subr.bf16.mxu1 %v7362_v50 }
 0x72d   :  { %3593 = vmatpush1.bf16.msra.mxu0 %v6697_v0  ;;  %4616 = vmatpush3.bf16.msra.mxu1 %v6700_v18  ;;  %v3361_v0 = vunpack.c.h.bf16 %v7462_v30 }
 0x72e   :  { %3594 = vmatprep.subr.bf16.mxu0 %v6703_v32  ;;  %4617 = vmatprep.subr.bf16.mxu1 %v7362_v50 }
 0x731   :  { %3595 = vmatpush1.bf16.msra.mxu0 %v6707_v43  ;;  %4618 = vmatpush3.bf16.msra.mxu1 %v6710_v25  ;;  %v3362_v25 = vunpack.c.h.bf16 %v7463_v17 }
 0x732   :  { %3596 = vmatprep.subr.bf16.mxu0 %v6713_v60  ;;  %4619 = vmatprep.subr.bf16.mxu1 %v7362_v50 }
 0x735   :  { %3597 = vmatpush1.bf16.msra.mxu0 %v6717_v49  ;;  %4620 = vmatpush3.bf16.msra.mxu1 %v6720_v19 }
 0x736   :  { %3598 = vmatprep.subr.bf16.mxu0 %v6723_v2  ;;  %4621 = vmatprep.subr.bf16.mxu1 %v7362_v50 }
 0x739   :  { %3599 = vmatpush1.bf16.msra.mxu0 %v6727_v59  ;;  %4622 = vmatpush3.bf16.msra.mxu1 %v6730_v39 }
 0x73a   :  { %3600 = vmatprep.subr.bf16.mxu0 %v6733_v4  ;;  %4623 = vmatprep.subr.bf16.mxu1 %v7362_v50 }
 0x73d   :  { %3601 = vmatpush1.bf16.msra.mxu0 %v6737_v35  ;;  %4624 = vmatpush3.bf16.msra.mxu1 %v6740_v57 }
 0x73e   :  { %3742 = vmatprep.subr.bf16.mxu0 %v7437_v62  ;;  %4629 = vmatprep.subr.bf16.mxu1 %v7362_v50 }
 0x7b9   :  { %v3308_v11 = vpop.f32.mrb[108].mxu0  ;;  %v3351_v3 = vpop.f32.mrb[84].mxu1 }
 0x7ba   :  { %v3364_v42 = vadd.f32 %v3358_v26, %v3308_v11  ;;  %v3310_v56 = vpop.f32.mrb[109].mxu0  ;;  %v4587_v48 = vpop.f32.mrb[85].mxu1  ;;  %v3392_v54 = vadd.f32 %v7038_v1, %v3351_v3 }
 0x7bb   :  { %v3378_v18 = vadd.f32 %v3359_v6, %v3310_v56  ;;  %v3312_v32 = vpop.f32.mrb[110].mxu0  ;;  %v3354_v43 = vpop.f32.mrb[86].mxu1 }
 0x7bc   :  { %v4129_v60 = vmul.f32 -1.442695, %v3364_v42  ;;  %v3365_v49 = vadd.f32 %v3361_v0, %v3312_v32  ;;  %v3314_v19 = vpop.f32.mrb[111].mxu0  ;;  %v4588_v2 = vpop.f32.mrb[87].mxu1  ;;  %v3393_v27 = vadd.f32 %v7038_v1, %v3354_v43 }
 0x7bd   :  { %v3379_v59 = vadd.f32 %v3362_v25, %v3314_v19  ;;  %v4131_v4 = vmul.f32 -1.442695, %v3378_v18 }
 0x7be   :  { %5052 = vpow2.f32 %v4129_v60  ;;  %v4130_v39 = vmul.f32 -1.442695, %v3365_v49 }
 0x7bf   :  { %v4132_v35 = vmul.f32 -1.442695, %v3379_v59 }
 0x7c0   :  { %5054 = vpow2.f32 %v4130_v39 }
 0x7c1   :  { %5056 = vpow2.f32 %v4131_v4  ;;  %v7468_v4 = vld [vmem:[#allocation47_spill] sm:$0xff] }
 0x7c2   :  { %5058 = vpow2.f32 %v4132_v35  ;;  %v3515_v35 = vunpack.c.l.bf16 %v7468_v4 }
 0x7c8   :  { %v5053_v57 = vpop.eup %5052 }
 0x7c9   :  { %v3372_v63 = vadd.f32 1.0, %v5053_v57 }
 0x7ca   :  { %v5055_v7 = vpop.eup %5054 }
 0x7cb   :  { %5060 = vrcp.f32 %v3372_v63  ;;  %v3373_v62 = vadd.f32 1.0, %v5055_v7  ;;  %v5057_v21 = vpop.eup %5056 }
 0x7cc   :  { %v5059_v9 = vpop.eup %5058  ;;  %v3386_v14 = vadd.f32 1.0, %v5057_v21 }
 0x7cd   :  { %5062 = vrcp.f32 %v3373_v62  ;;  %v3387_v29 = vadd.f32 1.0, %v5059_v9  ;;  %v3518_v62 = vunpack.c.h.bf16 %v7468_v4 }
 0x7ce   :  { %5064 = vrcp.f32 %v3386_v14 }
 0x7cf   :  { %5066 = vrcp.f32 %v3387_v29 }
 0x7d5   :  { %v5061_v38 = vpop.eup %5060 }
 0x7d6   :  { %v3394_v5 = vmul.f32 %v5061_v38, %v3392_v54  ;;  %v5232_v38 = vld [vmem:[#allocation11 + $0x10c] ss:$12 sps:$4 sm:$0xff]  }
 0x7d7   :  { %v5063_v40 = vpop.eup %5062 }
 0x7d8   :  { %v3396_v44 = vadd.f32 %v3394_v5, %v3360_v52  ;;  %v3395_v37 = vmul.f32 %v5063_v40, %v3393_v27  ;;  %v5065_v23 = vpop.eup %5064  ;;  %v5234_v52 = vld [vmem:[#allocation11 + $0x124] ss:$12 sps:$4 sm:$0xff]   ;;  %v5235_v27 = vld [vmem:[#allocation11 + $0x120] ss:$12 sps:$4 sm:$0xff]  }
 0x7d9   :  { %v5067_v22 = vpop.eup %5066  ;;  %v3400_v10 = vsub.f32 1.0, %v5065_v23  ;;  %v3404_v26 = vmul.f32 %v5065_v23, %v6924_v15  ;;  %v7471_v23 = vld [vmem:[#allocation64_spill] sm:$0xff] }
 0x7da   :  { %5068 = vtanh.f32 %v3396_v44  ;;  %v3397_v53 = vadd.f32 %v3395_v37, %v3363_v46  ;;  %v3401_v11 = vsub.f32 1.0, %v5067_v22  ;;  %v3405_v6 = vmul.f32 %v5067_v22, %v6929_v24  ;;  %v7470_v37 = vld [vmem:[#allocation63_spill] sm:$0xff]  ;;  %v7098_v22 = vld [vmem:[%s7206_s6 + $0x1] ss:$0 sm:$0xff]  ;;  %s5395_s6 = smov [#allocation14]  }
 0x7db   :  { %s3918_s30 = sshll.u32 %s5395_s6, 4  ;;  %s3919_s30 = int_to_ptr.vmem [resolvable:$true] %s3918_s30 }
 0x7dc   :  { %5070 = vtanh.f32 %v3397_v53  ;;  %s5326_s12 = scalar_lea.vmem %s3919_s30, 512  ;;  %p5331_p5 = scmp.lt.s32.totalorder %s3919_s30, %s3919_s30 }
 0x7dd   :  { %p5327_p4 = scmp.ne.s32.totalorder %s3919_s30, %s5326_s12  ;;  %p5332_p6 = scmp.lt.s32.totalorder %s5326_s12, %s5326_s12 }
 0x7df   :  { %p5333_p7 = por %p5332_p6, %p5331_p5 }
 0x7e1   :  { %p5334_p8 = pnand %p5333_p7, %p5327_p4 }
 0x7e4   :  { %v5069_v30 = vpop.eup %5068 }
 0x7e5   :  { %v3402_v3 = vmul.f32 %v5069_v30, %v3400_v10 }
 0x7e6   :  { %v5071_v17 = vpop.eup %5070 }
 0x7e7   :  { %v3403_v42 = vmul.f32 %v5071_v17, %v3401_v11  ;;  %v3406_v56 = vadd.f32 %v3404_v26, %v3402_v3  ;;  %v7473_v26 = vld [vmem:[#allocation48_spill] sm:$0xff] }
 0x7e8   :  { %v3516_v11 = vunpack.c.l.bf16 %v7473_v26 }
 0x7e9   :  { %v3407_v48 = vadd.f32 %v3405_v6, %v3403_v42  ;;  %v3412_v18 = vsel %vm1927_vm8, %v3406_v56, 0.0  ;;  %v7051_v43 = vsel %vm1927_vm8, %v3406_v56, %v6924_v15  ;;  %v7467_v15 = vld [vmem:[#allocation22_spill] sm:$0xff]  ;;  %v3519_v6 = vunpack.c.h.bf16 %v7473_v26 }
 0x7ea   :  { %v4177_v32 = vpack.c.bf16 %v3412_v18, %v3412_v18  ;;  %v3517_v57 = vunpack.c.h.bf16 %v7467_v15 }
 0x7eb   :  { %v7056_v60 = vsel %vm1928_vm9, %v3407_v48, %v6929_v24  ;;  %v3413_v49 = vsel %vm1928_vm9, %v3407_v48, 0.0  ;;  %v3514_v24 = vunpack.c.l.bf16 %v7467_v15 }
 0x7ec   :  { %v4178_v19 = vpack.c.bf16 %v3413_v49, %v3413_v49  ;;  %3422 = vst [vmem:[#allocation13 + $0x60] sm:$0xf] %v4177_v32  ;;  %v3585_v2 = vpack.c.bf16 %v7056_v60, %v7051_v43 }
 0x7ee   :  { %3423 = vst [vmem:[#allocation13 + $0x68] sm:$0xf] %v4178_v19  ;;  %3619 = vmatmul.mubr.bf16.vlgmr.msra.gmra.mrb[116].mxu0 %v3585_v2  ;;  %4626 = vmatmul.mubr.bf16.vlgmr.msra.gmra.mrb[92].mxu1 %v3585_v2 }
 0x7ef   :  { %3743 = vmatpush1.bf16.msra.mxu0 %v6773_v47  ;;  %4630 = vmatpush3.bf16.msra.mxu1 %v6776_v12 }
 0x7f0   :  { %3744 = vmatprep.subr.bf16.mxu0 %v6779_v51  ;;  %4631 = vmatprep.subr.bf16.mxu1 %v7362_v50 }
 0x7f1   :  { %3774 = vmatprep.mubr.bf16.mxu0 %v7363_v8  ;;  %4645 = vmatprep.mubr.msk.bf16.mxu1 %vm5394_vm4, %v7362_v50 }
 0x7f3   :  { %v3464_v59 = vpop.f32.mrb[112].mxu0  ;;  %v7070_v39 = vpop.f32.mrb[88].mxu1  ;;  %3745 = vmatpush1.bf16.msra.mxu0 %v6790_v31  ;;  %4632 = vmatpush3.bf16.msra.mxu1 %v6793_v34  ;;  %v5231_v34 = vld [vmem:[#allocation11 + $0xf0] ss:$12 sps:$4 sm:$0xff]  }
 0x7f4   :  { %v3520_v47 = vadd.f32 %v3514_v24, %v3464_v59  ;;  %v3466_v12 = vpop.f32.mrb[113].mxu0  ;;  %v4607_v51 = vpop.f32.mrb[89].mxu1  ;;  %3746 = vmatprep.subr.bf16.mxu0 %v6797_v61  ;;  %4633 = vmatprep.subr.bf16.mxu1 %v7362_v50 }
 0x7f5   :  { %v3534_v8 = vadd.f32 %v3515_v35, %v3466_v12  ;;  %v3468_v63 = vpop.f32.mrb[114].mxu0  ;;  %v3510_v7 = vpop.f32.mrb[90].mxu1 }
 0x7f6   :  { %v4135_v21 = vmul.f32 -1.442695, %v3520_v47  ;;  %v3521_v9 = vadd.f32 %v3517_v57, %v3468_v63  ;;  %v3470_v14 = vpop.f32.mrb[115].mxu0  ;;  %v4608_v31 = vpop.f32.mrb[91].mxu1  ;;  %v3549_v3 = vadd.f32 %v7098_v22, %v3510_v7 }
 0x7f7   :  { %v3535_v54 = vadd.f32 %v3518_v62, %v3470_v14  ;;  %3747 = vmatpush1.bf16.msra.mxu0 %v5231_v34  ;;  %4634 = vmatpush3.bf16.msra.mxu1 %v6805_v55  ;;  %v4137_v61 = vmul.f32 -1.442695, %v3534_v8  ;;  %v5236_v55 = vld [vmem:[#allocation11 + $0x13c] ss:$12 sps:$4 sm:$0xff]  }
 0x7f8   :  { %5072 = vpow2.f32 %v4135_v21  ;;  %v4136_v29 = vmul.f32 -1.442695, %v3521_v9  ;;  %3748 = vmatprep.subr.bf16.mxu0 %v5232_v38  ;;  %4635 = vmatprep.subr.bf16.mxu1 %v7362_v50  ;;  %v7476_v21 = vld [vmem:[#allocation42_spill] sm:$0xff]  ;;  %v7477_v31 = vld [vmem:[#allocation44_spill] sm:$0xff] }
 0x7f9   :  { %v4138_v5 = vmul.f32 -1.442695, %v3535_v54  ;;  %v3670_v9 = vunpack.c.l.bf16 %v7476_v21  ;;  %v3671_v54 = vunpack.c.l.bf16 %v7477_v31  ;;  %v3673_v38 = vunpack.c.h.bf16 %v7476_v21 }
 0x7fa   :  { %5074 = vpow2.f32 %v4136_v29 }
 0x7fb   :  { %3749 = vmatpush1.bf16.msra.mxu0 %v5233_v41  ;;  %4636 = vmatpush3.bf16.msra.mxu1 %v6811_v33  ;;  %5076 = vpow2.f32 %v4137_v61 }
 0x7fc   :  { %3750 = vmatprep.subr.bf16.mxu0 %v5234_v52  ;;  %4637 = vmatprep.subr.bf16.mxu1 %v7362_v50  ;;  %5078 = vpow2.f32 %v4138_v5  ;;  %v3674_v5 = vunpack.c.h.bf16 %v7477_v31 }
 0x7ff   :  { %3751 = vmatpush1.bf16.msra.mxu0 %v5235_v27  ;;  %4638 = vmatpush3.bf16.msra.mxu1 %v7447_v36  ;;  %v7469_v36 = vld [vmem:[#allocation57_spill] sm:$0xff] }
 0x800   :  { %3752 = vmatprep.subr.bf16.mxu0 %v5236_v55  ;;  %4639 = vmatprep.subr.bf16.mxu1 %v7362_v50 }
 0x802   :  { %v5073_v40 = vpop.eup %5072 }
 0x803   :  { %v3528_v46 = vadd.f32 1.0, %v5073_v40  ;;  %3753 = vmatpush1.bf16.msra.mxu0 %v7449_v20  ;;  %4640 = vmatpush3.bf16.msra.mxu1 %v7450_v28  ;;  %v7472_v28 = vld [vmem:[#allocation65_spill] sm:$0xff] }
 0x804   :  { %v5075_v33 = vpop.eup %5074  ;;  %3754 = vmatprep.subr.bf16.mxu0 %v7451_v16  ;;  %4641 = vmatprep.subr.bf16.mxu1 %v7362_v50 }
 0x805   :  { %5080 = vrcp.f32 %v3528_v46  ;;  %v3529_v44 = vadd.f32 1.0, %v5075_v33  ;;  %v5077_v53 = vpop.eup %5076 }
 0x806   :  { %v5079_v20 = vpop.eup %5078  ;;  %v3542_v16 = vadd.f32 1.0, %v5077_v53 }
 0x807   :  { %5082 = vrcp.f32 %v3529_v44  ;;  %3755 = vmatpush1.bf16.msra.mxu0 %v7452_v58  ;;  %4642 = vmatpush3.bf16.msra.mxu1 %v7469_v36  ;;  %v3548_v58 = vadd.f32 %v7098_v22, %v7070_v39  ;;  %v3543_v10 = vadd.f32 1.0, %v5079_v20 }
 0x808   :  { %3756 = vmatprep.subr.bf16.mxu0 %v7470_v37  ;;  %4643 = vmatprep.subr.bf16.mxu1 %v7362_v50  ;;  %5084 = vrcp.f32 %v3542_v16 }
 0x809   :  { %5086 = vrcp.f32 %v3543_v10 }
 0x80b   :  { %3757 = vmatpush1.bf16.msra.mxu0 %v7471_v23  ;;  %4644 = vmatpush3.bf16.msra.mxu1 %v7472_v28 }
 0x80f   :  { %v5081_v30 = vpop.eup %5080 }
 0x810   :  { %v3550_v50 = vmul.f32 %v5081_v30, %v3548_v58 }
 0x811   :  { %v5083_v17 = vpop.eup %5082 }
 0x812   :  { %v3552_v42 = vadd.f32 %v3550_v50, %v3516_v11  ;;  %v3551_v56 = vmul.f32 %v5083_v17, %v3549_v3  ;;  %v5085_v0 = vpop.eup %5084  ;;  %v7478_v50 = vld [vmem:[#allocation43_spill] sm:$0xff] }
 0x813   :  { %v5087_v18 = vpop.eup %5086  ;;  %v3556_v32 = vsub.f32 1.0, %v5085_v0  ;;  %v3560_v49 = vmul.f32 %v5085_v0, %v6985_v13  ;;  %v3672_v3 = vunpack.c.l.bf16 %v7478_v50 }
 0x814   :  { %5088 = vtanh.f32 %v3552_v42  ;;  %v3553_v48 = vadd.f32 %v3551_v56, %v3519_v6  ;;  %v3557_v19 = vsub.f32 1.0, %v5087_v18  ;;  %v3561_v24 = vmul.f32 %v5087_v18, %v6990_v45 }
 0x815   :  { %v3675_v56 = vunpack.c.h.bf16 %v7478_v50  ;;  %v7483_v50 = vld [vmem:[#allocation46_spill] sm:$0xff] }
 0x816   :  { %5090 = vtanh.f32 %v3553_v48 }
 0x81e   :  { %v5089_v25 = vpop.eup %5088 }
 0x81f   :  { %v3558_v2 = vmul.f32 %v5089_v25, %v3556_v32 }
 0x820   :  { %v5091_v15 = vpop.eup %5090 }
 0x821   :  { %v3559_v59 = vmul.f32 %v5091_v15, %v3557_v19  ;;  %v3562_v39 = vadd.f32 %v3560_v49, %v3558_v2 }
 0x823   :  { %v3563_v4 = vadd.f32 %v3561_v24, %v3559_v59  ;;  %v3568_v47 = vsel %vm1753_vm6, %v3562_v39, 0.0  ;;  %v7112_v51 = vsel %vm1753_vm6, %v3562_v39, %v6985_v13 }
 0x824   :  { %v4179_v12 = vpack.c.bf16 %v3568_v47, %v3568_v47 }
 0x825   :  { %v7117_v8 = vsel %vm1754_vm7, %v3563_v4, %v6990_v45  ;;  %v3569_v63 = vsel %vm1754_vm7, %v3563_v4, 0.0 }
 0x826   :  { %v4180_v7 = vpack.c.bf16 %v3569_v63, %v3569_v63  ;;  %3578 = vst [vmem:[#allocation13 + $0x14] sm:$0xf] %v4179_v12  ;;  %v3741_v62 = vpack.c.bf16 %v7117_v8, %v7112_v51 }
 0x828   :  { %3579 = vst [vmem:[#allocation13 + $0x1c] sm:$0xf] %v4180_v7  ;;  %3775 = vmatmul.mubr.bf16.vlgmr.msra.gmra.mrb[120].mxu0 %v3741_v62  ;;  %4646 = vmatmul.mubr.bf16.vlgmr.msra.gmra.mrb[96].mxu1 %v3741_v62 }
 0x8c1   :  { %v3620_v13 = vpop.f32.mrb[116].mxu0  ;;  %v3663_v14 = vpop.f32.mrb[92].mxu1 }
 0x8c2   :  { %v3676_v34 = vadd.f32 %v3670_v9, %v3620_v13  ;;  %v3622_v45 = vpop.f32.mrb[117].mxu0  ;;  %v4627_v29 = vpop.f32.mrb[93].mxu1  ;;  %v3704_v30 = vadd.f32 %v7038_v1, %v3663_v14  ;;  %v7481_v13 = vld [vmem:[#allocation21_spill] sm:$0xff] }
 0x8c3   :  { %v3690_v61 = vadd.f32 %v3671_v54, %v3622_v45  ;;  %v3624_v41 = vpop.f32.mrb[118].mxu0  ;;  %v3666_v52 = vpop.f32.mrb[94].mxu1  ;;  %v3826_v14 = vunpack.c.l.bf16 %v7481_v13 }
 0x8c4   :  { %v4141_v27 = vmul.f32 -1.442695, %v3676_v34  ;;  %v3677_v55 = vadd.f32 %v3673_v38, %v3624_v41  ;;  %v3626_v40 = vpop.f32.mrb[119].mxu0  ;;  %v4628_v46 = vpop.f32.mrb[95].mxu1  ;;  %v3705_v6 = vadd.f32 %v7038_v1, %v3666_v52  ;;  %v7482_v34 = vld [vmem:[#allocation45_spill] sm:$0xff] }
 0x8c5   :  { %v3691_v33 = vadd.f32 %v3674_v5, %v3626_v40  ;;  %v4143_v36 = vmul.f32 -1.442695, %v3690_v61  ;;  %v3827_v45 = vunpack.c.l.bf16 %v7482_v34  ;;  %v3829_v61 = vunpack.c.h.bf16 %v7481_v13 }
 0x8c6   :  { %5092 = vpow2.f32 %v4141_v27  ;;  %v4142_v44 = vmul.f32 -1.442695, %v3677_v55 }
 0x8c7   :  { %v4144_v37 = vmul.f32 -1.442695, %v3691_v33 }
 0x8c8   :  { %5094 = vpow2.f32 %v4142_v44 }
 0x8c9   :  { %5096 = vpow2.f32 %v4143_v36 }
 0x8ca   :  { %5098 = vpow2.f32 %v4144_v37 }
 0x8d0   :  { %v5093_v53 = vpop.eup %5092 }
 0x8d1   :  { %v3684_v20 = vadd.f32 1.0, %v5093_v53 }
 0x8d2   :  { %v5095_v23 = vpop.eup %5094 }
 0x8d3   :  { %5100 = vrcp.f32 %v3684_v20  ;;  %v3685_v28 = vadd.f32 1.0, %v5095_v23  ;;  %v5097_v16 = vpop.eup %5096 }
 0x8d4   :  { %v5099_v58 = vpop.eup %5098  ;;  %v3698_v10 = vadd.f32 1.0, %v5097_v16 }
 0x8d5   :  { %5102 = vrcp.f32 %v3685_v28  ;;  %v3699_v26 = vadd.f32 1.0, %v5099_v58 }
 0x8d6   :  { %5104 = vrcp.f32 %v3698_v10 }
 0x8d7   :  { %5106 = vrcp.f32 %v3699_v26 }
 0x8dd   :  { %v5101_v11 = vpop.eup %5100 }
 0x8de   :  { %v3706_v17 = vmul.f32 %v5101_v11, %v3704_v30 }
 0x8df   :  { %v5103_v42 = vpop.eup %5102 }
 0x8e0   :  { %v3708_v48 = vadd.f32 %v3706_v17, %v3672_v3  ;;  %v3707_v0 = vmul.f32 %v5103_v42, %v3705_v6  ;;  %v5105_v32 = vpop.eup %5104  ;;  %v3828_v3 = vunpack.c.l.bf16 %v7483_v50 }
 0x8e1   :  { %v5107_v25 = vpop.eup %5106  ;;  %v3712_v49 = vsub.f32 1.0, %v5105_v32  ;;  %v3716_v15 = vmul.f32 %v5105_v32, %v7051_v43 }
 0x8e2   :  { %5108 = vtanh.f32 %v3708_v48  ;;  %v3709_v18 = vadd.f32 %v3707_v0, %v3675_v56  ;;  %v3713_v24 = vsub.f32 1.0, %v5107_v25  ;;  %v3717_v4 = vmul.f32 %v5107_v25, %v7056_v60 }
 0x8e3   :  { %v3831_v56 = vunpack.c.h.bf16 %v7483_v50 }
 0x8e4   :  { %5110 = vtanh.f32 %v3709_v18 }
 0x8ec   :  { %v5109_v19 = vpop.eup %5108 }
 0x8ed   :  { %v3714_v2 = vmul.f32 %v5109_v19, %v3712_v49 }
 0x8ee   :  { %v5111_v59 = vpop.eup %5110 }
 0x8ef   :  { %v3718_v39 = vadd.f32 %v3716_v15, %v3714_v2  ;;  %v3715_v1 = vmul.f32 %v5111_v59, %v3713_v24 }
 0x8f1   :  { %v3724_v47 = vsel %vm1579_vm3, %v3718_v39, 0.0  ;;  %v3719_v12 = vadd.f32 %v3717_v4, %v3715_v1  ;;  %v3720_v57 = vsel %vm1579_vm3, %v3718_v39, %v7051_v43 }
 0x8f2   :  { %v4181_v63 = vpack.c.bf16 %v3724_v47, %v3724_v47  ;;  %3894 = vst [vmem:[#allocation14] sm:$0xff] %v3720_v57 }
 0x8f3   :  { %v3725_v62 = vsel %vm1580_vm5, %v3719_v12, 0.0  ;;  %v3721_v21 = vsel %vm1580_vm5, %v3719_v12, %v7056_v60  ;;  %v3830_v60 = vunpack.c.h.bf16 %v7482_v34 }
 0x8f4   :  { %3734 = vst [vmem:[#allocation13 + $0x70] sm:$0xf] %v4181_v63  ;;  %v4182_v9 = vpack.c.bf16 %v3725_v62, %v3725_v62  ;;  %3895 = vst [vmem:[#allocation14 + $0x8] sm:$0xff] %v3721_v21  ;;  %v7485_v63 = vld [vmem:[#allocation58_spill] sm:$0xff] }
 0x8f5   :  { %vm7486_vm4 = vcmp.eq.s32.totalorder %v7485_v63, 1 }
 0x8f6   :  { %3735 = vst [vmem:[#allocation13 + $0x78] sm:$0xf] %v4182_v9  ;;  %vm7487_vm2 = vmmov %vm7486_vm4 }
 0x8fb   :  { %v3776_v31 = vpop.f32.mrb[120].mxu0  ;;  %v3819_v54 = vpop.f32.mrb[96].mxu1 }
 0x8fc   :  { %v3832_v43 = vadd.f32 %v3826_v14, %v3776_v31  ;;  %v3778_v29 = vpop.f32.mrb[121].mxu0  ;;  %v4647_v38 = vpop.f32.mrb[97].mxu1  ;;  %v3860_v30 = vadd.f32 %v7098_v22, %v3819_v54 }
 0x8fd   :  { %v3846_v41 = vadd.f32 %v3827_v45, %v3778_v29  ;;  %v3780_v52 = vpop.f32.mrb[122].mxu0  ;;  %v3822_v5 = vpop.f32.mrb[98].mxu1 }
 0x8fe   :  { %v4147_v27 = vmul.f32 -1.442695, %v3832_v43  ;;  %v3833_v55 = vadd.f32 %v3829_v61, %v3780_v52  ;;  %v3782_v40 = vpop.f32.mrb[123].mxu0  ;;  %v4648_v46 = vpop.f32.mrb[99].mxu1  ;;  %v3861_v6 = vadd.f32 %v7098_v22, %v3822_v5 }
 0x8ff   :  { %v3847_v33 = vadd.f32 %v3830_v60, %v3782_v40  ;;  %v4149_v36 = vmul.f32 -1.442695, %v3846_v41 }
 0x900   :  { %5112 = vpow2.f32 %v4147_v27  ;;  %v4148_v44 = vmul.f32 -1.442695, %v3833_v55 }
 0x901   :  { %v4150_v37 = vmul.f32 -1.442695, %v3847_v33 }
 0x902   :  { %5114 = vpow2.f32 %v4148_v44 }
 0x903   :  { %5116 = vpow2.f32 %v4149_v36 }
 0x904   :  { %5118 = vpow2.f32 %v4150_v37 }
 0x90a   :  { %v5113_v53 = vpop.eup %5112 }
 0x90b   :  { %v3840_v20 = vadd.f32 1.0, %v5113_v53 }
 0x90c   :  { %v5115_v23 = vpop.eup %5114 }
 0x90d   :  { %5120 = vrcp.f32 %v3840_v20  ;;  %v3841_v28 = vadd.f32 1.0, %v5115_v23  ;;  %v5117_v16 = vpop.eup %5116 }
 0x90e   :  { %v5119_v58 = vpop.eup %5118  ;;  %v3854_v10 = vadd.f32 1.0, %v5117_v16 }
 0x90f   :  { %5122 = vrcp.f32 %v3841_v28  ;;  %v3855_v26 = vadd.f32 1.0, %v5119_v58 }
 0x910   :  { %5124 = vrcp.f32 %v3854_v10 }
 0x911   :  { %5126 = vrcp.f32 %v3855_v26 }
 0x917   :  { %v5121_v11 = vpop.eup %5120 }
 0x918   :  { %v3862_v17 = vmul.f32 %v5121_v11, %v3860_v30 }
 0x919   :  { %v5123_v42 = vpop.eup %5122 }
 0x91a   :  { %v3864_v48 = vadd.f32 %v3862_v17, %v3828_v3  ;;  %v3863_v0 = vmul.f32 %v5123_v42, %v3861_v6  ;;  %v5125_v32 = vpop.eup %5124 }
 0x91b   :  { %v5127_v25 = vpop.eup %5126  ;;  %v3868_v49 = vsub.f32 1.0, %v5125_v32  ;;  %v3872_v15 = vmul.f32 %v5125_v32, %v7112_v51 }
 0x91c   :  { %5128 = vtanh.f32 %v3864_v48  ;;  %v3865_v18 = vadd.f32 %v3863_v0, %v3831_v56  ;;  %v3869_v24 = vsub.f32 1.0, %v5127_v25  ;;  %v3873_v1 = vmul.f32 %v5127_v25, %v7117_v8 }
 0x91e   :  { %5130 = vtanh.f32 %v3865_v18 }
 0x926   :  { %v5129_v19 = vpop.eup %5128 }
 0x927   :  { %v3870_v2 = vmul.f32 %v5129_v19, %v3868_v49 }
 0x928   :  { %v5131_v59 = vpop.eup %5130 }
 0x929   :  { %v3874_v39 = vadd.f32 %v3872_v15, %v3870_v2  ;;  %v3871_v22 = vmul.f32 %v5131_v59, %v3869_v24 }
 0x92b   :  { %v3880_v35 = vsel %vm1271_vm1, %v3874_v39, 0.0  ;;  %v3875_v47 = vadd.f32 %v3873_v1, %v3871_v22  ;;  %v3876_v12 = vsel %vm1271_vm1, %v3874_v39, %v7112_v51 }
 0x92c   :  { %v4183_v57 = vpack.c.bf16 %v3880_v35, %v3880_v35  ;;  %3899 = vst [vmem:[#allocation14 + $0x10] sm:$0xff] %v3876_v12 }
 0x92d   :  { %v3881_v7 = vsel %vm7486_vm4, %v3875_v47, 0.0  ;;  %v3877_v62 = vsel %vm7487_vm2, %v3875_v47, %v7117_v8 }
 0x92e   :  { %3890 = vst [vmem:[#allocation13 + $0x4] sm:$0xf] %v4183_v57  ;;  %v4184_v21 = vpack.c.bf16 %v3881_v7, %v3881_v7  ;;  %3900 = vst [vmem:[#allocation14 + $0x18] sm:$0xff] %v3877_v62 }
 0x92f   :  { %5337 = shalt.err (!%p5334_p8)
}
 0x930   :  { %s5338_s13 = scalar_lea.hbm %s7208_s8, 512 }
 0x931   :  { %p5339_p9 = scmp.ne.s32.totalorder %s7208_s8, %s5338_s13  ;;  %p5342_p10 = scmp.lt.u32.totalorder %s5338_s13, %s7208_s8 }
 0x933   :  { %p5344_p11 = pnand %p5342_p10, %p5339_p9 }
 0x935   :  { %5347 = shalt.err (!%p5344_p11)
}
 0x936   :  { %3924 = dma.vmem_to_hbm [thread:$0]  %s3919_s30, 512, %s7208_s8, [#allocation15], %s5381_s15, %s5381_s15, %s5382_s16   ;;  %3891 = vst [vmem:[#allocation13 + $0xc] sm:$0xf] %v4184_v21 }
 0x937   :  { %s5348_s21 = scalar_lea.vmem %s7163_s10, 2048  ;;  %p5353_p13 = scmp.lt.s32.totalorder %s7163_s10, %s7163_s10 }
 0x938   :  { %p5349_p12 = scmp.ne.s32.totalorder %s7163_s10, %s5348_s21  ;;  %p5354_p0 = scmp.lt.s32.totalorder %s5348_s21, %s5348_s21 }
 0x93a   :  { %p5355_p1 = por %p5354_p0, %p5353_p13 }
 0x93c   :  { %p5356_p2 = pnand %p5355_p1, %p5349_p12 }
 0x93e   :  { %5359 = shalt.err (!%p5356_p2)
}
 0x93f   :  { %s5360_s0 = scalar_lea.hbm %s7207_s7, 2048 }
 0x940   :  { %p5361_p3 = scmp.ne.s32.totalorder %s7207_s7, %s5360_s0  ;;  %p5364_p4 = scmp.lt.u32.totalorder %s5360_s0, %s7207_s7 }
 0x942   :  { %p5366_p5 = pnand %p5364_p4, %p5361_p3 }
 0x944   :  { %5369 = shalt.err (!%p5366_p5)
}
 0x945   :  { %3912 = dma.vmem_to_hbm [thread:$0]  %s7163_s10, 2048, %s7207_s7, [#allocation7], %s5381_s15, %s5381_s15, %s5382_s16  }
 0x946   :  { %5376 = dma.done.wait [#allocation7], 2048  }
 0x947   :  { %5377 = vsyncadd [#allocation7], 4294965248 }
 0x948   :  { %5378 = dma.done.wait [#allocation15], 512  }
 0x949   :  { %5379 = vsyncadd [#allocation15], 4294966784 }
 0x94a   :  { %3931 = vsyncpa [#allocation6], 1 }
 0x94b   :  { %3932 = vsyncpa [#allocation9], 1 }
 0x94c   :  { %3933 = vsyncpa [#allocation12], 1 }
 0x94d   :  { %3934 = vsyncpa [#allocation7], 1 }
 0x94e   :  { %3935 = vsyncpa [#allocation15], 1 }

</bundles_post_ra>
